<compile_context>
chip_gen: v5e
topology: v5e:2x2
jax: 0.10.0
libtpu: 0.0.40
codegen_flags: <defaults>
</compile_context>

<pallas_src>
import functools

import jax
import jax.numpy as jnp
from jax.experimental import pallas as pl
from jax.experimental.pallas import tpu as pltpu


def _cca_kernel(xr_ref, xc_ref, w_ref, b_ref, gamma_ref, yr_ref, yc_ref,
                *, H, W, C, C8):
    """One batch element.

    xr_ref: (N, C) f32,  pixel index = h*W + w  (row-major)
    xc_ref: (N, C) bf16, pixel index = w*H + h  (column-major)
    w_ref : (C, P) bf16 fused [Wq | Wk | Wv],  b_ref: (1, P) f32 fused bias
    gamma_ref: (1,) f32 in SMEM
    yr_ref: (N, C) f32 row-attention part + residual (row-major pixel order)
    yc_ref: (N, C) f32 column-attention part (column-major pixel order)
    """
    N = H * W
    P = 2 * C8 + C
    bf16 = jnp.bfloat16

    xr = xr_ref[...]            # (N, C) f32 (kept exact for the residual)
    xc = xc_ref[...]            # (N, C) bf16
    w_all = w_ref[...]          # (C, P) bf16
    b_all = b_ref[...]          # (1, P) f32

    # Fused 1x1-conv projections (q | k | v): bf16 MXU operands, f32 accumulation.
    qkv_r = jnp.dot(xr.astype(bf16), w_all,
                    preferred_element_type=jnp.float32) + b_all        # (N, P)
    qkv_c = jnp.dot(xc, w_all,
                    preferred_element_type=jnp.float32) + b_all        # (N, P)
    qkv_r = qkv_r.reshape(H, W, P)                                     # [h, w, :]
    qkv_c = qkv_c.reshape(W, H, P)                                     # [w, h, :]

    q_r = qkv_r[:, :, :C8].astype(bf16)          # (H, W, C8)
    k_r = qkv_r[:, :, C8:2 * C8].astype(bf16)    # (H, W, C8)
    v_r = qkv_r[:, :, 2 * C8:].astype(bf16)      # (H, W, C)
    q_c = qkv_c[:, :, :C8].astype(bf16)          # (W, H, C8)
    k_c = qkv_c[:, :, C8:2 * C8].astype(bf16)    # (W, H, C8)
    v_c = qkv_c[:, :, 2 * C8:].astype(bf16)      # (W, H, C)

    # Row attention: for each image row h, scores between its W pixels.
    #   s_w[h, j, j'] = <q(h,j), k(h,j')>
    s_w = jnp.einsum('hqc,hkc->hqk', q_r, k_r,
                     preferred_element_type=jnp.float32)               # (H, W, W)
    # Column attention: for each image column w, scores between its H pixels.
    #   s_h[w, i, i'] = <q(i,w), k(i',w)>, diagonal masked like the reference's -inf
    #   (the self pixel is counted exactly once, by the row part).
    s_h = jnp.einsum('wqc,wkc->wqk', q_c, k_c,
                     preferred_element_type=jnp.float32)               # (W, H, H)
    ii = jax.lax.broadcasted_iota(jnp.int32, (H, H), 0)
    jj = jax.lax.broadcasted_iota(jnp.int32, (H, H), 1)
    diag_bias = jnp.where(ii == jj, jnp.float32(-1e30), jnp.float32(0.0))
    s_h = s_h + diag_bias[None, :, :]

    # Joint softmax over the H+W criss-cross neighbours of every pixel, with the
    # normalization deferred past the PV matmuls.
    m_w = jnp.max(s_w, axis=-1)                         # (H, W)
    m_h = jnp.max(s_h, axis=-1)                         # (W, H)
    m_row = jnp.maximum(m_w, m_h.T)                     # (H, W) joint max
    m_col = m_row.T                                     # (W, H)
    e_w = jnp.exp(s_w - m_row[:, :, None])              # (H, W, W)
    e_h = jnp.exp(s_h - m_col[:, :, None])              # (W, H, H), masked -> 0
    denom = jnp.sum(e_w, axis=-1) + jnp.sum(e_h, axis=-1).T   # (H, W), >= 1
    inv_row = pl.reciprocal(denom, approx=True)         # EUP slot, ~free
    inv_col = inv_row.T                                 # (W, H)

    # Unnormalized attention-weighted values (bf16 MXU operands, f32 accumulation).
    o_w = jnp.einsum('hqk,hkc->hqc', e_w.astype(bf16), v_r,
                     preferred_element_type=jnp.float32)               # (H, W, C)
    o_h = jnp.einsum('wqk,wkc->wqc', e_h.astype(bf16), v_c,
                     preferred_element_type=jnp.float32)               # (W, H, C)

    gamma = gamma_ref[0]
    x3 = xr.reshape(H, W, C)
    y_row = (gamma * inv_row)[:, :, None] * o_w + x3    # row part + residual
    y_col = (gamma * inv_col)[:, :, None] * o_h         # column part (no residual)
    yr_ref[...] = y_row.reshape(N, C)
    yc_ref[...] = y_col.reshape(N, C)


def criss_cross_attention(x_nchw, wq, bq, wk, bk, wv, bv, gamma):
    """x_nchw: (B, C, H, W) float32.  wq/wk: (C, C//8), wv: (C, C), gamma: scalar."""
    B, C, H, W = x_nchw.shape
    C8 = wq.shape[1]
    N = H * W
    P = 2 * C8 + C

    # Glue (cheap, O(N*C) vs O(N*(H+W)*C) attention work): row-major and
    # column-major pixel orderings of the NHWC activations.
    x_nhwc = jnp.transpose(x_nchw, (0, 2, 3, 1)).astype(jnp.float32)     # (B,H,W,C)
    x_row = x_nhwc.reshape(B, N, C)                                      # idx = h*W+w
    x_col = jnp.transpose(x_nhwc, (0, 2, 1, 3)).reshape(B, N, C).astype(jnp.bfloat16)

    w_all = jnp.concatenate([wq, wk, wv], axis=1).astype(jnp.bfloat16)   # (C, P)
    b_all = jnp.concatenate([bq, bk, bv]).reshape(1, P).astype(jnp.float32)
    gamma_arr = jnp.reshape(jnp.asarray(gamma, jnp.float32), (1,))

    kernel = functools.partial(_cca_kernel, H=H, W=W, C=C, C8=C8)
    y_row, y_col = pl.pallas_call(
        kernel,
        out_shape=(jax.ShapeDtypeStruct((B, N, C), jnp.float32),
                   jax.ShapeDtypeStruct((B, N, C), jnp.float32)),
        grid_spec=pltpu.PrefetchScalarGridSpec(
            num_scalar_prefetch=0,
            grid=(B,),
            in_specs=[
                pl.BlockSpec((None, N, C), lambda b: (b, 0, 0)),    # x row-major
                pl.BlockSpec((None, N, C), lambda b: (b, 0, 0)),    # x col-major
                pl.BlockSpec((C, P), lambda b: (0, 0)),             # fused Wqkv
                pl.BlockSpec((1, P), lambda b: (0, 0)),             # fused bias
                pl.BlockSpec(memory_space=pltpu.MemorySpace.SMEM),  # gamma scalar
            ],
            out_specs=[
                pl.BlockSpec((None, N, C), lambda b: (b, 0, 0)),    # row part + x
                pl.BlockSpec((None, N, C), lambda b: (b, 0, 0)),    # column part
            ],
        ),
        compiler_params=pltpu.CompilerParams(
            dimension_semantics=("parallel",),        # batch steps independent (v7x 2 TCs)
            vmem_limit_bytes=48 * 1024 * 1024,        # explicit; under v7x 64 MiB physical
        ),
    )(x_row, x_col, w_all, b_all, gamma_arr)

    # Combine the two partial outputs: out[b,h,w,c] = y_row[b,h,w,c] + y_col[b,w,h,c].
    out_nhwc = (y_row.reshape(B, H, W, C)
                + jnp.transpose(y_col.reshape(B, W, H, C), (0, 2, 1, 3)))
    return jnp.transpose(out_nhwc, (0, 3, 1, 2))


def reference(x, wq, bq, wk, bk, wv, bv, gamma):
    """Pure-JAX f32 mirror of the PyTorch forward (NCHW), for correctness checking."""
    b, c, h, w = x.shape
    query = jnp.einsum('bchw,cd->bdhw', x, wq) + bq[None, :, None, None]
    key = jnp.einsum('bchw,cd->bdhw', x, wk) + bk[None, :, None, None]
    value = jnp.einsum('bchw,cd->bdhw', x, wv) + bv[None, :, None, None]
    energy_H = jnp.einsum('bciw,bckw->biwk', query, key)      # (B,H,W,H), last = i'
    diag = jnp.eye(h, dtype=bool)[None, :, None, :]           # mask i == i'
    energy_H = jnp.where(diag, -jnp.inf, energy_H)
    energy_W = jnp.einsum('bcij,bcik->bijk', query, key)      # (B,H,W,W), last = j'
    concat = jnp.concatenate([energy_H, energy_W], axis=3)
    att = jax.nn.softmax(concat, axis=3)
    att_H = att[..., :h]
    att_W = att[..., h:]
    out_H = jnp.einsum('bckj,bijk->bcij', value, att_H)
    out_W = jnp.einsum('bcik,bijk->bcij', value, att_W)
    return gamma * (out_H + out_W) + x


if __name__ == "__main__":
    B, C, H, W = 2, 16, 16, 16          # in_channels must be >= 8 (C//8 q/k channels)
    C8 = C // 8

    key = jax.random.PRNGKey(0)
    ks = jax.random.split(key, 7)
    x = jax.random.normal(ks[0], (B, C, H, W), jnp.float32)
    wq = jax.random.normal(ks[1], (C, C8), jnp.float32) * 0.2
    bq = jax.random.normal(ks[2], (C8,), jnp.float32) * 0.1
    wk = jax.random.normal(ks[3], (C, C8), jnp.float32) * 0.2
    bk = jax.random.normal(ks[4], (C8,), jnp.float32) * 0.1
    wv = jax.random.normal(ks[5], (C, C), jnp.float32) * 0.2
    bv = jax.random.normal(ks[6], (C,), jnp.float32) * 0.1
    # PyTorch initializes gamma = 0 (output would equal x); use a nonzero deterministic
    # value so the attention path is actually exercised/verified.
    gamma = jnp.float32(0.5)

    out = criss_cross_attention(x, wq, bq, wk, bk, wv, bv, gamma)
    out = jax.block_until_ready(out)

    ref = reference(x, wq, bq, wk, bk, wv, bv, gamma)
    assert out.shape == x.shape
    # Tolerance loosened vs v1: bf16 MXU operands (f32 accumulation) + approximate
    # EUP reciprocal, compared against a pure-f32 reference.
    if not jnp.allclose(out, ref, rtol=3e-2, atol=3e-2):
        max_err = jnp.max(jnp.abs(out - ref))
        raise AssertionError(f"kernel mismatch vs reference, max abs err = {max_err}")

    print("KERNEL_OK")
</pallas_src>

<mosaic_0001>
module attributes {stable_mosaic.version = 11 : i64} {
  func.func @_cca_kernel(%arg0: i32, %arg1: memref<1x256x16xf32, #tpu.memory_space<vmem>>, %arg2: memref<1x256x16xbf16, #tpu.memory_space<vmem>>, %arg3: memref<16x20xbf16, #tpu.memory_space<vmem>>, %arg4: memref<1x20xf32, #tpu.memory_space<vmem>>, %arg5: memref<1xf32, #tpu.memory_space<smem>>, %arg6: memref<1x256x16xf32, #tpu.memory_space<vmem>>, %arg7: memref<1x256x16xf32, #tpu.memory_space<vmem>>) attributes {dimension_semantics = [#tpu.dimension_semantics<parallel>], iteration_bounds = array<i64: 2>, scalar_prefetch = 0 : i64, scratch_operands = 0 : i64, tpu.core_type = #tpu.core_type<tc>, window_params = [{transform_indices = @transform_0, window_bounds = array<i64: 1, 256, 16>}, {transform_indices = @transform_1, window_bounds = array<i64: 1, 256, 16>}, {pipeline_mode = #tpu.pipeline_mode<synchronous>, transform_indices = @transform_2, window_bounds = array<i64: 16, 20>}, {pipeline_mode = #tpu.pipeline_mode<synchronous>, transform_indices = @transform_3, window_bounds = array<i64: 1, 20>}, {transform_indices = @transform_4, window_bounds = array<i64: 1>}, {transform_indices = @transform_5, window_bounds = array<i64: 1, 256, 16>}, {transform_indices = @transform_6, window_bounds = array<i64: 1, 256, 16>}]} {
    %c0 = arith.constant 0 : index
    %c0_0 = arith.constant 0 : index
    %c0_1 = arith.constant 0 : index
    %0 = vector.load %arg1[%c0, %c0_0, %c0_1] : memref<1x256x16xf32, #tpu.memory_space<vmem>>, vector<1x256x16xf32>
    %1 = vector.shape_cast %0 : vector<1x256x16xf32> to vector<256x16xf32>
    %c0_2 = arith.constant 0 : index
    %c0_3 = arith.constant 0 : index
    %c0_4 = arith.constant 0 : index
    %2 = vector.load %arg2[%c0_2, %c0_3, %c0_4] : memref<1x256x16xbf16, #tpu.memory_space<vmem>>, vector<1x256x16xbf16>
    %3 = vector.shape_cast %2 : vector<1x256x16xbf16> to vector<256x16xbf16>
    %c0_5 = arith.constant 0 : index
    %c0_6 = arith.constant 0 : index
    %4 = vector.load %arg3[%c0_5, %c0_6] : memref<16x20xbf16, #tpu.memory_space<vmem>>, vector<16x20xbf16>
    %c0_7 = arith.constant 0 : index
    %c0_8 = arith.constant 0 : index
    %5 = vector.load %arg4[%c0_7, %c0_8] : memref<1x20xf32, #tpu.memory_space<vmem>>, vector<1x20xf32>
    %6 = arith.truncf %1 : vector<256x16xf32> to vector<256x16xbf16>
    %cst = arith.constant dense<0.000000e+00> : vector<256x20xf32>
    %7 = tpu.matmul %6, %4, %cst {dimension_numbers = #tpu.dot_dimension_numbers<[1], [0], [0], [1], [0, 0, 1, 1], [], []>} : vector<256x16xbf16>, vector<16x20xbf16>, vector<256x20xf32> -> vector<256x20xf32>
    %8 = vector.broadcast %5 : vector<1x20xf32> to vector<256x20xf32>
    %9 = arith.addf %7, %8 : vector<256x20xf32>
    %cst_9 = arith.constant dense<0.000000e+00> : vector<256x20xf32>
    %10 = tpu.matmul %3, %4, %cst_9 {dimension_numbers = #tpu.dot_dimension_numbers<[1], [0], [0], [1], [0, 0, 1, 1], [], []>} : vector<256x16xbf16>, vector<16x20xbf16>, vector<256x20xf32> -> vector<256x20xf32>
    %11 = vector.broadcast %5 : vector<1x20xf32> to vector<256x20xf32>
    %12 = arith.addf %10, %11 : vector<256x20xf32>
    %13 = vector.shape_cast %9 : vector<256x20xf32> to vector<16x16x20xf32>
    %14 = vector.shape_cast %12 : vector<256x20xf32> to vector<16x16x20xf32>
    %15 = vector.extract_strided_slice %13 {offsets = [0, 0, 0], sizes = [16, 16, 2], strides = [1, 1, 1]} : vector<16x16x20xf32> to vector<16x16x2xf32>
    %16 = arith.truncf %15 : vector<16x16x2xf32> to vector<16x16x2xbf16>
    %17 = vector.extract_strided_slice %13 {offsets = [0, 0, 2], sizes = [16, 16, 2], strides = [1, 1, 1]} : vector<16x16x20xf32> to vector<16x16x2xf32>
    %18 = arith.truncf %17 : vector<16x16x2xf32> to vector<16x16x2xbf16>
    %19 = vector.extract_strided_slice %13 {offsets = [0, 0, 4], sizes = [16, 16, 16], strides = [1, 1, 1]} : vector<16x16x20xf32> to vector<16x16x16xf32>
    %20 = arith.truncf %19 : vector<16x16x16xf32> to vector<16x16x16xbf16>
    %21 = vector.extract_strided_slice %14 {offsets = [0, 0, 0], sizes = [16, 16, 2], strides = [1, 1, 1]} : vector<16x16x20xf32> to vector<16x16x2xf32>
    %22 = arith.truncf %21 : vector<16x16x2xf32> to vector<16x16x2xbf16>
    %23 = vector.extract_strided_slice %14 {offsets = [0, 0, 2], sizes = [16, 16, 2], strides = [1, 1, 1]} : vector<16x16x20xf32> to vector<16x16x2xf32>
    %24 = arith.truncf %23 : vector<16x16x2xf32> to vector<16x16x2xbf16>
    %25 = vector.extract_strided_slice %14 {offsets = [0, 0, 4], sizes = [16, 16, 16], strides = [1, 1, 1]} : vector<16x16x20xf32> to vector<16x16x16xf32>
    %26 = arith.truncf %25 : vector<16x16x16xf32> to vector<16x16x16xbf16>
    "tpu.trace_start"() <{level = 10 : i32, message = "hqc,hkc->hqk"}> : () -> ()
    %cst_10 = arith.constant dense<0.000000e+00> : vector<16x16x16xf32>
    %27 = tpu.matmul %16, %18, %cst_10 {dimension_numbers = #tpu.dot_dimension_numbers<[2], [2], [1], [1], [0, 0, 0, 1, 1, 1], [0], [0]>} : vector<16x16x2xbf16>, vector<16x16x2xbf16>, vector<16x16x16xf32> -> vector<16x16x16xf32>
    "tpu.trace_stop"() : () -> ()
    "tpu.trace_start"() <{level = 10 : i32, message = "wqc,wkc->wqk"}> : () -> ()
    %cst_11 = arith.constant dense<0.000000e+00> : vector<16x16x16xf32>
    %28 = tpu.matmul %22, %24, %cst_11 {dimension_numbers = #tpu.dot_dimension_numbers<[2], [2], [1], [1], [0, 0, 0, 1, 1, 1], [0], [0]>} : vector<16x16x2xbf16>, vector<16x16x2xbf16>, vector<16x16x16xf32> -> vector<16x16x16xf32>
    "tpu.trace_stop"() : () -> ()
    %29 = tpu.iota {dimensions = array<i32: 0>} : vector<16x16xi32>
    %30 = tpu.iota {dimensions = array<i32: 1>} : vector<16x16xi32>
    %31 = arith.cmpi eq, %29, %30 : vector<16x16xi32>
    %cst_12 = arith.constant -1.000000e+30 : f32
    %cst_13 = arith.constant 0.000000e+00 : f32
    %32 = vector.broadcast %cst_12 : f32 to vector<16x16xf32>
    %33 = vector.broadcast %cst_13 : f32 to vector<16x16xf32>
    %34 = arith.select %31, %32, %33 : vector<16x16xi1>, vector<16x16xf32>
    %35 = vector.shape_cast %34 : vector<16x16xf32> to vector<1x16x16xf32>
    %36 = vector.broadcast %35 : vector<1x16x16xf32> to vector<16x16x16xf32>
    %37 = arith.addf %28, %36 : vector<16x16x16xf32>
    %cst_14 = arith.constant dense<0xFF800000> : vector<16x16xf32>
    %38 = vector.multi_reduction <maximumf>, %27, %cst_14 [2] : vector<16x16x16xf32> to vector<16x16xf32>
    %cst_15 = arith.constant dense<0xFF800000> : vector<16x16xf32>
    %39 = vector.multi_reduction <maximumf>, %37, %cst_15 [2] : vector<16x16x16xf32> to vector<16x16xf32>
    %40 = tpu.transpose %39, [1, 0] : vector<16x16xf32> -> vector<16x16xf32>
    %41 = arith.maximumf %38, %40 : vector<16x16xf32>
    %42 = tpu.transpose %41, [1, 0] : vector<16x16xf32> -> vector<16x16xf32>
    %43 = vector.shape_cast %41 : vector<16x16xf32> to vector<16x16x1xf32>
    %44 = vector.broadcast %43 : vector<16x16x1xf32> to vector<16x16x16xf32>
    %45 = arith.subf %27, %44 : vector<16x16x16xf32>
    %46 = math.exp %45 : vector<16x16x16xf32>
    %47 = vector.shape_cast %42 : vector<16x16xf32> to vector<16x16x1xf32>
    %48 = vector.broadcast %47 : vector<16x16x1xf32> to vector<16x16x16xf32>
    %49 = arith.subf %37, %48 : vector<16x16x16xf32>
    %50 = math.exp %49 : vector<16x16x16xf32>
    %cst_16 = arith.constant dense<0.000000e+00> : vector<16x16xf32>
    %51 = vector.multi_reduction <add>, %46, %cst_16 [2] : vector<16x16x16xf32> to vector<16x16xf32>
    %cst_17 = arith.constant dense<0.000000e+00> : vector<16x16xf32>
    %52 = vector.multi_reduction <add>, %50, %cst_17 [2] : vector<16x16x16xf32> to vector<16x16xf32>
    %53 = tpu.transpose %52, [1, 0] : vector<16x16xf32> -> vector<16x16xf32>
    %54 = arith.addf %51, %53 : vector<16x16xf32>
    %55 = tpu.reciprocal %54 {approx = true} : vector<16x16xf32> -> vector<16x16xf32>
    %56 = tpu.transpose %55, [1, 0] : vector<16x16xf32> -> vector<16x16xf32>
    %57 = arith.truncf %46 : vector<16x16x16xf32> to vector<16x16x16xbf16>
    "tpu.trace_start"() <{level = 10 : i32, message = "hqk,hkc->hqc"}> : () -> ()
    %cst_18 = arith.constant dense<0.000000e+00> : vector<16x16x16xf32>
    %58 = tpu.matmul %57, %20, %cst_18 {dimension_numbers = #tpu.dot_dimension_numbers<[2], [1], [1], [2], [0, 0, 0, 1, 1, 2], [0], [0]>} : vector<16x16x16xbf16>, vector<16x16x16xbf16>, vector<16x16x16xf32> -> vector<16x16x16xf32>
    "tpu.trace_stop"() : () -> ()
    %59 = arith.truncf %50 : vector<16x16x16xf32> to vector<16x16x16xbf16>
    "tpu.trace_start"() <{level = 10 : i32, message = "wqk,wkc->wqc"}> : () -> ()
    %cst_19 = arith.constant dense<0.000000e+00> : vector<16x16x16xf32>
    %60 = tpu.matmul %59, %26, %cst_19 {dimension_numbers = #tpu.dot_dimension_numbers<[2], [1], [1], [2], [0, 0, 0, 1, 1, 2], [0], [0]>} : vector<16x16x16xbf16>, vector<16x16x16xbf16>, vector<16x16x16xf32> -> vector<16x16x16xf32>
    "tpu.trace_stop"() : () -> ()
    %c0_20 = arith.constant 0 : index
    %61 = memref.load %arg5[%c0_20] : memref<1xf32, #tpu.memory_space<smem>>
    %62 = vector.shape_cast %1 : vector<256x16xf32> to vector<16x16x16xf32>
    %63 = vector.broadcast %61 : f32 to vector<16x16xf32>
    %64 = arith.mulf %63, %55 : vector<16x16xf32>
    %65 = vector.shape_cast %64 : vector<16x16xf32> to vector<16x16x1xf32>
    %66 = vector.broadcast %65 : vector<16x16x1xf32> to vector<16x16x16xf32>
    %67 = arith.mulf %66, %58 : vector<16x16x16xf32>
    %68 = arith.addf %67, %62 : vector<16x16x16xf32>
    %69 = vector.broadcast %61 : f32 to vector<16x16xf32>
    %70 = arith.mulf %69, %56 : vector<16x16xf32>
    %71 = vector.shape_cast %70 : vector<16x16xf32> to vector<16x16x1xf32>
    %72 = vector.broadcast %71 : vector<16x16x1xf32> to vector<16x16x16xf32>
    %73 = arith.mulf %72, %60 : vector<16x16x16xf32>
    %74 = vector.shape_cast %68 : vector<16x16x16xf32> to vector<256x16xf32>
    %c0_21 = arith.constant 0 : index
    %c0_22 = arith.constant 0 : index
    %c0_23 = arith.constant 0 : index
    %75 = vector.load %arg6[%c0_21, %c0_22, %c0_23] : memref<1x256x16xf32, #tpu.memory_space<vmem>>, vector<1x256x16xf32>
    %76 = vector.shape_cast %75 : vector<1x256x16xf32> to vector<256x16xf32>
    %77 = vector.shape_cast %74 : vector<256x16xf32> to vector<1x256x16xf32>
    tpu.vector_store %arg6[%c0_21, %c0_22, %c0_23], %77 {strides = array<i32>} : memref<1x256x16xf32, #tpu.memory_space<vmem>>, vector<1x256x16xf32>,
    %78 = vector.shape_cast %73 : vector<16x16x16xf32> to vector<256x16xf32>
    %c0_24 = arith.constant 0 : index
    %c0_25 = arith.constant 0 : index
    %c0_26 = arith.constant 0 : index
    %79 = vector.load %arg7[%c0_24, %c0_25, %c0_26] : memref<1x256x16xf32, #tpu.memory_space<vmem>>, vector<1x256x16xf32>
    %80 = vector.shape_cast %79 : vector<1x256x16xf32> to vector<256x16xf32>
    %81 = vector.shape_cast %78 : vector<256x16xf32> to vector<1x256x16xf32>
    tpu.vector_store %arg7[%c0_24, %c0_25, %c0_26], %81 {strides = array<i32>} : memref<1x256x16xf32, #tpu.memory_space<vmem>>, vector<1x256x16xf32>,
    return
  }
  func.func @transform_0(%arg0: i32) -> (i32, i32, i32) {
    %c0_i32 = arith.constant 0 : i32
    %c0_i32_0 = arith.constant 0 : i32
    %c0_i32_1 = arith.constant 0 : i32
    return %arg0, %c0_i32, %c0_i32_0 : i32, i32, i32
  }
  func.func @transform_1(%arg0: i32) -> (i32, i32, i32) {
    %c0_i32 = arith.constant 0 : i32
    %c0_i32_0 = arith.constant 0 : i32
    %c0_i32_1 = arith.constant 0 : i32
    return %arg0, %c0_i32, %c0_i32_0 : i32, i32, i32
  }
  func.func @transform_2(%arg0: i32) -> (i32, i32) {
    %c0_i32 = arith.constant 0 : i32
    %c0_i32_0 = arith.constant 0 : i32
    %c0_i32_1 = arith.constant 0 : i32
    return %c0_i32, %c0_i32_0 : i32, i32
  }
  func.func @transform_3(%arg0: i32) -> (i32, i32) {
    %c0_i32 = arith.constant 0 : i32
    %c0_i32_0 = arith.constant 0 : i32
    %c0_i32_1 = arith.constant 0 : i32
    return %c0_i32, %c0_i32_0 : i32, i32
  }
  func.func @transform_4(%arg0: i32) -> i32 {
    %c0_i32 = arith.constant 0 : i32
    %c0_i32_0 = arith.constant 0 : i32
    return %c0_i32 : i32
  }
  func.func @transform_5(%arg0: i32) -> (i32, i32, i32) {
    %c0_i32 = arith.constant 0 : i32
    %c0_i32_0 = arith.constant 0 : i32
    %c0_i32_1 = arith.constant 0 : i32
    return %arg0, %c0_i32, %c0_i32_0 : i32, i32, i32
  }
  func.func @transform_6(%arg0: i32) -> (i32, i32, i32) {
    %c0_i32 = arith.constant 0 : i32
    %c0_i32_0 = arith.constant 0 : i32
    %c0_i32_1 = arith.constant 0 : i32
    return %arg0, %c0_i32, %c0_i32_0 : i32, i32, i32
  }
}

</mosaic_0001>

<bundles_post_ra>
// kernel: tpu_custom_call.1
= control target key start
LH: loop header
LB: loop body
LE: loop exit
PB: predicated region body
PF: predicated region fallthrough
CT: control target
= control target key end

     0   :  { %s5849_s23 = smov 0   ;;  %s8081_s0 = inlined_call_operand.vmem [shape: f32[2,256,16], index: 0, kind: input, shape index: {}]   ;;  %s8082_s1 = inlined_call_operand.vmem [shape: bf16[2,256,16], index: 1, kind: input, shape index: {}]   ;;  %s8083_s2 = inlined_call_operand.vmem [shape: bf16[16,20], index: 2, kind: input, shape index: {}]   ;;  %s8084_s3 = inlined_call_operand.vmem [shape: f32[1,20], index: 3, kind: input, shape index: {}]   ;;  %s8085_s4 = inlined_call_operand.<no memory space> [shape: f32[1], index: 4, kind: input, shape index: {}]   ;;  %s8086_s5 = inlined_call_operand.vmem [shape: f32[2,256,16], index: 5, kind: output, shape index: {0}]   ;;  %s8087_s6 = inlined_call_operand.vmem [shape: f32[2,256,16], index: 6, kind: output, shape index: {1}]  }
   0x1   :  { %12 = sst [smem:[#allocation2]] %s8085_s4 }
   0x2 LB: > { %s5309_s24 = sadd.s32 4294967295, %s5805_s23   ;;  %p5313_p0 = scmp.ge.s32.totalorder %s5805_s23, 1  ;;  %s5805_s23 = sphi %s5849_s23, %s18_s23  }
   0x3   : > { %p226_p1 = scmp.lt.s32.totalorder %s5805_s23, 3 }
   0x5   : > { %p227_p2 = pnand %p5313_p0, %p226_p1 }
   0x7   : > { %230 = sbr.rel (%p227_p2) target bundleno = 3025 (0xbd1), region = 40 }
   0xc   : > { %v5508_v0 = vld [vmem:[%s8083_s2] sm:$0xff]  ;;  %p266_p3 = scmp.lt.s32.totalorder %s5309_s24, 1  ;;  %vm379_vm0 = vcmask 130048   ;;  %s5807_s12 = smov 126   ;;  %vm805_vm1 = vcmask 15360   ;;  %vm1899_vm4 = vcmask 130112  }
   0xd   : > { %435 = vmatpush.bf16.msra.mxu0 %v5508_v0  ;;  %652 = vmatpush.bf16.msra.mxu1 %v5508_v0  ;;  %v5919_v38 = vld [vmem:[%s8084_s3] ss:$0 sm:$0xff]  ;;  %s5808_s13 = smov 124   ;;  %vm1946_vm5 = vcmask 1041409   ;;  %vm1948_vm6 = vcmask 1042434   ;;  %vm1950_vm7 = vcmask 1043459  }
   0xe   : > { %s8315_s24 = smov (!%p266_p3, %s5309_s24), 1  ;;  %vm1952_vm8 = vcmask 1044484   ;;  %vm1954_vm9 = vcmask 1045509   ;;  %vm1956_vm10 = vcmask 1046534   ;;  %vm1958_vm11 = vcmask 1047559   ;;  %s4645_s14 = sld [smem:[#allocation2]] }
   0xf   : > { %s5860_s4 = sshll.u32 %s8315_s24, 8  ;;  %s5489_s27 = sshll.u32 %s8315_s24, 7 }
  0x10   : > { %s5866_s30 = scalar_lea.vmem %s8081_s0, %s5860_s4  ;;  %s5871_s9 = scalar_lea.vmem %s8082_s1, %s5489_s27 }
  0x11   : > { %v287_v1 = vld [vmem:[%s5866_s30] sm:$0xff]  ;;  %v288_v2 = vld [vmem:[%s5866_s30 + $0x8] sm:$0xff]  ;;  %v289_v5 = vld [vmem:[%s5866_s30 + $0x10] sm:$0xff]  ;;  %s7758_s17 = scalar_lea.vmem %s8086_s5, %s5860_s4  ;;  %s8005_s20 = scalar_lea.vmem %s8087_s6, %s5860_s4 }
  0x12   : > { %v5492_v3 = vld [vmem:[%s5871_s9] sm:$0xff]  ;;  %v354_v4 = vpack.c.bf16 %v288_v2, %v287_v1  ;;  %v290_v6 = vld [vmem:[%s5866_s30 + $0x18] sm:$0xff]  ;;  %v5493_v7 = vld [vmem:[%s5871_s9 + $0x8] sm:$0xff] }
  0x13   : > { %5406 = vmatmul.msk.bf16.vlgmr.msra.gmra.mxu1 %vm379_vm0, %v5492_v3  ;;  %v355_v8 = vpack.c.bf16 %v290_v6, %v289_v5  ;;  %v291_v9 = vld [vmem:[%s5866_s30 + $0x20] sm:$0xff]  ;;  %v292_v10 = vld [vmem:[%s5866_s30 + $0x28] sm:$0xff]  ;;  %v5494_v11 = vld [vmem:[%s5871_s9 + $0x10] sm:$0xff] }
  0x14   : > { %5326 = vmatmul.msk.bf16.vlgmr.msra.gmra.mxu0 %vm379_vm0, %v354_v4  ;;  %v356_v12 = vpack.c.bf16 %v292_v10, %v291_v9  ;;  %v293_v13 = vld [vmem:[%s5866_s30 + $0x30] sm:$0xff]  ;;  %v294_v14 = vld [vmem:[%s5866_s30 + $0x38] sm:$0xff]  ;;  %v295_v17 = vld [vmem:[%s5866_s30 + $0x40] sm:$0xff] }
  0x15   : > { %v5495_v15 = vld [vmem:[%s5871_s9 + $0x18] sm:$0xff]  ;;  %v357_v16 = vpack.c.bf16 %v294_v14, %v293_v13  ;;  %v296_v18 = vld [vmem:[%s5866_s30 + $0x48] sm:$0xff]  ;;  %v5496_v19 = vld [vmem:[%s5871_s9 + $0x20] sm:$0xff] }
  0x16   : > { %v358_v20 = vpack.c.bf16 %v296_v18, %v295_v17  ;;  %v297_v21 = vld [vmem:[%s5866_s30 + $0x50] sm:$0xff]  ;;  %v298_v22 = vld [vmem:[%s5866_s30 + $0x58] sm:$0xff]  ;;  %v5497_v23 = vld [vmem:[%s5871_s9 + $0x28] sm:$0xff] }
  0x17   : > { %v359_v24 = vpack.c.bf16 %v298_v22, %v297_v21  ;;  %v299_v25 = vld [vmem:[%s5866_s30 + $0x60] sm:$0xff]  ;;  %v300_v26 = vld [vmem:[%s5866_s30 + $0x68] sm:$0xff]  ;;  %v5498_v27 = vld [vmem:[%s5871_s9 + $0x30] sm:$0xff] }
  0x18   : > { %v360_v28 = vpack.c.bf16 %v300_v26, %v299_v25  ;;  %v301_v29 = vld [vmem:[%s5866_s30 + $0x70] sm:$0xff]  ;;  %v302_v30 = vld [vmem:[%s5866_s30 + $0x78] sm:$0xff]  ;;  %v303_v33 = vld [vmem:[%s5866_s30 + $0x80] sm:$0xff] }
  0x19   : > { %v5499_v31 = vld [vmem:[%s5871_s9 + $0x38] sm:$0xff]  ;;  %v361_v32 = vpack.c.bf16 %v302_v30, %v301_v29  ;;  %v304_v34 = vld [vmem:[%s5866_s30 + $0x88] sm:$0xff]  ;;  %v5500_v35 = vld [vmem:[%s5871_s9 + $0x40] sm:$0xff] }
  0x1a   : > { %v362_v37 = vpack.c.bf16 %v304_v34, %v303_v33  ;;  %v305_v53 = vld [vmem:[%s5866_s30 + $0x90] sm:$0xff]  ;;  %v306_v54 = vld [vmem:[%s5866_s30 + $0x98] sm:$0xff]  ;;  %v5501_v57 = vld [vmem:[%s5871_s9 + $0x48] sm:$0xff] }
  0x1b   : > { %v363_v60 = vpack.c.bf16 %v306_v54, %v305_v53  ;;  %v309_v33 = vld [vmem:[%s5866_s30 + $0xb0] sm:$0xff]  ;;  %v310_v34 = vld [vmem:[%s5866_s30 + $0xb8] sm:$0xff] }
  0x23   : > { %5407 = vmatmul.msk.bf16.gmra.mxu1 %vm379_vm0, %v5493_v7 }
  0x24   : > { %5327 = vmatmul.msk.bf16.gmra.mxu0 %vm379_vm0, %v355_v8 }
  0x33   : > { %5408 = vmatmul.msk.bf16.gmra.mxu1 %vm379_vm0, %v5494_v11  ;;  %v307_v11 = vld [vmem:[%s5866_s30 + $0xa0] sm:$0xff] }
  0x34   : > { %5328 = vmatmul.msk.bf16.gmra.mxu0 %vm379_vm0, %v356_v12  ;;  %v308_v12 = vld [vmem:[%s5866_s30 + $0xa8] sm:$0xff] }
  0x35   : > { %v364_v18 = vpack.c.bf16 %v308_v12, %v307_v11 }
  0x43   : > { %5409 = vmatmul.msk.bf16.gmra.mxu1 %vm379_vm0, %v5495_v15  ;;  %v5502_v15 = vld [vmem:[%s5871_s9 + $0x50] sm:$0xff] }
  0x44   : > { %5329 = vmatmul.msk.bf16.gmra.mxu0 %vm379_vm0, %v357_v16 }
  0x53   : > { %5410 = vmatmul.msk.bf16.gmra.mxu1 %vm379_vm0, %v5496_v19 }
  0x54   : > { %5330 = vmatmul.msk.bf16.gmra.mxu0 %vm379_vm0, %v358_v20 }
  0x63   : > { %5411 = vmatmul.msk.bf16.gmra.mxu1 %vm379_vm0, %v5497_v23 }
  0x64   : > { %5331 = vmatmul.msk.bf16.gmra.mxu0 %vm379_vm0, %v359_v24 }
  0x73   : > { %5412 = vmatmul.msk.bf16.gmra.mxu1 %vm379_vm0, %v5498_v27 }
  0x74   : > { %5332 = vmatmul.msk.bf16.gmra.mxu0 %vm379_vm0, %v360_v28 }
  0x83   : > { %5413 = vmatmul.msk.bf16.gmra.mxu1 %vm379_vm0, %v5499_v31 }
  0x84   : > { %5333 = vmatmul.msk.bf16.gmra.mxu0 %vm379_vm0, %v361_v32 }
  0x90   : > { %v654_v36 = vpop.f32.mrf.mxu1 }
  0x91   : > { %v437_v39 = vpop.f32.mrf.mxu0  ;;  %v655_v41 = vadd.f32 %v5919_v38, %v654_v36 }
  0x92   : > { %v438_v40 = vadd.f32 %v5919_v38, %v437_v39 }
  0x93   : > { %5414 = vmatmul.msk.bf16.gmra.mxu1 %vm379_vm0, %v5500_v35  ;;  %v766_v44 = vpack.c.bf16 %v655_v41, %v655_v41  ;;  %v365_v41 = vpack.c.bf16 %v310_v34, %v309_v33 }
  0x94   : > { %5334 = vmatmul.msk.bf16.gmra.mxu0 %vm379_vm0, %v362_v37  ;;  %v734_v42 = vpack.c.bf16 %v438_v40, %v438_v40  ;;  %v5503_v37 = vld [vmem:[%s5871_s9 + $0x58] sm:$0xff] }
  0x95   : > { %v1242_v51 = vunpack.c.l.b16 %v766_v44 }
  0x96   : > { %v800_v49 = vunpack.c.l.b16 %v734_v42 }
  0x98   : > { %v656_v43 = vpop.f32.mrf.mxu1 }
  0x99   : > { %v439_v45 = vpop.f32.mrf.mxu0  ;;  %v657_v46 = vadd.f32 %v5919_v38, %v656_v43 }
  0x9a   : > { %v440_v47 = vadd.f32 %v5919_v38, %v439_v45 }
  0x9b   : > { %v767_v48 = vpack.c.bf16 %v657_v46, %v657_v46 }
  0x9c   : > { %v735_v50 = vpack.c.bf16 %v440_v47, %v440_v47 }
  0x9d   : > { %v1243_v52 = vunpack.c.l.b16 %v767_v48 }
  0x9e   : > { %v801_v55 = vunpack.c.l.b16 %v735_v50 }
  0x9f   : > { %v5929_v56 = vpack.c.b16 %v1243_v52, %v1242_v51  ;;  %v311_v51 = vld [vmem:[%s5866_s30 + $0xc0] sm:$0xff]  ;;  %v312_v52 = vld [vmem:[%s5866_s30 + $0xc8] sm:$0xff] }
  0xa0   : > { %v659_v58 = vpop.f32.mrf.mxu1  ;;  %v5932_v59 = vpack.c.b16 %v801_v55, %v800_v49  ;;  %v5504_v55 = vld [vmem:[%s5871_s9 + $0x60] sm:$0xff] }
  0xa1   : > { %v442_v61 = vpop.f32.mrf.mxu0  ;;  %1245 = vrot.lane.b32.xlu1 %v5929_v56, %s5807_s12  ;;  %v660_v63 = vadd.f32 %v5919_v38, %v659_v58 }
  0xa2   : > { %803 = vrot.lane.b32.xlu0 %v5932_v59, %s5807_s12  ;;  %v443_v62 = vadd.f32 %v5919_v38, %v442_v61  ;;  %v366_v61 = vpack.c.bf16 %v312_v52, %v311_v51 }
  0xa3   : > { %5415 = vmatmul.msk.bf16.gmra.mxu1 %vm379_vm0, %v5501_v57  ;;  %v768_v2 = vpack.c.bf16 %v660_v63, %v660_v63 }
  0xa4   : > { %5335 = vmatmul.msk.bf16.gmra.mxu0 %vm379_vm0, %v363_v60  ;;  %v736_v0 = vpack.c.bf16 %v443_v62, %v443_v62 }
  0xa5   : > { %v1269_v9 = vunpack.c.l.b16 %v768_v2 }
  0xa6   : > { %v828_v7 = vunpack.c.l.b16 %v736_v0 }
  0xa8   : > { %v661_v1 = vpop.f32.mrf.mxu1 }
  0xa9   : > { %v444_v3 = vpop.f32.mrf.mxu0  ;;  %v662_v4 = vadd.f32 %v5919_v38, %v661_v1  ;;  %3818 = vrot.lane.b32.xlu1 %v5932_v59, %s5808_s13 }
  0xaa   : > { %v445_v5 = vadd.f32 %v5919_v38, %v444_v3  ;;  %4250 = vrot.lane.b32.xlu0 %v5929_v56, %s5808_s13 }
  0xab   : > { %v769_v6 = vpack.c.bf16 %v662_v4, %v662_v4 }
  0xac   : > { %v737_v8 = vpack.c.bf16 %v445_v5, %v445_v5 }
  0xad   : > { %v1270_v10 = vunpack.c.l.b16 %v769_v6 }
  0xae   : > { %v829_v13 = vunpack.c.l.b16 %v737_v8 }
  0xaf   : > { %v5950_v14 = vpack.c.b16 %v1270_v10, %v1269_v9 }
  0xb0   : > { %v664_v16 = vpop.f32.mrf.mxu1  ;;  %v5953_v17 = vpack.c.b16 %v829_v13, %v828_v7 }
  0xb1   : > { %v447_v19 = vpop.f32.mrf.mxu0  ;;  %1272 = vrot.lane.b32.xlu2 %v5950_v14, %s5807_s12  ;;  %4275 = vrot.lane.b32.xlu1 %v5950_v14, %s5808_s13  ;;  %v665_v21 = vadd.f32 %v5919_v38, %v664_v16 }
  0xb2   : > { %831 = vrot.lane.b32.xlu0 %v5953_v17, %s5807_s12  ;;  %v448_v20 = vadd.f32 %v5919_v38, %v447_v19  ;;  %v314_v19 = vld [vmem:[%s5866_s30 + $0xd8] sm:$0xff] }
  0xb3   : > { %5416 = vmatmul.msk.bf16.gmra.mxu1 %vm379_vm0, %v5502_v15  ;;  %v770_v24 = vpack.c.bf16 %v665_v21, %v665_v21 }
  0xb4   : > { %5336 = vmatmul.msk.bf16.gmra.mxu0 %vm379_vm0, %v364_v18  ;;  %v738_v22 = vpack.c.bf16 %v448_v20, %v448_v20  ;;  %v313_v18 = vld [vmem:[%s5866_s30 + $0xd0] sm:$0xff] }
  0xb5   : > { %v1296_v31 = vunpack.c.l.b16 %v770_v24 }
  0xb6   : > { %v855_v29 = vunpack.c.l.b16 %v738_v22  ;;  %v5505_v22 = vld [vmem:[%s5871_s9 + $0x68] sm:$0xff] }
  0xb8   : > { %v666_v23 = vpop.f32.mrf.mxu1 }
  0xb9   : > { %v449_v25 = vpop.f32.mrf.mxu0  ;;  %v667_v26 = vadd.f32 %v5919_v38, %v666_v23 }
  0xba   : > { %v450_v27 = vadd.f32 %v5919_v38, %v449_v25  ;;  %3843 = vrot.lane.b32.xlu0 %v5953_v17, %s5808_s13  ;;  %v367_v25 = vpack.c.bf16 %v314_v19, %v313_v18 }
  0xbb   : > { %v771_v28 = vpack.c.bf16 %v667_v26, %v667_v26 }
  0xbc   : > { %v739_v30 = vpack.c.bf16 %v450_v27, %v450_v27 }
  0xbd   : > { %v1297_v32 = vunpack.c.l.b16 %v771_v28 }
  0xbe   : > { %v856_v35 = vunpack.c.l.b16 %v739_v30 }
  0xbf   : > { %v5971_v36 = vpack.c.b16 %v1297_v32, %v1296_v31 }
  0xc0   : > { %v669_v39 = vpop.f32.mrf.mxu1  ;;  %v5974_v40 = vpack.c.b16 %v856_v35, %v855_v29 }
  0xc1   : > { %v452_v42 = vpop.f32.mrf.mxu0  ;;  %v670_v53 = vadd.f32 %v5919_v38, %v669_v39 }
  0xc2   : > { %858 = vrot.lane.b32.xlu1 %v5974_v40, %s5807_s12  ;;  %1299 = vrot.lane.b32.xlu0 %v5971_v36, %s5807_s12  ;;  %v453_v43 = vadd.f32 %v5919_v38, %v452_v42 }
  0xc3   : > { %5417 = vmatmul.msk.bf16.gmra.mxu1 %vm379_vm0, %v5503_v37  ;;  %v772_v63 = vpack.c.bf16 %v670_v53, %v670_v53 }
  0xc4   : > { %5337 = vmatmul.msk.bf16.gmra.mxu0 %vm379_vm0, %v365_v41  ;;  %v740_v44 = vpack.c.bf16 %v453_v43, %v453_v43  ;;  %v315_v43 = vld [vmem:[%s5866_s30 + $0xe0] sm:$0xff] }
  0xc5   : > { %v1323_v3 = vunpack.c.l.b16 %v772_v63 }
  0xc6   : > { %v882_v48 = vunpack.c.l.b16 %v740_v44  ;;  %v316_v44 = vld [vmem:[%s5866_s30 + $0xe8] sm:$0xff] }
  0xc8   : > { %v671_v45 = vpop.f32.mrf.mxu1 }
  0xc9   : > { %v454_v46 = vpop.f32.mrf.mxu0  ;;  %v672_v50 = vadd.f32 %v5919_v38, %v671_v45 }
  0xca   : > { %v455_v47 = vadd.f32 %v5919_v38, %v454_v46  ;;  %3868 = vrot.lane.b32.xlu1 %v5974_v40, %s5808_s13  ;;  %4300 = vrot.lane.b32.xlu0 %v5971_v36, %s5808_s13 }
  0xcb   : > { %v773_v57 = vpack.c.bf16 %v672_v50, %v672_v50  ;;  %v368_v50 = vpack.c.bf16 %v316_v44, %v315_v43 }
  0xcc   : > { %v741_v49 = vpack.c.bf16 %v455_v47, %v455_v47  ;;  %v5506_v47 = vld [vmem:[%s5871_s9 + $0x70] sm:$0xff] }
  0xcd   : > { %v1324_v0 = vunpack.c.l.b16 %v773_v57 }
  0xce   : > { %v883_v54 = vunpack.c.l.b16 %v741_v49 }
  0xcf   : > { %v6003_v6 = vpack.c.b16 %v1324_v0, %v1323_v3 }
  0xd0   : > { %v674_v58 = vpop.f32.mrf.mxu1  ;;  %v5993_v60 = vpack.c.b16 %v883_v54, %v882_v48 }
  0xd1   : > { %v457_v62 = vpop.f32.mrf.mxu0  ;;  %v675_v2 = vadd.f32 %v5919_v38, %v674_v58 }
  0xd2   : > { %885 = vrot.lane.b32.xlu1 %v5993_v60, %s5807_s12  ;;  %3893 = vrot.lane.b32.xlu0 %v5993_v60, %s5808_s13  ;;  %v458_v1 = vadd.f32 %v5919_v38, %v457_v62 }
  0xd3   : > { %5418 = vmatmul.msk.bf16.gmra.mxu1 %vm379_vm0, %v5504_v55  ;;  %v774_v7 = vpack.c.bf16 %v675_v2, %v675_v2 }
  0xd4   : > { %5338 = vmatmul.msk.bf16.gmra.mxu0 %vm379_vm0, %v366_v61  ;;  %v742_v4 = vpack.c.bf16 %v458_v1, %v458_v1 }
  0xd5   : > { %v1350_v15 = vunpack.c.l.b16 %v774_v7 }
  0xd6   : > { %v909_v12 = vunpack.c.l.b16 %v742_v4  ;;  %v317_v4 = vld [vmem:[%s5866_s30 + $0xf0] sm:$0xff] }
  0xd8   : > { %v676_v5 = vpop.f32.mrf.mxu1 }
  0xd9   : > { %v459_v8 = vpop.f32.mrf.mxu0  ;;  %v677_v9 = vadd.f32 %v5919_v38, %v676_v5  ;;  %v318_v5 = vld [vmem:[%s5866_s30 + $0xf8] sm:$0xff] }
  0xda   : > { %v460_v10 = vadd.f32 %v5919_v38, %v459_v8  ;;  %1326 = vrot.lane.b32.xlu1 %v6003_v6, %s5807_s12 }
  0xdb   : > { %v775_v11 = vpack.c.bf16 %v677_v9, %v677_v9  ;;  %v5507_v9 = vld [vmem:[%s5871_s9 + $0x78] sm:$0xff] }
  0xdc   : > { %v743_v13 = vpack.c.bf16 %v460_v10, %v460_v10 }
  0xdd   : > { %v1351_v16 = vunpack.c.l.b16 %v775_v11 }
  0xde   : > { %v910_v20 = vunpack.c.l.b16 %v743_v13 }
  0xdf   : > { %v6011_v21 = vpack.c.b16 %v1351_v16, %v1350_v15 }
  0xe0   : > { %v679_v23 = vpop.f32.mrf.mxu1  ;;  %v6014_v24 = vpack.c.b16 %v910_v20, %v909_v12  ;;  %v369_v12 = vpack.c.bf16 %v318_v5, %v317_v4 }
  0xe1   : > { %v462_v26 = vpop.f32.mrf.mxu0  ;;  %4350 = vrot.lane.b32.xlu0 %v6011_v21, %s5808_s13  ;;  %v680_v28 = vadd.f32 %v5919_v38, %v679_v23 }
  0xe2   : > { %912 = vrot.lane.b32.xlu2 %v6014_v24, %s5807_s12  ;;  %4325 = vrot.lane.b32.xlu1 %v6003_v6, %s5808_s13  ;;  %v463_v27 = vadd.f32 %v5919_v38, %v462_v26 }
  0xe3   : > { %5419 = vmatmul.msk.bf16.gmra.mxu1 %vm379_vm0, %v5505_v22  ;;  %v776_v31 = vpack.c.bf16 %v680_v28, %v680_v28 }
  0xe4   : > { %5339 = vmatmul.msk.bf16.gmra.mxu0 %vm379_vm0, %v367_v25  ;;  %v744_v29 = vpack.c.bf16 %v463_v27, %v463_v27 }
  0xe5   : > { %v1377_v41 = vunpack.c.l.b16 %v776_v31 }
  0xe6   : > { %v936_v37 = vunpack.c.l.b16 %v744_v29 }
  0xe8   : > { %v681_v30 = vpop.f32.mrf.mxu1 }
  0xe9   : > { %v464_v32 = vpop.f32.mrf.mxu0  ;;  %v682_v33 = vadd.f32 %v5919_v38, %v681_v30 }
  0xea   : > { %v465_v34 = vadd.f32 %v5919_v38, %v464_v32  ;;  %1353 = vrot.lane.b32.xlu2 %v6011_v21, %s5807_s12  ;;  %3918 = vrot.lane.b32.xlu1 %v6014_v24, %s5808_s13 }
  0xeb   : > { %v777_v35 = vpack.c.bf16 %v682_v33, %v682_v33 }
  0xec   : > { %v745_v39 = vpack.c.bf16 %v465_v34, %v465_v34 }
  0xed   : > { %v1378_v42 = vunpack.c.l.b16 %v777_v35 }
  0xee   : > { %v937_v45 = vunpack.c.l.b16 %v745_v39 }
  0xef   : > { %v6034_v46 = vpack.c.b16 %v1378_v42, %v1377_v41 }
  0xf0   : > { %v684_v48 = vpop.f32.mrf.mxu1  ;;  %v6037_v49 = vpack.c.b16 %v937_v45, %v936_v37 }
  0xf1   : > { %v467_v51 = vpop.f32.mrf.mxu0  ;;  %1380 = vrot.lane.b32.xlu0 %v6034_v46, %s5807_s12  ;;  %v685_v53 = vadd.f32 %v5919_v38, %v684_v48 }
  0xf2   : > { %939 = vrot.lane.b32.xlu2 %v6037_v49, %s5807_s12  ;;  %4375 = vrot.lane.b32.xlu1 %v6034_v46, %s5808_s13  ;;  %v468_v52 = vadd.f32 %v5919_v38, %v467_v51 }
  0xf3   : > { %5420 = vmatmul.msk.bf16.gmra.mxu1 %vm379_vm0, %v5506_v47  ;;  %v778_v57 = vpack.c.bf16 %v685_v53, %v685_v53 }
  0xf4   : > { %5340 = vmatmul.msk.bf16.gmra.mxu0 %vm379_vm0, %v368_v50  ;;  %v746_v54 = vpack.c.bf16 %v468_v52, %v468_v52 }
  0xf5   : > { %v1404_v2 = vunpack.c.l.b16 %v778_v57 }
  0xf6   : > { %v963_v0 = vunpack.c.l.b16 %v746_v54 }
  0xf8   : > { %v686_v55 = vpop.f32.mrf.mxu1 }
  0xf9   : > { %v469_v58 = vpop.f32.mrf.mxu0  ;;  %v687_v61 = vadd.f32 %v5919_v38, %v686_v55  ;;  %3943 = vrot.lane.b32.xlu0 %v6037_v49, %s5808_s13 }
  0xfa   : > { %v470_v62 = vadd.f32 %v5919_v38, %v469_v58 }
  0xfb   : > { %v779_v63 = vpack.c.bf16 %v687_v61, %v687_v61 }
  0xfc   : > { %v747_v1 = vpack.c.bf16 %v470_v62, %v470_v62 }
  0xfd   : > { %v1405_v3 = vunpack.c.l.b16 %v779_v63 }
  0xfe   : > { %v964_v7 = vunpack.c.l.b16 %v747_v1 }
  0xff   : > { %v6055_v8 = vpack.c.b16 %v1405_v3, %v1404_v2 }
 0x100   : > { %v689_v10 = vpop.f32.mrf.mxu1  ;;  %v6058_v11 = vpack.c.b16 %v964_v7, %v963_v0 }
 0x101   : > { %v472_v13 = vpop.f32.mrf.mxu0  ;;  %1407 = vrot.lane.b32.xlu1 %v6055_v8, %s5807_s12  ;;  %v690_v16 = vadd.f32 %v5919_v38, %v689_v10 }
 0x102   : > { %966 = vrot.lane.b32.xlu0 %v6058_v11, %s5807_s12  ;;  %v473_v15 = vadd.f32 %v5919_v38, %v472_v13 }
 0x103   : > { %5421 = vmatmul.msk.bf16.gmra.mxu1 %vm379_vm0, %v5507_v9  ;;  %v780_v20 = vpack.c.bf16 %v690_v16, %v690_v16 }
 0x104   : > { %5341 = vmatmul.msk.bf16.gmra.mxu0 %vm379_vm0, %v369_v12  ;;  %v748_v18 = vpack.c.bf16 %v473_v15, %v473_v15 }
 0x105   : > { %v1431_v29 = vunpack.c.l.b16 %v780_v20 }
 0x106   : > { %v990_v27 = vunpack.c.l.b16 %v748_v18 }
 0x108   : > { %v691_v19 = vpop.f32.mrf.mxu1 }
 0x109   : > { %v474_v22 = vpop.f32.mrf.mxu0  ;;  %v692_v23 = vadd.f32 %v5919_v38, %v691_v19  ;;  %3968 = vrot.lane.b32.xlu1 %v6058_v11, %s5808_s13 }
 0x10a   : > { %v475_v25 = vadd.f32 %v5919_v38, %v474_v22  ;;  %4400 = vrot.lane.b32.xlu0 %v6055_v8, %s5808_s13 }
 0x10b   : > { %v781_v26 = vpack.c.bf16 %v692_v23, %v692_v23 }
 0x10c   : > { %v749_v28 = vpack.c.bf16 %v475_v25, %v475_v25 }
 0x10d   : > { %v1432_v30 = vunpack.c.l.b16 %v781_v26 }
 0x10e   : > { %v991_v31 = vunpack.c.l.b16 %v749_v28 }
 0x10f   : > { %v6074_v32 = vpack.c.b16 %v1432_v30, %v1431_v29 }
 0x110   : > { %v694_v33 = vpop.f32.mrf.mxu1  ;;  %v6076_v34 = vpack.c.b16 %v991_v31, %v990_v27  ;;  %v6126_v31 = vpop.permute.xlu2 %1272 }
 0x111   : > { %v477_v35 = vpop.f32.mrf.mxu0  ;;  %1434 = vrot.lane.b32.xlu2 %v6074_v32, %s5807_s12  ;;  %v695_v42 = vadd.f32 %v5919_v38, %v694_v33 }
 0x112   : > { %993 = vrot.lane.b32.xlu1 %v6076_v34, %s5807_s12  ;;  %3993 = vrot.lane.b32.xlu0 %v6076_v34, %s5808_s13  ;;  %v478_v39 = vadd.f32 %v5919_v38, %v477_v35 }
 0x113   : > { %v6084_v37 = vpop.permute.xlu1 %1245  ;;  %v782_v47 = vpack.c.bf16 %v695_v42, %v695_v42 }
 0x114   : > { %v804_v41 = vpop.permute.xlu0 %803  ;;  %v750_v44 = vpack.c.bf16 %v478_v39, %v478_v39 }
 0x115   : > { %v810_v43 = vsel %vm805_vm1, %v804_v41, 0  ;;  %v1458_v58 = vunpack.c.l.b16 %v782_v47 }
 0x116   : > { %819 = vmatpush.bf16.xpose.msra.mxu2 %v810_v43  ;;  %v1017_v54 = vunpack.c.l.b16 %v750_v44 }
 0x118   : > { %v696_v45 = vpop.f32.mrf.mxu1 }
 0x119   : > { %v479_v48 = vpop.f32.mrf.mxu0  ;;  %v697_v50 = vadd.f32 %v5919_v38, %v696_v45 }
 0x11a   : > { %v480_v51 = vadd.f32 %v5919_v38, %v479_v48  ;;  %4425 = vrot.lane.b32.xlu1 %v6074_v32, %s5808_s13 }
 0x11b   : > { %v783_v52 = vpack.c.bf16 %v697_v50, %v697_v50  ;;  %v3819_v53 = vpop.permute.xlu1 %3818 }
 0x11c   : > { %v751_v55 = vpack.c.bf16 %v480_v51, %v480_v51  ;;  %v6093_v57 = vpop.permute.xlu0 %4250  ;;  %3831 = vmatpush.bf16.msrb.mxu0 %v3819_v53 }
 0x11d   : > { %8148 = vst [vmem:[#allocation3_spill] sm:$0xff] %v6093_v57  ;;  %v1459_v61 = vunpack.c.l.b16 %v783_v52  ;;  %5422 = vmatmul.msk.bf16.vlgmr.msra.gmra.mxu2 %vm805_vm1, %v5932_v59 }
 0x11e   : > { %v1018_v62 = vunpack.c.l.b16 %v751_v55 }
 0x11f   : > { %v6097_v63 = vpack.c.b16 %v1459_v61, %v1458_v58 }
 0x120   : > { %v699_v0 = vpop.f32.mrf.mxu1  ;;  %v6099_v1 = vpack.c.b16 %v1018_v62, %v1017_v54 }
 0x121   : > { %v482_v2 = vpop.f32.mrf.mxu0  ;;  %1461 = vrot.lane.b32.xlu0 %v6097_v63, %s5807_s12  ;;  %v700_v59 = vadd.f32 %v5919_v38, %v699_v0 }
 0x122   : > { %1020 = vrot.lane.b32.xlu2 %v6099_v1, %s5807_s12  ;;  %4018 = vrot.lane.b32.xlu1 %v6099_v1, %s5808_s13  ;;  %v483_v3 = vadd.f32 %v5919_v38, %v482_v2 }
 0x123   : > { %v784_v10 = vpack.c.bf16 %v700_v59, %v700_v59  ;;  %v6114_v19 = vpop.permute.xlu1 %4275 }
 0x124   : > { %v832_v4 = vpop.permute.xlu0 %831  ;;  %v752_v7 = vpack.c.bf16 %v483_v3, %v483_v3  ;;  %8149 = vst [vmem:[#allocation4_spill] sm:$0xff] %v6114_v19 }
 0x125   : > { %v837_v5 = vsel %vm805_vm1, %v832_v4, 0  ;;  %v1485_v23 = vunpack.c.l.b16 %v784_v10 }
 0x126   : > { %846 = vmatpush.bf16.xpose.msra.mxu3 %v837_v5  ;;  %v1044_v18 = vunpack.c.l.b16 %v752_v7 }
 0x128   : > { %v701_v9 = vpop.f32.mrf.mxu1 }
 0x129   : > { %v484_v12 = vpop.f32.mrf.mxu0  ;;  %v702_v13 = vadd.f32 %v5919_v38, %v701_v9  ;;  %4450 = vrot.lane.b32.xlu0 %v6097_v63, %s5808_s13 }
 0x12a   : > { %v485_v15 = vadd.f32 %v5919_v38, %v484_v12 }
 0x12b   : > { %v785_v16 = vpack.c.bf16 %v702_v13, %v702_v13 }
 0x12c   : > { %v753_v20 = vpack.c.bf16 %v485_v15, %v485_v15  ;;  %v3844_v22 = vpop.permute.xlu0 %3843 }
 0x12d   : > { %v1486_v25 = vunpack.c.l.b16 %v785_v16  ;;  %5423 = vmatmul.msk.bf16.vlgmr.msra.gmra.mxu3 %vm805_vm1, %v5953_v17  ;;  %3856 = vmatpush.bf16.msrb.mxu1 %v3844_v22 }
 0x12e   : > { %v1045_v26 = vunpack.c.l.b16 %v753_v20 }
 0x12f   : > { %v6118_v27 = vpack.c.b16 %v1486_v25, %v1485_v23 }
 0x130   : > { %v704_v28 = vpop.f32.mrf.mxu1  ;;  %v6120_v29 = vpack.c.b16 %v1045_v26, %v1044_v18 }
 0x131   : > { %v487_v30 = vpop.f32.mrf.mxu0  ;;  %1488 = vrot.lane.b32.xlu1 %v6118_v27, %s5807_s12  ;;  %v705_v17 = vadd.f32 %v5919_v38, %v704_v28 }
 0x132   : > { %1047 = vrot.lane.b32.xlu0 %v6120_v29, %s5807_s12  ;;  %v488_v33 = vadd.f32 %v5919_v38, %v487_v30 }
 0x133   : > { %v786_v43 = vpack.c.bf16 %v705_v17, %v705_v17 }
 0x134   : > { %v859_v35 = vpop.permute.xlu1 %858  ;;  %v754_v41 = vpack.c.bf16 %v488_v33, %v488_v33  ;;  %v6142_v62 = vpop.permute.xlu0 %1299 }
 0x135   : > { %v864_v39 = vsel %vm805_vm1, %v859_v35, 0  ;;  %v1512_v54 = vunpack.c.l.b16 %v786_v43 }
 0x136   : > { %873 = vmatpush.bf16.xpose.msrb.mxu2 %v864_v39  ;;  %v1071_v50 = vunpack.c.l.b16 %v754_v41 }
 0x138   : > { %v706_v42 = vpop.f32.mrf.mxu1 }
 0x139   : > { %v489_v44 = vpop.f32.mrf.mxu0  ;;  %v707_v45 = vadd.f32 %v5919_v38, %v706_v42  ;;  %4475 = vrot.lane.b32.xlu1 %v6118_v27, %s5808_s13 }
 0x13a   : > { %v490_v47 = vadd.f32 %v5919_v38, %v489_v44  ;;  %4043 = vrot.lane.b32.xlu0 %v6120_v29, %s5808_s13 }
 0x13b   : > { %v787_v48 = vpack.c.bf16 %v707_v45, %v707_v45 }
 0x13c   : > { %v755_v51 = vpack.c.bf16 %v490_v47, %v490_v47  ;;  %v913_v52 = vpop.permute.xlu2 %912  ;;  %v6137_v53 = vpop.permute.xlu1 %3868 }
 0x13d   : > { %v1513_v55 = vunpack.c.l.b16 %v787_v48  ;;  %v918_v58 = vsel %vm805_vm1, %v913_v52, 0  ;;  %5424 = vmatmul.msk.bf16.vlgmr.msrb.gmra.mxu2 %vm805_vm1, %v5974_v40  ;;  %v6159_v13 = vpop.permute.xlu0 %4300 }
 0x13e   : > { %v1072_v61 = vunpack.c.l.b16 %v755_v51  ;;  %927 = vmatpush.bf16.xpose.msra.mxu2 %v918_v58  ;;  %8150 = vst [vmem:[#allocation5_spill] sm:$0xff] %v6159_v13 }
 0x13f   : > { %v6144_v0 = vpack.c.b16 %v1513_v55, %v1512_v54 }
 0x140   : > { %v709_v2 = vpop.f32.mrf.mxu1  ;;  %v6146_v3 = vpack.c.b16 %v1072_v61, %v1071_v50 }
 0x141   : > { %v492_v4 = vpop.f32.mrf.mxu0  ;;  %1515 = vrot.lane.b32.xlu2 %v6144_v0, %s5807_s12  ;;  %v710_v7 = vadd.f32 %v5919_v38, %v709_v2 }
 0x142   : > { %1074 = vrot.lane.b32.xlu1 %v6146_v3, %s5807_s12  ;;  %4500 = vrot.lane.b32.xlu0 %v6144_v0, %s5808_s13  ;;  %v493_v40 = vadd.f32 %v5919_v38, %v492_v4 }
 0x143   : > { %v788_v15 = vpack.c.bf16 %v710_v7, %v710_v7 }
 0x144   : > { %v6155_v59 = vpop.permute.xlu2 %1353  ;;  %v886_v5 = vpop.permute.xlu1 %885  ;;  %v756_v10 = vpack.c.bf16 %v493_v40, %v493_v40 }
 0x145   : > { %v891_v9 = vsel %vm805_vm1, %v886_v5, 0  ;;  %v1539_v30 = vunpack.c.l.b16 %v788_v15 }
 0x146   : > { %900 = vmatpush.bf16.xpose.msrb.mxu3 %v891_v9  ;;  %v1098_v23 = vunpack.c.l.b16 %v756_v10 }
 0x148   : > { %v711_v12 = vpop.f32.mrf.mxu1 }
 0x149   : > { %v494_v16 = vpop.f32.mrf.mxu0  ;;  %v712_v18 = vadd.f32 %v5919_v38, %v711_v12 }
 0x14a   : > { %v495_v20 = vadd.f32 %v5919_v38, %v494_v16  ;;  %4068 = vrot.lane.b32.xlu1 %v6146_v3, %s5808_s13 }
 0x14b   : > { %v789_v22 = vpack.c.bf16 %v712_v18, %v712_v18 }
 0x14c   : > { %v757_v25 = vpack.c.bf16 %v495_v20, %v495_v20  ;;  %v940_v26 = vpop.permute.xlu2 %939  ;;  %v6165_v28 = vpop.permute.xlu1 %1326 }
 0x14d   : > { %v1540_v33 = vunpack.c.l.b16 %v789_v22  ;;  %v945_v35 = vsel %vm805_vm1, %v940_v26, 0  ;;  %5425 = vmatmul.msk.bf16.vlgmr.msrb.gmra.mxu3 %vm805_vm1, %v5993_v60  ;;  %5426 = vmatmul.msk.bf16.vlgmr.msra.gmra.mxu2 %vm805_vm1, %v6014_v24  ;;  %v6182_v60 = vpop.permute.xlu0 %3893 }
 0x14e   : > { %v1099_v17 = vunpack.c.l.b16 %v757_v25  ;;  %954 = vmatpush.bf16.xpose.msra.mxu3 %v945_v35 }
 0x14f   : > { %v6172_v39 = vpack.c.b16 %v1540_v33, %v1539_v30 }
 0x150   : > { %v714_v41 = vpop.f32.mrf.mxu1  ;;  %v6174_v42 = vpack.c.b16 %v1099_v17, %v1098_v23 }
 0x151   : > { %v497_v43 = vpop.f32.mrf.mxu0  ;;  %1542 = vrot.lane.b32.xlu0 %v6172_v39, %s5807_s12  ;;  %v715_v45 = vadd.f32 %v5919_v38, %v714_v41 }
 0x152   : > { %1101 = vrot.lane.b32.xlu2 %v6174_v42, %s5807_s12  ;;  %4525 = vrot.lane.b32.xlu1 %v6172_v39, %s5808_s13  ;;  %v498_v24 = vadd.f32 %v5919_v38, %v497_v43 }
 0x153   : > { %v790_v50 = vpack.c.bf16 %v715_v45, %v715_v45 }
 0x154   : > { %v6185_v44 = vpop.permute.xlu1 %4325  ;;  %v758_v47 = vpack.c.bf16 %v498_v24, %v498_v24 }
 0x155   : > { %8151 = vst [vmem:[#allocation6_spill] sm:$0xff] %v6185_v44  ;;  %v6192_v55 = vpop.permute.xlu0 %4350  ;;  %v1566_v40 = vunpack.c.l.b16 %v790_v50 }
 0x156   : > { %8152 = vst [vmem:[#allocation7_spill] sm:$0xff] %v6192_v55  ;;  %v1125_v61 = vunpack.c.l.b16 %v758_v47 }
 0x158   : > { %v716_v48 = vpop.f32.mrf.mxu1 }
 0x159   : > { %v499_v51 = vpop.f32.mrf.mxu0  ;;  %v717_v52 = vadd.f32 %v5919_v38, %v716_v48 }
 0x15a   : > { %v500_v54 = vadd.f32 %v5919_v38, %v499_v51  ;;  %4093 = vrot.lane.b32.xlu2 %v6174_v42, %s5808_s13 }
 0x15b   : > { %v791_v58 = vpack.c.bf16 %v717_v52, %v717_v52 }
 0x15c   : > { %v759_v2 = vpack.c.bf16 %v500_v54, %v500_v54  ;;  %v3919_v4 = vpop.permute.xlu1 %3918 }
 0x15d   : > { %v1567_v5 = vunpack.c.l.b16 %v791_v58  ;;  %5427 = vmatmul.msk.bf16.vlgmr.msra.gmra.mxu3 %vm805_vm1, %v6037_v49  ;;  %3931 = vmatpush.bf16.msra.mxu0 %v3919_v4 }
 0x15e   : > { %v1126_v7 = vunpack.c.l.b16 %v759_v2 }
 0x15f   : > { %v6196_v9 = vpack.c.b16 %v1567_v5, %v1566_v40 }
 0x160   : > { %v6198_v10 = vpack.c.b16 %v1126_v7, %v1125_v61  ;;  %v719_v12 = vpop.f32.mrf.mxu1 }
 0x161   : > { %v502_v15 = vpop.f32.mrf.mxu0  ;;  %1569 = vrot.lane.b32.xlu1 %v6196_v9, %s5807_s12  ;;  %v720_v49 = vadd.f32 %v5919_v38, %v719_v12 }
 0x162   : > { %1128 = vrot.lane.b32.xlu0 %v6198_v10, %s5807_s12  ;;  %v503_v18 = vadd.f32 %v5919_v38, %v502_v15 }
 0x163   : > { %v6204_v16 = vpop.permute.xlu0 %1380  ;;  %v792_v23 = vpack.c.bf16 %v720_v49, %v720_v49 }
 0x164   : > { %v760_v20 = vpack.c.bf16 %v503_v18, %v503_v18  ;;  %v6212_v33 = vpop.permute.xlu1 %4375 }
 0x165   : > { %8153 = vst [vmem:[#allocation8_spill] sm:$0xff] %v6212_v33  ;;  %v1593_v24 = vunpack.c.l.b16 %v792_v23 }
 0x166   : > { %v1152_v41 = vunpack.c.l.b16 %v760_v20 }
 0x168   : > { %v721_v22 = vpop.f32.mrf.mxu1 }
 0x169   : > { %v504_v25 = vpop.f32.mrf.mxu0  ;;  %v722_v26 = vadd.f32 %v5919_v38, %v721_v22 }
 0x16a   : > { %v505_v30 = vadd.f32 %v5919_v38, %v504_v25  ;;  %4118 = vrot.lane.b32.xlu0 %v6198_v10, %s5808_s13 }
 0x16b   : > { %v793_v35 = vpack.c.bf16 %v722_v26, %v722_v26  ;;  %v3944_v17 = vpop.permute.xlu0 %3943  ;;  %v6226_v58 = vpop.permute.xlu2 %1434 }
 0x16c   : > { %v761_v43 = vpack.c.bf16 %v505_v30, %v505_v30  ;;  %3956 = vmatpush.bf16.msra.mxu1 %v3944_v17 }
 0x16d   : > { %v1594_v45 = vunpack.c.l.b16 %v793_v35 }
 0x16e   : > { %v1153_v47 = vunpack.c.l.b16 %v761_v43 }
 0x16f   : > { %v6214_v48 = vpack.c.b16 %v1594_v45, %v1593_v24 }
 0x170   : > { %v6216_v50 = vpack.c.b16 %v1153_v47, %v1152_v41  ;;  %v724_v51 = vpop.f32.mrf.mxu1 }
 0x171   : > { %v507_v52 = vpop.f32.mrf.mxu0  ;;  %1596 = vrot.lane.b32.xlu2 %v6214_v48, %s5807_s12  ;;  %v725_v4 = vadd.f32 %v5919_v38, %v724_v51 }
 0x172   : > { %1155 = vrot.lane.b32.xlu1 %v6216_v50, %s5807_s12  ;;  %4550 = vrot.lane.b32.xlu0 %v6196_v9, %s5808_s13  ;;  %v508_v61 = vadd.f32 %v5919_v38, %v507_v52 }
 0x173   : > { %v6224_v54 = vpop.permute.xlu1 %1407  ;;  %v794_v12 = vpack.c.bf16 %v725_v4, %v725_v4 }
 0x174   : > { %v967_v2 = vpop.permute.xlu0 %966  ;;  %v762_v5 = vpack.c.bf16 %v508_v61, %v508_v61 }
 0x175   : > { %v972_v40 = vsel %vm805_vm1, %v967_v2, 0  ;;  %v1620_v30 = vunpack.c.l.b16 %v794_v12 }
 0x176   : > { %981 = vmatpush.bf16.xpose.msrb.mxu2 %v972_v40  ;;  %v1179_v23 = vunpack.c.l.b16 %v762_v5 }
 0x178   : > { %v726_v7 = vpop.f32.mrf.mxu1 }
 0x179   : > { %v509_v15 = vpop.f32.mrf.mxu0  ;;  %v727_v18 = vadd.f32 %v5919_v38, %v726_v7 }
 0x17a   : > { %v510_v49 = vadd.f32 %v5919_v38, %v509_v15  ;;  %4143 = vrot.lane.b32.xlu1 %v6216_v50, %s5808_s13 }
 0x17b   : > { %v795_v20 = vpack.c.bf16 %v727_v18, %v727_v18  ;;  %v6235_v22 = vpop.permute.xlu1 %3968 }
 0x17c   : > { %v763_v25 = vpack.c.bf16 %v510_v49, %v510_v49  ;;  %v1021_v26 = vpop.permute.xlu2 %1020  ;;  %v6244_v47 = vpop.permute.xlu0 %4400 }
 0x17d   : > { %v1621_v35 = vunpack.c.l.b16 %v795_v20  ;;  %v1026_v17 = vsel %vm805_vm1, %v1021_v26, 0  ;;  %5428 = vmatmul.msk.bf16.vlgmr.msrb.gmra.mxu2 %vm805_vm1, %v6058_v11  ;;  %8154 = vst [vmem:[#allocation9_spill] sm:$0xff] %v6244_v47 }
 0x17e   : > { %v1180_v41 = vunpack.c.l.b16 %v763_v25  ;;  %1035 = vmatpush.bf16.xpose.msra.mxu2 %v1026_v17 }
 0x17f   : > { %v6240_v43 = vpack.c.b16 %v1621_v35, %v1620_v30 }
 0x180   : > { %v6242_v24 = vpack.c.b16 %v1180_v41, %v1179_v23  ;;  %v729_v45 = vpop.f32.mrf.mxu1 }
 0x181   : > { %v512_v51 = vpop.f32.mrf.mxu0  ;;  %1623 = vrot.lane.b32.xlu0 %v6240_v43, %s5807_s12  ;;  %v730_v11 = vadd.f32 %v5919_v38, %v729_v45 }
 0x182   : > { %1182 = vrot.lane.b32.xlu2 %v6242_v24, %s5807_s12  ;;  %4575 = vrot.lane.b32.xlu1 %v6214_v48, %s5808_s13  ;;  %v513_v7 = vadd.f32 %v5919_v38, %v512_v51 }
 0x183   : > { %v796_v2 = vpack.c.bf16 %v730_v11, %v730_v11 }
 0x184   : > { %v994_v52 = vpop.permute.xlu1 %993  ;;  %v6258_v15 = vpop.permute.xlu0 %3993  ;;  %v764_v23 = vpack.c.bf16 %v513_v7, %v513_v7 }
 0x185   : > { %v999_v61 = vsel %vm805_vm1, %v994_v52, 0  ;;  %v1647_v12 = vunpack.c.l.b16 %v796_v2 }
 0x186   : > { %1008 = vmatpush.bf16.xpose.msrb.mxu3 %v999_v61 }
 0x188   : > { %v731_v4 = vpop.f32.mrf.mxu1 }
 0x189   : > { %v514_v40 = vpop.f32.mrf.mxu0  ;;  %v732_v5 = vadd.f32 %v5919_v38, %v731_v4  ;;  %4168 = vrot.lane.b32.xlu0 %v6242_v24, %s5808_s13 }
 0x18a   : > { %v515_v18 = vadd.f32 %v5919_v38, %v514_v40  ;;  %v1206_v38 = vunpack.c.l.b16 %v764_v23 }
 0x18b   : > { %v797_v49 = vpack.c.bf16 %v732_v5, %v732_v5 }
 0x18c   : > { %v765_v25 = vpack.c.bf16 %v515_v18, %v515_v18  ;;  %v6267_v30 = vpop.permute.xlu1 %4425 }
 0x18d   : > { %v1648_v20 = vunpack.c.l.b16 %v797_v49  ;;  %5429 = vmatmul.msk.bf16.vlgmr.msrb.gmra.mxu3 %vm805_vm1, %v6076_v34  ;;  %5430 = vmatmul.msk.bf16.vlgmr.msra.gmra.mxu2 %vm805_vm1, %v6099_v1  ;;  %8155 = vst [vmem:[#allocation10_spill] sm:$0xff] %v6267_v30 }
 0x18e   : > { %v1207_v35 = vunpack.c.l.b16 %v765_v25 }
 0x18f   : > { %v6265_v26 = vpack.c.b16 %v1648_v20, %v1647_v12 }
 0x190   : > { %v6275_v34 = vpack.c.b16 %v1207_v35, %v1206_v38 }
 0x191   : > { %1650 = vrot.lane.b32.xlu1 %v6265_v26, %s5807_s12  ;;  %4600 = vrot.lane.b32.xlu0 %v6240_v43, %s5808_s13 }
 0x193   : > { %v6273_v17 = vpop.permute.xlu0 %1461 }
 0x194   : > { %v6281_v1 = vpop.permute.xlu1 %4018 }
 0x195   : > { %8156 = vst [vmem:[#allocation11_spill] sm:$0xff] %v6281_v1 }
 0x199   : > { %4193 = vrot.lane.b32.xlu1 %v6275_v34, %s5808_s13  ;;  %1209 = vrot.lane.b32.xlu0 %v6275_v34, %s5807_s12 }
 0x19b   : > { %v6283_v41 = vpop.permute.xlu0 %4450  ;;  %v6289_v51 = vpop.permute.xlu2 %1515 }
 0x19c   : > { %8157 = vst [vmem:[#allocation12_spill] sm:$0xff] %v6283_v41 }
 0x1a0   : > { %v6292_v61 = vpop.f32.mrf.mxu2 }
 0x1a1   : > { %4625 = vrot.lane.b32.xlu1 %v6265_v26, %s5808_s13  ;;  %v1672_v2 = vsel %vm379_vm0, %v6292_v61, -inf }
 0x1a3   : > { %v6287_v45 = vpop.permute.xlu1 %1488 }
 0x1a4   : > { %v1048_v11 = vpop.permute.xlu0 %1047 }
 0x1a5   : > { %v1053_v52 = vsel %vm805_vm1, %v1048_v11, 0 }
 0x1a6   : > { %1062 = vmatpush.bf16.xpose.msra.mxu3 %v1053_v52 }
 0x1a8   : > { %v6304_v49 = vpop.f32.mrf.mxu2 }
 0x1a9   : > { %8159 = vst [vmem:[#allocation14_spill] sm:$0xff] %v6304_v49  ;;  %v1675_v35 = vsel %vm379_vm0, %v6304_v49, -inf }
 0x1ab   : > { %1673 = vmax.xlane.f32.xlu2 %v1672_v2  ;;  %v6296_v4 = vpop.permute.xlu1 %4475 }
 0x1ac   : > { %8158 = vst [vmem:[#allocation13_spill] sm:$0xff] %v6296_v4  ;;  %v1102_v40 = vpop.permute.xlu2 %1101  ;;  %v6310_v25 = vpop.permute.xlu0 %4043 }
 0x1ad   : > { %v1107_v5 = vsel %vm805_vm1, %v1102_v40, 0  ;;  %5431 = vmatmul.msk.bf16.vlgmr.msra.gmra.mxu3 %vm805_vm1, %v6120_v29  ;;  %8161 = vst [vmem:[#allocation16_spill] sm:$0xff] %v6310_v25 }
 0x1ae   : > { %1116 = vmatpush.bf16.xpose.msrb.mxu3 %v1107_v5 }
 0x1b0   : > { %v6301_v7 = vpop.f32.mrf.mxu3 }
 0x1b4   : > { %v1075_v12 = vpop.permute.xlu1 %1074  ;;  %v6322_v11 = vpop.permute.xlu0 %4500 }
 0x1b5   : > { %v1080_v18 = vsel %vm805_vm1, %v1075_v12, 0  ;;  %8162 = vst [vmem:[#allocation17_spill] sm:$0xff] %v6322_v11  ;;  %v6332_v40 = vpop.permute.xlu2 %4093 }
 0x1b6   : > { %1089 = vmatpush.bf16.xpose.msrb.mxu2 %v1080_v18  ;;  %8163 = vst [vmem:[#allocation18_spill] sm:$0xff] %v6332_v40 }
 0x1b8   : > { %v6306_v20 = vpop.f32.mrf.mxu3 }
 0x1b9   : > { %8160 = vst [vmem:[#allocation15_spill] sm:$0xff] %v6306_v20  ;;  %v1681_v23 = vsel %vm379_vm0, %v6306_v20, -inf }
 0x1ba   : > { %1682 = vmax.xlane.f32.xlu2 %v1681_v23 }
 0x1bc   : > { %v6326_v2 = vpop.permute.xlu1 %4068 }
 0x1bd   : > { %5432 = vmatmul.msk.bf16.vlgmr.msrb.gmra.mxu2 %vm805_vm1, %v6146_v3  ;;  %5433 = vmatmul.msk.bf16.vlgmr.msrb.gmra.mxu3 %vm805_vm1, %v6174_v42  ;;  %v1678_v42 = vsel %vm379_vm0, %v6301_v7, -inf }
 0x1c0   : > { %v6316_v29 = vpop.f32.mrf.mxu2 }
 0x1c1   : > { %v1684_v38 = vsel %vm379_vm0, %v6316_v29, -inf }
 0x1c2   : > { %1685 = vmax.xlane.f32.xlu2 %v1684_v38 }
 0x1c3   : > { %1676 = vmax.xlane.f32.xlu0 %v1675_v35  ;;  %v6334_v5 = vpop.permute.xlu0 %1542 }
 0x1c4   : > { %v6344_v35 = vpop.permute.xlu1 %4525 }
 0x1c5   : > { %8166 = vst [vmem:[#allocation21_spill] sm:$0xff] %v6344_v35 }
 0x1c8   : > { %v6324_v52 = vpop.f32.mrf.mxu2 }
 0x1c9   : > { %v1687_v3 = vsel %vm379_vm0, %v6324_v52, -inf }
 0x1cb   : > { %1688 = vmax.xlane.f32.xlu0 %v1687_v3  ;;  %1679 = vmax.xlane.f32.xlu1 %v1678_v42  ;;  %v6346_v3 = vpop.permute.xlu2 %1596 }
 0x1d0   : > { %v6336_v12 = vpop.f32.mrf.mxu3  ;;  %v6338_v18 = vpop.f32.mrf.mxu2 }
 0x1d1   : > { %8164 = vst [vmem:[#allocation19_spill] sm:$0xff] %v6336_v12  ;;  %v1696_v23 = vsel %vm379_vm0, %v6338_v18, -inf  ;;  %v1690_v38 = vsel %vm379_vm0, %v6336_v12, -inf }
 0x1d2   : > { %8165 = vst [vmem:[#allocation20_spill] sm:$0xff] %v6338_v18 }
 0x1d3   : > { %1697 = vmax.xlane.f32.xlu0 %v1696_v23  ;;  %1691 = vmax.xlane.f32.xlu1 %v1690_v38  ;;  %v6357_v23 = vpop.permute.xlu1 %1569 }
 0x1d4   : > { %v1129_v42 = vpop.permute.xlu0 %1128 }
 0x1d5   : > { %v1134_v11 = vsel %vm805_vm1, %v1129_v42, 0 }
 0x1d6   : > { %1143 = vmatpush.bf16.xpose.msra.mxu2 %v1134_v11  ;;  %v1251_v11 = vsel %vm805_vm1, %v6084_v37, 0 }
 0x1d8   : > { %v6349_v4 = vpop.f32.mrf.mxu3  ;;  %v6351_v41 = vpop.f32.mrf.mxu2 }
 0x1d9   : > { %8167 = vst [vmem:[#allocation22_spill] sm:$0xff] %v6349_v4  ;;  %v1693_v30 = vsel %vm379_vm0, %v6349_v4, -inf  ;;  %v1699_v47 = vsel %vm379_vm0, %v6351_v41, -inf }
 0x1da   : > { %8168 = vst [vmem:[#allocation23_spill] sm:$0xff] %v6351_v41  ;;  %1694 = vmax.xlane.f32.xlu2 %v1693_v30 }
 0x1db   : > { %1700 = vmax.xlane.f32.xlu1 %v1699_v47 }
 0x1dc   : > { %v1183_v38 = vpop.permute.xlu2 %1182  ;;  %v6366_v33 = vpop.permute.xlu0 %4118 }
 0x1dd   : > { %v1188_v35 = vsel %vm805_vm1, %v1183_v38, 0  ;;  %5434 = vmatmul.msk.bf16.vlgmr.msra.gmra.mxu2 %vm805_vm1, %v6198_v10  ;;  %8170 = vst [vmem:[#allocation25_spill] sm:$0xff] %v6366_v33 }
 0x1de   : > { %1197 = vmatpush.bf16.xpose.msrb.mxu2 %v1188_v35  ;;  %v1305_v35 = vsel %vm805_vm1, %v6142_v62, 0 }
 0x1e0   : > { %v6364_v42 = vpop.f32.mrf.mxu3 }
 0x1e1   : > { %8169 = vst [vmem:[#allocation24_spill] sm:$0xff] %v6364_v42  ;;  %v1702_v47 = vsel %vm379_vm0, %v6364_v42, -inf }
 0x1e2   : > { %1703 = vmax.xlane.f32.xlu2 %v1702_v47  ;;  %v1359_v47 = vsel %vm805_vm1, %v6155_v59, 0 }
 0x1e4   : > { %v1156_v30 = vpop.permute.xlu1 %1155  ;;  %v6375_v37 = vpop.permute.xlu0 %4550 }
 0x1e5   : > { %v1161_v44 = vsel %vm805_vm1, %v1156_v30, 0  ;;  %8172 = vst [vmem:[#allocation27_spill] sm:$0xff] %v6375_v37 }
 0x1e6   : > { %1260 = vmatpush.bf16.xpose.msra.mxu2 %v1251_v11  ;;  %1170 = vmatpush.bf16.xpose.msra.mxu3 %v1161_v44 }
 0x1e8   : > { %v6371_v38 = vpop.f32.mrf.mxu3 }
 0x1e9   : > { %8171 = vst [vmem:[#allocation26_spill] sm:$0xff] %v6371_v38  ;;  %v1705_v10 = vsel %vm379_vm0, %v6371_v38, -inf }
 0x1ea   : > { %1706 = vmax.xlane.f32.xlu0 %v1705_v10 }
 0x1ed   : > { %5435 = vmatmul.msk.bf16.vlgmr.msra.gmra.mxu3 %vm805_vm1, %v6216_v50  ;;  %5436 = vmatmul.msk.bf16.vlgmr.msrb.gmra.mxu2 %vm805_vm1, %v6242_v24 }
 0x1ee   : > { %1314 = vmatpush.bf16.xpose.msrb.mxu2 %v1305_v35 }
 0x1f3   : > { %v6383_v11 = vpop.permute.xlu0 %1623 }
 0x1fb   : > { %v6385_v44 = vpop.permute.xlu0 %4168 }
 0x1fc   : > { %8173 = vst [vmem:[#allocation28_spill] sm:$0xff] %v6385_v44 }
 0x1fd   : > { %5438 = vmatmul.msk.bf16.vlgmr.msra.gmra.mxu2 %vm805_vm1, %v5929_v56  ;;  %v1278_v56 = vsel %vm805_vm1, %v6126_v31, 0  ;;  %v1332_v31 = vsel %vm805_vm1, %v6165_v28, 0  ;;  %v1386_v28 = vsel %vm805_vm1, %v6204_v16, 0  ;;  %v1440_v16 = vsel %vm805_vm1, %v6226_v58, 0 }
 0x1fe   : > { %1368 = vmatpush.bf16.xpose.msra.mxu2 %v1359_v47  ;;  %v1413_v47 = vsel %vm805_vm1, %v6224_v54, 0 }
 0x200   : > { %v6391_v30 = vpop.f32.mrf.mxu2 }
 0x201   : > { %8174 = vst [vmem:[#allocation29_spill] sm:$0xff] %v6391_v30  ;;  %v1708_v62 = vsel %vm379_vm0, %v6391_v30, -inf }
 0x202   : > { %1709 = vmax.xlane.f32.xlu1 %v1708_v62 }
 0x203   : > { %v6395_v50 = vpop.permute.xlu0 %4600 }
 0x204   : > { %8175 = vst [vmem:[#allocation30_spill] sm:$0xff] %v6395_v50 }
 0x208   : > { %v6397_v24 = vpop.f32.mrf.mxu2 }
 0x209   : > { %8176 = vst [vmem:[#allocation31_spill] sm:$0xff] %v6397_v24  ;;  %v1711_v10 = vsel %vm379_vm0, %v6397_v24, -inf }
 0x20a   : > { %1712 = vmax.xlane.f32.xlu2 %v1711_v10 }
 0x20b   : > { %v1210_v35 = vpop.permute.xlu0 %1209 }
 0x20c   : > { %v1215_v59 = vsel %vm805_vm1, %v1210_v35, 0 }
 0x20d   : > { %5440 = vmatmul.msk.bf16.vlgmr.msrb.gmra.mxu2 %vm805_vm1, %v5971_v36  ;;  %1224 = vmatpush.bf16.xpose.msrb.mxu3 %v1215_v59 }
 0x20e   : > { %1422 = vmatpush.bf16.xpose.msrb.mxu2 %v1413_v47  ;;  %v1467_v47 = vsel %vm805_vm1, %v6273_v17, 0 }
 0x210   : > { %v6408_v62 = vpop.f32.mrf.mxu3  ;;  %v6410_v50 = vpop.f32.mrf.mxu2 }
 0x211   : > { %8177 = vst [vmem:[#allocation32_spill] sm:$0xff] %v6408_v62  ;;  %v1714_v10 = vsel %vm379_vm0, %v6408_v62, -inf  ;;  %v1720_v35 = vsel %vm379_vm0, %v6410_v50, -inf }
 0x212   : > { %8178 = vst [vmem:[#allocation33_spill] sm:$0xff] %v6410_v50  ;;  %1715 = vmax.xlane.f32.xlu0 %v1714_v10  ;;  %1721 = vmax.xlane.f32.xlu2 %v1720_v35 }
 0x214   : > { %5437 = vmatmul.msk.bf16.vlgmr.msrb.gmra.mxu3 %vm805_vm1, %v6275_v34  ;;  %v1521_v34 = vsel %vm805_vm1, %v6289_v51, 0 }
 0x215   : > { %1287 = vmatpush.bf16.xpose.msra.mxu3 %v1278_v56 }
 0x218   : > { %v6420_v36 = vpop.f32.mrf.mxu3  ;;  %v6422_v54 = vpop.f32.mrf.mxu2 }
 0x219   : > { %8179 = vst [vmem:[#allocation34_spill] sm:$0xff] %v6420_v36  ;;  %v1717_v59 = vsel %vm379_vm0, %v6420_v36, -inf  ;;  %v1723_v56 = vsel %vm379_vm0, %v6422_v54, -inf }
 0x21a   : > { %8180 = vst [vmem:[#allocation35_spill] sm:$0xff] %v6422_v54  ;;  %1718 = vmax.xlane.f32.xlu1 %v1717_v59  ;;  %1724 = vmax.xlane.f32.xlu0 %v1723_v56 }
 0x21d   : > { %1341 = vmatpush.bf16.xpose.msrb.mxu3 %v1332_v31  ;;  %5442 = vmatmul.msk.bf16.vlgmr.msra.gmra.mxu2 %vm805_vm1, %v6011_v21  ;;  %v1494_v31 = vsel %vm805_vm1, %v6287_v45, 0  ;;  %v1231_v45 = vlaneseq }
 0x21e   : > { %1476 = vmatpush.bf16.xpose.msra.mxu2 %v1467_v47  ;;  %v1629_v47 = vsel %vm805_vm1, %v6383_v11, 0  ;;  %v6489_v11 = vpop.permute.xlu1 %4143 }
 0x21f   : > { %8187 = vst [vmem:[#allocation42_spill] sm:$0xff] %v6489_v11 }
 0x224   : > { %5439 = vmatmul.msk.bf16.vlgmr.msra.gmra.mxu3 %vm805_vm1, %v5950_v14 }
 0x225   : > { %1395 = vmatpush.bf16.xpose.msra.mxu3 %v1386_v28  ;;  %v6487_v28 = vshrl.u32 %v1231_v45, 7 }
 0x227   : > { %5521 = vset.pattern.permute.xlu0 %v6487_v28 }
 0x22d   : > { %5444 = vmatmul.msk.bf16.vlgmr.msrb.gmra.mxu2 %vm805_vm1, %v6055_v8  ;;  %v1575_v8 = vsel %vm805_vm1, %v6357_v23, 0 }
 0x22e   : > { %1530 = vmatpush.bf16.xpose.msrb.mxu2 %v1521_v34 }
 0x230   : > { %v6440_v10 = vpop.f32.mrf.mxu3 }
 0x231   : > { %8181 = vst [vmem:[#allocation36_spill] sm:$0xff] %v6440_v10  ;;  %v1726_v21 = vsel %vm379_vm0, %v6440_v10, -inf }
 0x232   : > { %1727 = vmax.xlane.f32.xlu1 %v1726_v21 }
 0x234   : > { %5441 = vmatmul.msk.bf16.vlgmr.msrb.gmra.mxu3 %vm805_vm1, %v6003_v6 }
 0x235   : > { %1449 = vmatpush.bf16.xpose.msrb.mxu3 %v1440_v16 }
 0x238   : > { %v6448_v14 = vpop.f32.mrf.mxu3 }
 0x239   : > { %8182 = vst [vmem:[#allocation37_spill] sm:$0xff] %v6448_v14  ;;  %v1729_v17 = vsel %vm379_vm0, %v6448_v14, -inf }
 0x23a   : > { %1730 = vmax.xlane.f32.xlu2 %v1729_v17 }
 0x23d   : > { %5446 = vmatmul.msk.bf16.vlgmr.msra.gmra.mxu2 %vm805_vm1, %v6097_v63 }
 0x23e   : > { %1584 = vmatpush.bf16.xpose.msra.mxu2 %v1575_v8 }
 0x240   : > { %v6456_v51 = vpop.f32.mrf.mxu2  ;;  %v6458_v58 = vpop.f32.mrf.mxu3 }
 0x241   : > { %8183 = vst [vmem:[#allocation38_spill] sm:$0xff] %v6456_v51  ;;  %v1732_v6 = vsel %vm379_vm0, %v6456_v51, -inf  ;;  %v1738_v35 = vsel %vm379_vm0, %v6458_v58, -inf }
 0x242   : > { %8184 = vst [vmem:[#allocation39_spill] sm:$0xff] %v6458_v58  ;;  %1733 = vmax.xlane.f32.xlu0 %v1732_v6  ;;  %1739 = vmax.xlane.f32.xlu2 %v1738_v35 }
 0x244   : > { %5443 = vmatmul.msk.bf16.vlgmr.msra.gmra.mxu3 %vm805_vm1, %v6034_v46  ;;  %v1548_v46 = vsel %vm805_vm1, %v6334_v5, 0  ;;  %v6506_v5 = vpop.permute.xlu1 %4575 }
 0x245   : > { %1503 = vmatpush.bf16.xpose.msra.mxu3 %v1494_v31  ;;  %8190 = vst [vmem:[#allocation45_spill] sm:$0xff] %v6506_v5 }
 0x248   : > { %v6468_v63 = vpop.f32.mrf.mxu2  ;;  %v6470_v23 = vpop.f32.mrf.mxu3 }
 0x249   : > { %8185 = vst [vmem:[#allocation40_spill] sm:$0xff] %v6468_v63  ;;  %v1735_v59 = vsel %vm379_vm0, %v6468_v63, -inf  ;;  %v1741_v56 = vsel %vm379_vm0, %v6470_v23, -inf }
 0x24a   : > { %8186 = vst [vmem:[#allocation41_spill] sm:$0xff] %v6470_v23  ;;  %1736 = vmax.xlane.f32.xlu1 %v1735_v59  ;;  %1742 = vmax.xlane.f32.xlu0 %v1741_v56  ;;  %v5809_v56 = vmov 0.0  }
 0x24c   : > { %v1651_v16 = vpop.permute.xlu1 %1650 }
 0x24d   : > { %5448 = vmatmul.msk.bf16.vlgmr.msrb.gmra.mxu2 %vm805_vm1, %v6144_v0  ;;  %v1656_v6 = vsel %vm805_vm1, %v1651_v16, 0 }
 0x24e   : > { %1638 = vmatpush.bf16.xpose.msrb.mxu2 %v1629_v47 }
 0x254   : > { %5445 = vmatmul.msk.bf16.vlgmr.msrb.gmra.mxu3 %vm805_vm1, %v6074_v32  ;;  %v1602_v32 = vsel %vm805_vm1, %v6346_v3, 0 }
 0x255   : > { %1557 = vmatpush.bf16.xpose.msrb.mxu3 %v1548_v46 }
 0x25d   : > { %5450 = vmatmul.msk.bf16.vlgmr.msra.gmra.mxu2 %vm805_vm1, %v6196_v9 }
 0x25e   : > { %3881 = vmatpush.bf16.msra.mxu2 %v6137_v53  ;;  %v6501_v53 = vadd.s32 8, %v6487_v28 }
 0x260   : > { %v6491_v34 = vpop.f32.mrf.mxu2  ;;  %5522 = vset.pattern.permute.xlu1 %v6501_v53 }
 0x261   : > { %8188 = vst [vmem:[#allocation43_spill] sm:$0xff] %v6491_v34  ;;  %v1744_v0 = vsel %vm379_vm0, %v6491_v34, -inf }
 0x262   : > { %1745 = vmax.xlane.f32.xlu1 %v1744_v0 }
 0x264   : > { %5447 = vmatmul.msk.bf16.vlgmr.msra.gmra.mxu3 %vm805_vm1, %v6118_v27 }
 0x265   : > { %1611 = vmatpush.bf16.xpose.msra.mxu3 %v1602_v32 }
 0x268   : > { %v6504_v9 = vpop.f32.mrf.mxu2 }
 0x269   : > { %8189 = vst [vmem:[#allocation44_spill] sm:$0xff] %v6504_v9  ;;  %v1747_v21 = vsel %vm379_vm0, %v6504_v9, -inf }
 0x26a   : > { %1748 = vmax.xlane.f32.xlu2 %v1747_v21 }
 0x26d   : > { %5452 = vmatmul.msk.bf16.vlgmr.msrb.gmra.mxu2 %vm805_vm1, %v6240_v43 }
 0x26e   : > { %3981 = vmatpush.bf16.msrb.mxu2 %v6235_v22  ;;  %v6524_v22 = vand.u32 127, %v1231_v45 }
 0x270   : > { %v6513_v27 = vpop.f32.mrf.mxu3  ;;  %v6515_v3 = vpop.f32.mrf.mxu2  ;;  %vm1236_vm2 = vcmp.eq.s32.totalorder %v6487_v28, %v6524_v22  ;;  %vm1237_vm3 = vcmp.eq.s32.totalorder %v6501_v53, %v6524_v22  ;;  %v6785_v41 = vadd.s32 4294967288, %v6524_v22 }
 0x271   : > { %8191 = vst [vmem:[#allocation46_spill] sm:$0xff] %v6513_v27  ;;  %v1750_v17 = vsel %vm379_vm0, %v6513_v27, -inf  ;;  %v1756_v8 = vsel %vm379_vm0, %v6515_v3, -inf }
 0x272   : > { %8192 = vst [vmem:[#allocation47_spill] sm:$0xff] %v6515_v3  ;;  %1751 = vmax.xlane.f32.xlu0 %v1750_v17  ;;  %1757 = vmax.xlane.f32.xlu2 %v1756_v8  ;;  %v6555_v8 = vsel %vm1237_vm3, -1e+30, %v5809_v56 }
 0x274   : > { %5449 = vmatmul.msk.bf16.vlgmr.msrb.gmra.mxu3 %vm805_vm1, %v6172_v39  ;;  %v6536_v39 = vsel %vm1236_vm2, -1e+30, %v5809_v56 }
 0x275   : > { %1665 = vmatpush.bf16.xpose.msrb.mxu3 %v1656_v6 }
 0x278   : > { %v6526_v43 = vpop.f32.mrf.mxu3  ;;  %v6528_v35 = vpop.f32.mrf.mxu2 }
 0x279   : > { %8193 = vst [vmem:[#allocation48_spill] sm:$0xff] %v6526_v43  ;;  %v1753_v31 = vsel %vm379_vm0, %v6526_v43, -inf  ;;  %v1759_v59 = vsel %vm379_vm0, %v6528_v35, -inf }
 0x27a   : > { %8194 = vst [vmem:[#allocation49_spill] sm:$0xff] %v6528_v35  ;;  %1754 = vmax.xlane.f32.xlu1 %v1753_v31  ;;  %1760 = vmax.xlane.f32.xlu0 %v1759_v59 }
 0x280   : > { %v1262_v47 = vpop.f32.mrf.mxu2 }
 0x281   : > { %v6539_v46 = vadd.f32 %v1262_v47, %v6536_v39 }
 0x283   : > { %8195 = vst [vmem:[#allocation50_spill] sm:$0xff] %v6539_v46  ;;  %v1768_v45 = vsel %vm379_vm0, %v6539_v46, -inf }
 0x284   : > { %1769 = vmax.xlane.f32.xlu0 %v1768_v45  ;;  %5451 = vmatmul.msk.bf16.vlgmr.msra.gmra.mxu3 %vm805_vm1, %v6214_v48 }
 0x285   : > { %3906 = vmatpush.bf16.msra.mxu3 %v6182_v60 }
 0x288   : > { %v1264_v0 = vpop.f32.mrf.mxu2 }
 0x289   : > { %v6558_v60 = vadd.f32 %v1264_v0, %v6555_v8 }
 0x28b   : > { %8197 = vst [vmem:[#allocation52_spill] sm:$0xff] %v6558_v60 }
 0x290   : > { %v1316_v32 = vpop.f32.mrf.mxu2 }
 0x291   : > { %v6567_v31 = vadd.f32 %v1316_v32, %v6536_v39 }
 0x293   : > { %8199 = vst [vmem:[#allocation54_spill] sm:$0xff] %v6567_v31  ;;  %v1780_v45 = vsel %vm379_vm0, %v6567_v31, -inf }
 0x294   : > { %5453 = vmatmul.msk.bf16.vlgmr.msrb.gmra.mxu3 %vm805_vm1, %v6265_v26 }
 0x295   : > { %4006 = vmatpush.bf16.msrb.mxu3 %v6258_v15  ;;  %v1771_v15 = vsel %vm379_vm0, %v6558_v60, -inf }
 0x297   : > { %v6551_v21 = vpop.f32.mrf.mxu3 }
 0x298   : > { %8196 = vst [vmem:[#allocation51_spill] sm:$0xff] %v6551_v21  ;;  %v1318_v16 = vpop.f32.mrf.mxu2  ;;  %v1762_v17 = vsel %vm379_vm0, %v6551_v21, -inf }
 0x299   : > { %1763 = vmax.xlane.f32.xlu1 %v1762_v17  ;;  %v6577_v17 = vadd.f32 %v1318_v16, %v6555_v8 }
 0x29b   : > { %8201 = vst [vmem:[#allocation56_spill] sm:$0xff] %v6577_v17  ;;  %v1783_v5 = vsel %vm379_vm0, %v6577_v17, -inf }
 0x29f   : > { %v6560_v48 = vpop.f32.mrf.mxu3 }
 0x2a0   : > { %8198 = vst [vmem:[#allocation53_spill] sm:$0xff] %v6560_v48  ;;  %v1370_v26 = vpop.f32.mrf.mxu2  ;;  %v1765_v6 = vsel %vm379_vm0, %v6560_v48, -inf }
 0x2a1   : > { %1772 = vmax.xlane.f32.xlu1 %v1771_v15  ;;  %1766 = vmax.xlane.f32.xlu2 %v1765_v6 }
 0x2a7   : > { %v1289_v59 = vpop.f32.mrf.mxu3 }
 0x2a8   : > { %v6570_v56 = vadd.f32 %v1289_v59, %v6536_v39  ;;  %v1372_v47 = vpop.f32.mrf.mxu2 }
 0x2a9   : > { %1781 = vmax.xlane.f32.xlu1 %v1780_v45  ;;  %v6587_v45 = vadd.f32 %v1370_v26, %v6536_v39 }
 0x2aa   : > { %8200 = vst [vmem:[#allocation55_spill] sm:$0xff] %v6570_v56  ;;  %v1774_v0 = vsel %vm379_vm0, %v6570_v56, -inf  ;;  %v6597_v56 = vadd.f32 %v1372_v47, %v6555_v8 }
 0x2ab   : > { %1775 = vmax.xlane.f32.xlu2 %v1774_v0  ;;  %8203 = vst [vmem:[#allocation58_spill] sm:$0xff] %v6587_v45  ;;  %v1792_v37 = vsel %vm379_vm0, %v6587_v45, -inf  ;;  %v6608_v45 = vpop.xlane.xlu2 %1673 }
 0x2ac   : > { %8205 = vst [vmem:[#allocation60_spill] sm:$0xff] %v6597_v56 }
 0x2af   : > { %v1291_v15 = vpop.f32.mrf.mxu3 }
 0x2b0   : > { %v6580_v32 = vadd.f32 %v1291_v15, %v6555_v8  ;;  %v1424_v6 = vpop.f32.mrf.mxu2 }
 0x2b1   : > { %v6611_v47 = vadd.f32 %v1424_v6, %v6536_v39 }
 0x2b2   : > { %8202 = vst [vmem:[#allocation57_spill] sm:$0xff] %v6580_v32  ;;  %v1777_v59 = vsel %vm379_vm0, %v6580_v32, -inf }
 0x2b3   : > { %1778 = vmax.xlane.f32.xlu0 %v1777_v59  ;;  %1784 = vmax.xlane.f32.xlu2 %v1783_v5  ;;  %v6599_v59 = vpop.permute.xlu1 %4193  ;;  %8208 = vst [vmem:[#allocation63_spill] sm:$0xff] %v6611_v47 }
 0x2b4   : > { %8206 = vst [vmem:[#allocation61_spill] sm:$0xff] %v6599_v59 }
 0x2b7   : > { %v1343_v0 = vpop.f32.mrf.mxu3 }
 0x2b8   : > { %v6590_v16 = vadd.f32 %v1343_v0, %v6536_v39  ;;  %v1426_v31 = vpop.f32.mrf.mxu2 }
 0x2b9   : > { %v6627_v6 = vadd.f32 %v1426_v31, %v6555_v8 }
 0x2ba   : > { %8204 = vst [vmem:[#allocation59_spill] sm:$0xff] %v6590_v16  ;;  %v1786_v15 = vsel %vm379_vm0, %v6590_v16, -inf  ;;  %v1795_v16 = vsel %vm379_vm0, %v6597_v56, -inf  ;;  %v1804_v56 = vsel %vm379_vm0, %v6611_v47, -inf }
 0x2bb   : > { %1787 = vmax.xlane.f32.xlu0 %v1786_v15  ;;  %1793 = vmax.xlane.f32.xlu2 %v1792_v37  ;;  %v6613_v17 = vpop.permute.xlu1 %4625  ;;  %8211 = vst [vmem:[#allocation66_spill] sm:$0xff] %v6627_v6 }
 0x2bc   : > { %8209 = vst [vmem:[#allocation64_spill] sm:$0xff] %v6613_v17 }
 0x2bf   : > { %v1345_v5 = vpop.f32.mrf.mxu3 }
 0x2c0   : > { %v6602_v26 = vadd.f32 %v1345_v5, %v6555_v8  ;;  %v1478_v37 = vpop.f32.mrf.mxu2 }
 0x2c1   : > { %v6641_v31 = vadd.f32 %v1478_v37, %v6536_v39 }
 0x2c2   : > { %8207 = vst [vmem:[#allocation62_spill] sm:$0xff] %v6602_v26  ;;  %v1789_v0 = vsel %vm379_vm0, %v6602_v26, -inf }
 0x2c3   : > { %1790 = vmax.xlane.f32.xlu1 %v1789_v0  ;;  %1796 = vmax.xlane.f32.xlu0 %v1795_v16  ;;  %v6622_v16 = vpop.xlane.xlu2 %1682  ;;  %v6624_v0 = vpop.xlane.xlu0 %1676  ;;  %8213 = vst [vmem:[#allocation68_spill] sm:$0xff] %v6641_v31 }
 0x2c4   : > { %v6632_v32 = vpop.xlane.xlu1 %1679 }
 0x2c7   : > { %v1397_v15 = vpop.f32.mrf.mxu3 }
 0x2c8   : > { %v6616_v5 = vadd.f32 %v1397_v15, %v6536_v39  ;;  %v1480_v46 = vpop.f32.mrf.mxu2 }
 0x2c9   : > { %v6657_v37 = vadd.f32 %v1480_v46, %v6555_v8 }
 0x2ca   : > { %8210 = vst [vmem:[#allocation65_spill] sm:$0xff] %v6616_v5  ;;  %v1798_v26 = vsel %vm379_vm0, %v6616_v5, -inf  ;;  %v1807_v5 = vsel %vm379_vm0, %v6627_v6, -inf  ;;  %v1816_v6 = vsel %vm379_vm0, %v6641_v31, -inf }
 0x2cb   : > { %1799 = vmax.xlane.f32.xlu1 %v1798_v26  ;;  %1805 = vmax.xlane.f32.xlu0 %v1804_v56  ;;  %v6638_v26 = vpop.xlane.xlu2 %1685  ;;  %v6643_v60 = vpop.xlane.xlu0 %1688  ;;  %8215 = vst [vmem:[#allocation70_spill] sm:$0xff] %v6657_v37 }
 0x2cf   : > { %v1399_v17 = vpop.f32.mrf.mxu3 }
 0x2d0   : > { %v6630_v15 = vadd.f32 %v1399_v17, %v6555_v8  ;;  %v1532_v21 = vpop.f32.mrf.mxu2 }
 0x2d1   : > { %v6671_v46 = vadd.f32 %v1532_v21, %v6536_v39 }
 0x2d2   : > { %8212 = vst [vmem:[#allocation67_spill] sm:$0xff] %v6630_v15  ;;  %v1801_v56 = vsel %vm379_vm0, %v6630_v15, -inf }
 0x2d3   : > { %1808 = vmax.xlane.f32.xlu1 %v1807_v5  ;;  %1802 = vmax.xlane.f32.xlu2 %v1801_v56  ;;  %v6652_v5 = vpop.xlane.xlu1 %1691  ;;  %v6654_v56 = vpop.xlane.xlu2 %1694  ;;  %8217 = vst [vmem:[#allocation72_spill] sm:$0xff] %v6671_v46 }
 0x2d4   : > { %v6662_v48 = vpop.xlane.xlu0 %1697 }
 0x2d7   : > { %v1451_v47 = vpop.f32.mrf.mxu3 }
 0x2d8   : > { %v6646_v17 = vadd.f32 %v1451_v47, %v6536_v39 }
 0x2da   : > { %8214 = vst [vmem:[#allocation69_spill] sm:$0xff] %v6646_v17  ;;  %v1810_v15 = vsel %vm379_vm0, %v6646_v17, -inf }
 0x2db   : > { %1817 = vmax.xlane.f32.xlu1 %v1816_v6  ;;  %1811 = vmax.xlane.f32.xlu2 %v1810_v15  ;;  %v1819_v6 = vsel %vm379_vm0, %v6657_v37, -inf  ;;  %v1534_v15 = vpop.f32.mrf.mxu2  ;;  %v6668_v17 = vpop.xlane.xlu1 %1700 }
 0x2dc   : > { %v6673_v3 = vpop.xlane.xlu2 %1703  ;;  %v6678_v43 = vpop.xlane.xlu0 %1706  ;;  %v6687_v21 = vadd.f32 %v1534_v15, %v6555_v8 }
 0x2de   : > { %8219 = vst [vmem:[#allocation74_spill] sm:$0xff] %v6687_v21 }
 0x2df   : > { %v1453_v35 = vpop.f32.mrf.mxu3 }
 0x2e0   : > { %v6660_v47 = vadd.f32 %v1453_v35, %v6555_v8 }
 0x2e2   : > { %8216 = vst [vmem:[#allocation71_spill] sm:$0xff] %v6660_v47  ;;  %v1813_v31 = vsel %vm379_vm0, %v6660_v47, -inf }
 0x2e3   : > { %1814 = vmax.xlane.f32.xlu0 %v1813_v31  ;;  %1820 = vmax.xlane.f32.xlu2 %v1819_v6  ;;  %v1828_v31 = vsel %vm379_vm0, %v6671_v46, -inf  ;;  %v1586_v6 = vpop.f32.mrf.mxu2  ;;  %v6684_v37 = vpop.xlane.xlu1 %1709 }
 0x2e4   : > { %v6689_v13 = vpop.xlane.xlu2 %1712  ;;  %v6694_v23 = vpop.xlane.xlu0 %1715  ;;  %v6703_v15 = vadd.f32 %v1586_v6, %v6536_v39 }
 0x2e6   : > { %8221 = vst [vmem:[#allocation76_spill] sm:$0xff] %v6703_v15 }
 0x2e7   : > { %v1505_v27 = vpop.f32.mrf.mxu3 }
 0x2e8   : > { %v6676_v35 = vadd.f32 %v1505_v27, %v6536_v39 }
 0x2ea   : > { %8218 = vst [vmem:[#allocation73_spill] sm:$0xff] %v6676_v35  ;;  %v1822_v47 = vsel %vm379_vm0, %v6676_v35, -inf }
 0x2eb   : > { %1823 = vmax.xlane.f32.xlu0 %v1822_v47  ;;  %1829 = vmax.xlane.f32.xlu2 %v1828_v31  ;;  %v1831_v47 = vsel %vm379_vm0, %v6687_v21, -inf  ;;  %v6700_v31 = vpop.xlane.xlu1 %1718  ;;  %v1588_v46 = vpop.f32.mrf.mxu2  ;;  %v1840_v21 = vsel %vm379_vm0, %v6703_v15, -inf }
 0x2ec   : > { %v6708_v34 = vpop.xlane.xlu2 %1721  ;;  %v6717_v6 = vadd.f32 %v1588_v46, %v6555_v8 }
 0x2ee   : > { %8223 = vst [vmem:[#allocation78_spill] sm:$0xff] %v6717_v6 }
 0x2ef   : > { %v1507_v55 = vpop.f32.mrf.mxu3 }
 0x2f0   : > { %v6692_v27 = vadd.f32 %v1507_v55, %v6555_v8 }
 0x2f2   : > { %8220 = vst [vmem:[#allocation75_spill] sm:$0xff] %v6692_v27  ;;  %v1825_v35 = vsel %vm379_vm0, %v6692_v27, -inf }
 0x2f3   : > { %1826 = vmax.xlane.f32.xlu1 %v1825_v35  ;;  %1832 = vmax.xlane.f32.xlu0 %v1831_v47  ;;  %v6714_v35 = vpop.xlane.xlu0 %1724  ;;  %v6719_v47 = vpop.xlane.xlu1 %1727 }
 0x2f4   : > { %v1640_v57 = vpop.f32.mrf.mxu2  ;;  %v6724_v59 = vpop.xlane.xlu2 %1730 }
 0x2f5   : > { %v6733_v46 = vadd.f32 %v1640_v57, %v6536_v39 }
 0x2f7   : > { %v1559_v19 = vpop.f32.mrf.mxu3  ;;  %8225 = vst [vmem:[#allocation80_spill] sm:$0xff] %v6733_v46  ;;  %v1852_v9 = vsel %vm379_vm0, %v6733_v46, -inf }
 0x2f8   : > { %v6706_v55 = vadd.f32 %v1559_v19, %v6536_v39 }
 0x2fa   : > { %8222 = vst [vmem:[#allocation77_spill] sm:$0xff] %v6706_v55  ;;  %v1834_v27 = vsel %vm379_vm0, %v6706_v55, -inf  ;;  %v1843_v55 = vsel %vm379_vm0, %v6717_v6, -inf }
 0x2fb   : > { %1835 = vmax.xlane.f32.xlu1 %v1834_v27  ;;  %1841 = vmax.xlane.f32.xlu0 %v1840_v21  ;;  %v6730_v27 = vpop.xlane.xlu0 %1733  ;;  %v6735_v15 = vpop.xlane.xlu1 %1736 }
 0x2ff   : > { %v1561_v58 = vpop.f32.mrf.mxu3 }
 0x300   : > { %v6722_v19 = vadd.f32 %v1561_v58, %v6555_v8 }
 0x302   : > { %8224 = vst [vmem:[#allocation79_spill] sm:$0xff] %v6722_v19  ;;  %v1837_v21 = vsel %vm379_vm0, %v6722_v19, -inf  ;;  %v1642_v19 = vpop.f32.mrf.mxu2 }
 0x303   : > { %1844 = vmax.xlane.f32.xlu1 %v1843_v55  ;;  %1838 = vmax.xlane.f32.xlu2 %v1837_v21  ;;  %v6744_v55 = vpop.xlane.xlu2 %1739  ;;  %v6746_v21 = vpop.xlane.xlu0 %1742  ;;  %v6749_v57 = vadd.f32 %v1642_v19, %v6555_v8 }
 0x304   : > { %v6751_v44 = vpop.xlane.xlu1 %1745 }
 0x305   : > { %8227 = vst [vmem:[#allocation82_spill] sm:$0xff] %v6749_v57 }
 0x307   : > { %v1613_v58 = vpop.f32.mrf.mxu3 }
 0x308   : > { %v6738_v63 = vadd.f32 %v1613_v58, %v6536_v39 }
 0x30a   : > { %8226 = vst [vmem:[#allocation81_spill] sm:$0xff] %v6738_v63  ;;  %v1846_v6 = vsel %vm379_vm0, %v6738_v63, -inf }
 0x30b   : > { %1853 = vmax.xlane.f32.xlu1 %v1852_v9  ;;  %1847 = vmax.xlane.f32.xlu2 %v1846_v6  ;;  %v1855_v9 = vsel %vm379_vm0, %v6749_v57, -inf  ;;  %v6760_v6 = vpop.xlane.xlu2 %1748  ;;  %v6762_v63 = vpop.xlane.xlu0 %1751 }
 0x30c   : > { %v6764_v19 = vpop.xlane.xlu1 %1754 }
 0x30f   : > { %v1615_v58 = vpop.f32.mrf.mxu3 }
 0x310   : > { %v6754_v10 = vadd.f32 %v1615_v58, %v6555_v8 }
 0x312   : > { %8228 = vst [vmem:[#allocation83_spill] sm:$0xff] %v6754_v10  ;;  %v1849_v46 = vsel %vm379_vm0, %v6754_v10, -inf }
 0x313   : > { %1850 = vmax.xlane.f32.xlu0 %v1849_v46  ;;  %1856 = vmax.xlane.f32.xlu2 %v1855_v9  ;;  %v6771_v10 = vpop.xlane.xlu2 %1757  ;;  %v6775_v9 = vpop.xlane.xlu0 %1760 }
 0x314   : > { %v6773_v33 = vpop.xlane.xlu1 %1763 }
 0x317   : > { %v1667_v51 = vpop.f32.mrf.mxu3 }
 0x318   : > { %v6767_v11 = vadd.f32 %v1667_v51, %v6536_v39 }
 0x31a   : > { %8229 = vst [vmem:[#allocation84_spill] sm:$0xff] %v6767_v11  ;;  %v1858_v58 = vsel %vm379_vm0, %v6767_v11, -inf }
 0x31b   : > { %1859 = vmax.xlane.f32.xlu0 %v1858_v58  ;;  %v6782_v51 = vpop.xlane.xlu2 %1766  ;;  %v1770_v39 = vpop.xlane.xlu0 %1769 }
 0x31c   : > { %v1773_v14 = vpop.xlane.xlu1 %1772  ;;  %v1896_v12 = vperm.slane %v1770_v39, %v6524_v22 }
 0x31f   : > { %v1669_v46 = vpop.f32.mrf.mxu3 }
 0x320   : > { %v6778_v57 = vadd.f32 %v1669_v46, %v6555_v8 }
 0x322   : > { %8230 = vst [vmem:[#allocation85_spill] sm:$0xff] %v6778_v57  ;;  %v1861_v36 = vsel %vm379_vm0, %v6778_v57, -inf }
 0x323   : > { %1862 = vmax.xlane.f32.xlu1 %v1861_v36  ;;  %v1776_v11 = vpop.xlane.xlu2 %1775  ;;  %v1898_v36 = vperm.slane %v1773_v14, %v6785_v41 }
 0x324   : > { %v1782_v40 = vpop.xlane.xlu1 %1781  ;;  %v1901_v57 = vperm.slane %v1776_v11, %v6524_v22 }
 0x325   : > { %v1904_v38 = vperm.slane %v1782_v40, %v6524_v22  ;;  %v1900_v20 = vsel %vm1899_vm4, %v1898_v36, %v1896_v12 }
 0x326   : > { %v1779_v58 = vpop.xlane.xlu0 %1778 }
 0x327   : > { %v1902_v46 = vperm.slane %v1779_v58, %v6785_v41 }
 0x329   : > { %v1903_v18 = vsel %vm1899_vm4, %v1902_v46, %v1901_v57 }
 0x32a   : > { %v1947_v11 = vsel %vm1946_vm5, %v1903_v18, %v1900_v20 }
 0x32b   : > { %v1785_v30 = vpop.xlane.xlu2 %1784 }
 0x32c   : > { %v1905_v24 = vperm.slane %v1785_v30, %v6785_v41 }
 0x32e   : > { %v1788_v62 = vpop.xlane.xlu0 %1787  ;;  %v1906_v14 = vsel %vm1899_vm4, %v1905_v24, %v1904_v38 }
 0x32f   : > { %v1907_v58 = vperm.slane %v1788_v62, %v6524_v22  ;;  %v1949_v12 = vsel %vm1948_vm6, %v1906_v14, %v1947_v11 }
 0x333   : > { %v1794_v54 = vpop.xlane.xlu2 %1793 }
 0x334   : > { %v1910_v40 = vperm.slane %v1794_v54, %v6524_v22 }
 0x336   : > { %v1791_v50 = vpop.xlane.xlu1 %1790  ;;  %v1797_v25 = vpop.xlane.xlu0 %1796 }
 0x337   : > { %v1908_v42 = vperm.slane %v1791_v50, %v6785_v41  ;;  %v1911_v30 = vperm.slane %v1797_v25, %v6785_v41 }
 0x339   : > { %v1909_v39 = vsel %vm1899_vm4, %v1908_v42, %v1907_v58  ;;  %v1912_v20 = vsel %vm1899_vm4, %v1911_v30, %v1910_v40 }
 0x33a   : > { %v1951_v38 = vsel %vm1950_vm7, %v1909_v39, %v1949_v12 }
 0x33e   : > { %v1800_v8 = vpop.xlane.xlu1 %1799  ;;  %v1806_v4 = vpop.xlane.xlu0 %1805 }
 0x33f   : > { %v1913_v62 = vperm.slane %v1800_v8, %v6524_v22  ;;  %v1916_v42 = vperm.slane %v1806_v4, %v6524_v22 }
 0x346   : > { %v1803_v1 = vpop.xlane.xlu2 %1802  ;;  %v1809_v57 = vpop.xlane.xlu1 %1808 }
 0x347   : > { %v1914_v50 = vperm.slane %v1803_v1, %v6785_v41  ;;  %v1917_v18 = vperm.slane %v1809_v57, %v6785_v41  ;;  %v1953_v1 = vsel %vm1952_vm8, %v1912_v20, %v1951_v38 }
 0x349   : > { %v1915_v25 = vsel %vm1899_vm4, %v1914_v50, %v1913_v62  ;;  %v1918_v46 = vsel %vm1899_vm4, %v1917_v18, %v1916_v42 }
 0x34a   : > { %v1955_v8 = vsel %vm1954_vm9, %v1915_v25, %v1953_v1 }
 0x34b   : > { %v1957_v11 = vsel %vm1956_vm10, %v1918_v46, %v1955_v8 }
 0x34e   : > { %v1812_v24 = vpop.xlane.xlu2 %1811  ;;  %v1818_v30 = vpop.xlane.xlu1 %1817 }
 0x34f   : > { %v1919_v36 = vperm.slane %v1812_v24, %v6524_v22  ;;  %v1922_v8 = vperm.slane %v1818_v30, %v6524_v22 }
 0x356   : > { %v1815_v54 = vpop.xlane.xlu0 %1814  ;;  %v1821_v39 = vpop.xlane.xlu2 %1820 }
 0x357   : > { %v1920_v58 = vperm.slane %v1815_v54, %v6785_v41  ;;  %v1923_v24 = vperm.slane %v1821_v39, %v6785_v41 }
 0x359   : > { %v1921_v14 = vsel %vm1899_vm4, %v1920_v58, %v1919_v36 }
 0x35a   : > { %v1959_v4 = vsel %vm1958_vm11, %v1921_v14, %v1957_v11  ;;  %v1924_v11 = vsel %vm1899_vm4, %v1923_v24, %v1922_v8 }
 0x35b   : > { %1969 = vxpose.xlu2.b32.start [1/2] (short) (narrow) %v1959_v4, 16 }
 0x35e   : > { %v1824_v57 = vpop.xlane.xlu0 %1823  ;;  %v1830_v40 = vpop.xlane.xlu2 %1829 }
 0x35f   : > { %v1925_v1 = vperm.slane %v1824_v57, %v6524_v22  ;;  %v1928_v14 = vperm.slane %v1830_v40, %v6524_v22 }
 0x366   : > { %v1827_v50 = vpop.xlane.xlu1 %1826  ;;  %v1833_v12 = vpop.xlane.xlu0 %1832 }
 0x367   : > { %v1926_v42 = vperm.slane %v1827_v50, %v6785_v41  ;;  %v1929_v54 = vperm.slane %v1833_v12, %v6785_v41 }
 0x369   : > { %v1927_v36 = vsel %vm1899_vm4, %v1926_v42, %v1925_v1  ;;  %v1930_v39 = vsel %vm1899_vm4, %v1929_v54, %v1928_v14 }
 0x36a   : > { %v1960_v50 = vsel %vm1946_vm5, %v1927_v36, %v1924_v11 }
 0x36b   : > { %v1961_v40 = vsel %vm1948_vm6, %v1930_v39, %v1960_v50 }
 0x36e   : > { %v1836_v62 = vpop.xlane.xlu1 %1835  ;;  %v1842_v20 = vpop.xlane.xlu0 %1841 }
 0x36f   : > { %v1931_v4 = vperm.slane %v1836_v62, %v6524_v22 }
 0x376   : > { %v1839_v38 = vpop.xlane.xlu2 %1838  ;;  %v1845_v18 = vpop.xlane.xlu1 %1844 }
 0x377   : > { %v1932_v58 = vperm.slane %v1839_v38, %v6785_v41  ;;  %v1935_v57 = vperm.slane %v1845_v18, %v6785_v41  ;;  %v1934_v38 = vperm.slane %v1842_v20, %v6524_v22 }
 0x379   : > { %v1933_v49 = vsel %vm1899_vm4, %v1932_v58, %v1931_v4  ;;  %v1936_v62 = vsel %vm1899_vm4, %v1935_v57, %v1934_v38 }
 0x37a   : > { %v1962_v1 = vsel %vm1950_vm7, %v1933_v49, %v1961_v40 }
 0x37b   : > { %v1963_v58 = vsel %vm1952_vm8, %v1936_v62, %v1962_v1 }
 0x37e   : > { %v1848_v25 = vpop.xlane.xlu2 %1847  ;;  %v1854_v12 = vpop.xlane.xlu1 %1853 }
 0x37f   : > { %v1937_v24 = vperm.slane %v1848_v25, %v6524_v22  ;;  %v1940_v8 = vperm.slane %v1854_v12, %v6524_v22 }
 0x386   : > { %v1851_v46 = vpop.xlane.xlu0 %1850  ;;  %v1857_v30 = vpop.xlane.xlu2 %1856 }
 0x387   : > { %v1938_v42 = vperm.slane %v1851_v46, %v6785_v41  ;;  %v1941_v54 = vperm.slane %v1857_v30, %v6785_v41 }
 0x389   : > { %v1939_v18 = vsel %vm1899_vm4, %v1938_v42, %v1937_v24  ;;  %v1942_v20 = vsel %vm1899_vm4, %v1941_v54, %v1940_v8 }
 0x38a   : > { %v1964_v14 = vsel %vm1954_vm9, %v1939_v18, %v1963_v58  ;;  %v5810_v58 = vmov 0  }
 0x38b   : > { %v1965_v4 = vsel %vm1956_vm10, %v1942_v20, %v1964_v14 }
 0x38e   : > { %v1860_v36 = vpop.xlane.xlu0 %1859 }
 0x38f   : > { %v1943_v25 = vperm.slane %v1860_v36, %v6524_v22 }
 0x396   : > { %v1863_v46 = vpop.xlane.xlu1 %1862 }
 0x397   : > { %v1944_v11 = vperm.slane %v1863_v46, %v6785_v41 }
 0x399   : > { %v1945_v49 = vsel %vm1899_vm4, %v1944_v11, %v1943_v25 }
 0x39a   : > { %v1966_v50 = vsel %vm1958_vm11, %v1945_v49, %v1965_v4 }
 0x39b   : > { %1970 = vxpose.xlu2.b32.end [2/2] (short) (narrow) %v1966_v50, 16 }
 0x3fd   : > { %5525 = vset.pattern.permute.xlu2 %v6501_v53 }
 0x42c   : > { %v1985_v39 = vpop.trf.xlu2 }
 0x42d   : > { %v2042_v57 = vperm.slane %v1985_v39, 3  ;;  %v2003_v12 = vperm.slane %v1985_v39, 0  ;;  %v2029_v38 = vperm.slane %v1985_v39, 2  ;;  %v2016_v24 = vperm.slane %v1985_v39, 1 }
 0x42e   : > { %v2055_v62 = vperm.slane %v1985_v39, 4  ;;  %v2081_v1 = vperm.slane %v1985_v39, 6  ;;  %v2068_v54 = vperm.slane %v1985_v39, 5  ;;  %v2094_v18 = vperm.slane %v1985_v39, 7 }
 0x42f   : > { %2053 = vperm.xlu2 %5525, %v2042_v57   ;;  %2014 = vperm.xlu1 %5522, %v2003_v12  }
 0x430   : > { %2008 = vperm.xlu0 %5521, %v2003_v12  }
 0x434   : > { %v6850_v30 = vpop.trf.xlu2 }
 0x435   : > { %v2185_v42 = vperm.slane %v6850_v30, 6  ;;  %v2198_v40 = vperm.slane %v6850_v30, 7  ;;  %v2120_v8 = vperm.slane %v6850_v30, 1  ;;  %v2133_v36 = vperm.slane %v6850_v30, 2 }
 0x436   : > { %v2107_v46 = vperm.slane %v6850_v30, 0  ;;  %v2159_v20 = vperm.slane %v6850_v30, 4  ;;  %v2172_v11 = vperm.slane %v6850_v30, 5 }
 0x437   : > { %5523 = vset.pattern.permute.xlu1 %v6487_v28  ;;  %2196 = vperm.xlu2 %5525, %v2185_v42  }
 0x438   : > { %2034 = vperm.xlu0 %5521, %v2029_v38  }
 0x43f   : > { %2021 = vperm.xlu1 %5523, %v2016_v24   ;;  %2209 = vperm.xlu2 %5525, %v2198_v40  }
 0x440   : > { %2047 = vperm.xlu0 %5521, %v2042_v57  }
 0x447   : > { %5524 = vset.pattern.permute.xlu1 %v6501_v53  ;;  %5542 = vset.pattern.permute.xlu2 %v5810_v58 }
 0x448   : > { %5527 = vset.pattern.permute.xlu0 %v6501_v53 }
 0x44f   : > { %2027 = vperm.xlu1 %5524, %v2016_v24  }
 0x450   : > { %2066 = vperm.xlu0 %5527, %v2055_v62  }
 0x457   : > { %2040 = vperm.xlu1 %5524, %v2029_v38  }
 0x458   : > { %5529 = vset.pattern.permute.xlu0 %v6487_v28 }
 0x45f   : > { %5526 = vset.pattern.permute.xlu1 %v6487_v28 }
 0x460   : > { %2086 = vperm.xlu0 %5529, %v2081_v1  }
 0x467   : > { %2060 = vperm.xlu1 %5526, %v2055_v62  }
 0x468   : > { %5531 = vset.pattern.permute.xlu0 %v6501_v53 }
 0x46f   : > { %2073 = vperm.xlu1 %5526, %v2068_v54  }
 0x470   : > { %2105 = vperm.xlu0 %5531, %v2094_v18  }
 0x477   : > { %5528 = vset.pattern.permute.xlu1 %v6501_v53 }
 0x478   : > { %5533 = vset.pattern.permute.xlu0 %v6487_v28 }
 0x47f   : > { %2079 = vperm.xlu1 %5528, %v2068_v54  }
 0x480   : > { %2125 = vperm.xlu0 %5533, %v2120_v8  }
 0x487   : > { %2092 = vperm.xlu1 %5528, %v2081_v1  }
 0x488   : > { %5535 = vset.pattern.permute.xlu0 %v6501_v53 }
 0x489   : > { %v2054_v12 = vpop.permute.xlu2 %2053 }
 0x48a   : > { %v2250_v24 = vmax.f32 %v6654_v56, %v2054_v12 }
 0x48f   : > { %5530 = vset.pattern.permute.xlu1 %v6487_v28 }
 0x490   : > { %2144 = vperm.xlu0 %5535, %v2133_v36  }
 0x497   : > { %2099 = vperm.xlu1 %5530, %v2094_v18  }
 0x498   : > { %5537 = vset.pattern.permute.xlu0 %v6487_v28 }
 0x49f   : > { %2112 = vperm.xlu1 %5530, %v2107_v46  }
 0x4a0   : > { %2164 = vperm.xlu0 %5537, %v2159_v20  }
 0x4a1   : > { %v2015_v14 = vpop.permute.xlu1 %2014 }
 0x4a2   : > { %v2009_v25 = vpop.permute.xlu0 %2008 }
 0x4a3   : > { %v2243_v50 = vmax.f32 %v6608_v45, %v2009_v25  ;;  %v2146_v45 = vperm.slane %v6850_v30, 3 }
 0x4a7   : > { %5532 = vset.pattern.permute.xlu1 %v6501_v53 }
 0x4a8   : > { %5539 = vset.pattern.permute.xlu0 %v6501_v53 }
 0x4aa   : > { %v2035_v39 = vpop.permute.xlu0 %2034 }
 0x4ab   : > { %v2247_v57 = vmax.f32 %v6638_v26, %v2035_v39 }
 0x4af   : > { %2118 = vperm.xlu1 %5532, %v2107_v46  }
 0x4b0   : > { %2183 = vperm.xlu0 %5539, %v2172_v11  }
 0x4b1   : > { %v2022_v49 = vpop.permute.xlu1 %2021 }
 0x4b2   : > { %v2245_v4 = vmax.f32 %v6632_v32, %v2022_v49 }
 0x4b4   : > { %2314 = vperm.xlu2 %5542, %v2245_v4  }
 0x4b7   : > { %2131 = vperm.xlu1 %5532, %v2120_v8   ;;  %v2048_v8 = vpop.permute.xlu0 %2047 }
 0x4b8   : > { %5540 = vset.pattern.permute.xlu0 %v5810_v58 }
 0x4b9   : > { %2308 = vperm.xlu0 %5540, %v2243_v50   ;;  %v6900_v50 = vpop.permute.xlu2 %2196 }
 0x4bc   : > { %2320 = vperm.xlu2 %5542, %v2247_v57  }
 0x4bf   : > { %5534 = vset.pattern.permute.xlu1 %v6487_v28 }
 0x4c1   : > { %v2028_v38 = vpop.permute.xlu1 %2027  ;;  %v6903_v39 = vpop.permute.xlu2 %2209 }
 0x4c2   : > { %v2067_v25 = vpop.permute.xlu0 %2066 }
 0x4c4   : > { %2329 = vperm.xlu2 %5542, %v2250_v24  }
 0x4c7   : > { %2138 = vperm.xlu1 %5534, %v2133_v36  }
 0x4c9   : > { %v2041_v32 = vpop.permute.xlu1 %2040 }
 0x4ca   : > { %v2248_v62 = vmax.f32 %v6643_v60, %v2041_v32 }
 0x4cc   : > { %2323 = vperm.xlu0 %5540, %v2248_v62  }
 0x4cf   : > { %2151 = vperm.xlu1 %5534, %v2146_v45  }
 0x4d7   : > { %5536 = vset.pattern.permute.xlu1 %v6501_v53 }
 0x4d9   : > { %v2061_v1 = vpop.permute.xlu1 %2060 }
 0x4da   : > { %v2251_v26 = vmax.f32 %v6662_v48, %v2061_v1  ;;  %v2087_v48 = vpop.permute.xlu0 %2086 }
 0x4dc   : > { %2332 = vperm.xlu0 %5540, %v2251_v26  }
 0x4df   : > { %2157 = vperm.xlu1 %5536, %v2146_v45  }
 0x4e1   : > { %v2074_v54 = vpop.permute.xlu1 %2073 }
 0x4e2   : > { %v2253_v18 = vmax.f32 %v6673_v3, %v2074_v54  ;;  %v2106_v49 = vpop.permute.xlu0 %2105 }
 0x4e3   : > { %v2258_v32 = vmax.f32 %v6700_v31, %v2106_v49 }
 0x4e4   : > { %2338 = vperm.xlu2 %5542, %v2253_v18  }
 0x4e7   : > { %2170 = vperm.xlu1 %5536, %v2159_v20  }
 0x4ef   : > { %5538 = vset.pattern.permute.xlu1 %v6487_v28 }
 0x4f1   : > { %v2080_v56 = vpop.permute.xlu1 %2079 }
 0x4f2   : > { %v2254_v60 = vmax.f32 %v6678_v43, %v2080_v56  ;;  %v2244_v43 = vmax.f32 %v6624_v0, %v2015_v14  ;;  %v2126_v4 = vpop.permute.xlu0 %2125 }
 0x4f4   : > { %2341 = vperm.xlu0 %5540, %v2254_v60  }
 0x4f7   : > { %2177 = vperm.xlu1 %5538, %v2172_v11  }
 0x4f9   : > { %v2093_v36 = vpop.permute.xlu1 %2092 }
 0x4fa   : > { %v2256_v46 = vmax.f32 %v6689_v13, %v2093_v36 }
 0x4fc   : > { %2347 = vperm.xlu2 %5542, %v2256_v46  }
 0x4ff   : > { %2190 = vperm.xlu1 %5538, %v2185_v42   ;;  %v2246_v42 = vmax.f32 %v6622_v16, %v2028_v38 }
 0x502   : > { %v2145_v30 = vpop.permute.xlu0 %2144 }
 0x507   : > { %2203 = vperm.xlu1 %5538, %v2198_v40  }
 0x509   : > { %v2100_v3 = vpop.permute.xlu1 %2099 }
 0x50a   : > { %v2257_v20 = vmax.f32 %v6694_v23, %v2100_v3  ;;  %v2249_v23 = vmax.f32 %v6652_v5, %v2048_v8  ;;  %v2255_v5 = vmax.f32 %v6684_v37, %v2087_v48 }
 0x50c   : > { %2350 = vperm.xlu0 %5540, %v2257_v20  }
 0x50e   : > { %v6907_v12 = vpop.permute.xlu2 %2314 }
 0x50f   : > { %5541 = vset.pattern.permute.xlu1 %v5810_v58 }
 0x510   : > { %2311 = vperm.xlu1 %5541, %v2244_v43   ;;  %v2272_v43 = vmax.f32 %v6775_v9, %v6900_v50  ;;  %v2533_v9 = vsub.f32 %v6301_v7, %v6907_v12  ;;  %v8232_v7 = vld [vmem:[#allocation22_spill] sm:$0xff] }
 0x511   : > { %v2113_v13 = vpop.permute.xlu1 %2112 }
 0x512   : > { %v2259_v11 = vmax.f32 %v6708_v34, %v2113_v13  ;;  %v2165_v14 = vpop.permute.xlu0 %2164  ;;  %v2252_v34 = vmax.f32 %v6668_v17, %v2067_v25 }
 0x513   : > { %v2267_v36 = vmax.f32 %v6751_v44, %v2165_v14 }
 0x514   : > { %2356 = vperm.xlu2 %5542, %v2259_v11  }
 0x516   : > { %v6911_v24 = vpop.permute.xlu2 %2320 }
 0x517   : > { %v2535_v17 = vsub.f32 %v6316_v29, %v6911_v24 }
 0x518   : > { %2317 = vperm.xlu1 %5541, %v2246_v42  }
 0x519   : > { %v2571_v1 = vmul.f32 1.442695, %v2535_v17 }
 0x51b   : > { %5575 = vpow2.f32 %v2571_v1 }
 0x51e   : > { %v6959_v42 = vpop.permute.xlu2 %2329 }
 0x520   : > { %2326 = vperm.xlu1 %5541, %v2249_v23   ;;  %v2538_v23 = vsub.f32 %v8232_v7, %v6959_v42 }
 0x521   : > { %v2119_v40 = vpop.permute.xlu1 %2118  ;;  %v6925_v29 = vpop.eup %5575 }
 0x522   : > { %v2260_v0 = vmax.f32 %v6714_v35, %v2119_v40  ;;  %v2184_v38 = vpop.permute.xlu0 %2183  ;;  %v8233_v40 = vld [vmem:[#allocation15_spill] sm:$0xff] }
 0x523   : > { %v2270_v25 = vmax.f32 %v6764_v19, %v2184_v38  ;;  %v2274_v19 = vmax.f32 %v6782_v51, %v6903_v39  ;;  %v2577_v38 = vmul.f32 1.442695, %v2538_v23 }
 0x524   : > { %2359 = vperm.xlu0 %5540, %v2260_v0  }
 0x528   : > { %2335 = vperm.xlu1 %5541, %v2252_v34  }
 0x529   : > { %v2132_v57 = vpop.permute.xlu1 %2131 }
 0x52a   : > { %v2262_v16 = vmax.f32 %v6724_v59, %v2132_v57  ;;  %v2261_v59 = vmax.f32 %v6719_v47, %v2126_v4  ;;  %v3785_v47 = vpack.c.bf16 %v6925_v29, %v6925_v29 }
 0x52b   : > { %v6914_v35 = vpop.permute.xlu0 %2308 }
 0x52c   : > { %2365 = vperm.xlu2 %5542, %v2262_v16   ;;  %v3865_v60 = vunpack.c.l.b16 %v3785_v47  ;;  %v8237_v47 = vld [vmem:[#allocation19_spill] sm:$0xff] }
 0x530   : > { %2344 = vperm.xlu1 %5541, %v2255_v5  }
 0x538   : > { %2353 = vperm.xlu1 %5541, %v2258_v32  }
 0x539   : > { %v2139_v62 = vpop.permute.xlu1 %2138 }
 0x53a   : > { %v2263_v45 = vmax.f32 %v6730_v27, %v2139_v62  ;;  %v2264_v27 = vmax.f32 %v6735_v15, %v2145_v30 }
 0x53c   : > { %2368 = vperm.xlu0 %5540, %v2263_v45   ;;  %v8234_v45 = vld [vmem:[#allocation26_spill] sm:$0xff] }
 0x53e   : > { %v6920_v26 = vpop.permute.xlu0 %2323  ;;  %v6977_v5 = vpop.permute.xlu2 %2338 }
 0x53f   : > { %v2536_v37 = vsub.f32 %v6324_v52, %v6920_v26 }
 0x540   : > { %2362 = vperm.xlu1 %5541, %v2261_v59   ;;  %v8235_v59 = vld [vmem:[#allocation24_spill] sm:$0xff] }
 0x541   : > { %v2573_v31 = vmul.f32 1.442695, %v2536_v37  ;;  %v2152_v54 = vpop.permute.xlu1 %2151  ;;  %v2541_v37 = vsub.f32 %v8235_v59, %v6977_v5 }
 0x542   : > { %v2265_v18 = vmax.f32 %v6744_v55, %v2152_v54 }
 0x543   : > { %5577 = vpow2.f32 %v2573_v31 }
 0x544   : > { %2374 = vperm.xlu2 %5542, %v2265_v18   ;;  %v8236_v18 = vld [vmem:[#allocation20_spill] sm:$0xff] }
 0x548   : > { %2371 = vperm.xlu1 %5541, %v2264_v27  }
 0x549   : > { %v6930_v56 = vpop.eup %5577 }
 0x54a   : > { %v3786_v52 = vpack.c.bf16 %v6930_v56, %v6930_v56 }
 0x54c   : > { %v3866_v8 = vunpack.c.l.b16 %v3786_v52 }
 0x54e   : > { %v3867_v55 = vpack.c.b16 %v3866_v8, %v3865_v60  ;;  %v6957_v51 = vpop.permute.xlu0 %2332 }
 0x54f   : > { %v2539_v27 = vsub.f32 %v8236_v18, %v6957_v51  ;;  %v8244_v18 = vld [vmem:[#allocation32_spill] sm:$0xff] }
 0x550   : > { %2380 = vperm.xlu1 %5541, %v2267_v36   ;;  %5456 = vmatmul.msk.bf16.vlgmr.msra.gmra.mxu2 %vm379_vm0, %v3867_v55 }
 0x551   : > { %4081 = vmatpush.bf16.msra.mxu2 %v6326_v2  ;;  %v2158_v15 = vpop.permute.xlu1 %2157 }
 0x552   : > { %v2266_v46 = vmax.f32 %v6746_v21, %v2158_v15  ;;  %v8238_v15 = vld [vmem:[#allocation11_spill] sm:$0xff] }
 0x554   : > { %2377 = vperm.xlu0 %5540, %v2266_v46   ;;  %v2583_v46 = vmul.f32 1.442695, %v2541_v37 }
 0x558   : > { %2389 = vperm.xlu1 %5541, %v2270_v25  }
 0x559   : > { %v2171_v48 = vpop.permute.xlu1 %2170 }
 0x55a   : > { %v2268_v3 = vmax.f32 %v6760_v6, %v2171_v48  ;;  %v2531_v6 = vsub.f32 %v6292_v61, %v6914_v35  ;;  %v2567_v61 = vmul.f32 1.442695, %v2533_v9 }
 0x55c   : > { %2383 = vperm.xlu2 %5542, %v2268_v3   ;;  %v2579_v3 = vmul.f32 1.442695, %v2539_v27 }
 0x566   : > { %v6973_v57 = vpop.permute.xlu0 %2341 }
 0x567   : > { %v2542_v1 = vsub.f32 %v8234_v45, %v6973_v57 }
 0x569   : > { %v2178_v20 = vpop.permute.xlu1 %2177  ;;  %v2585_v36 = vmul.f32 1.442695, %v2542_v1  ;;  %v8243_v1 = vld [vmem:[#allocation33_spill] sm:$0xff] }
 0x56a   : > { %v2269_v44 = vmax.f32 %v6762_v63, %v2178_v20  ;;  %v2563_v63 = vmul.f32 1.442695, %v2531_v6  ;;  %v6997_v20 = vpop.permute.xlu2 %2347  ;;  %v8240_v6 = vld [vmem:[#allocation23_spill] sm:$0xff] }
 0x56c   : > { %2386 = vperm.xlu0 %5540, %v2269_v44   ;;  %5579 = vpow2.f32 %v2563_v63 }
 0x571   : > { %v2191_v49 = vpop.permute.xlu1 %2190 }
 0x572   : > { %v2271_v2 = vmax.f32 %v6771_v10, %v2191_v49  ;;  %v8231_v10 = vld [vmem:[#allocation14_spill] sm:$0xff]  ;;  %v6961_v50 = vpop.eup %5579 }
 0x573   : > { %v3781_v0 = vpack.c.bf16 %v6961_v50, %v6961_v50 }
 0x574   : > { %2392 = vperm.xlu2 %5542, %v2271_v2   ;;  %2395 = vperm.xlu0 %5540, %v2272_v43  }
 0x575   : > { %v3815_v32 = vunpack.c.l.b16 %v3781_v0  ;;  %v7020_v0 = vpop.permute.xlu2 %2356 }
 0x576   : > { %v2547_v59 = vsub.f32 %v8243_v1, %v7020_v0  ;;  %v8249_v1 = vld [vmem:[#allocation25_spill] sm:$0xff] }
 0x579   : > { %v2204_v21 = vpop.permute.xlu1 %2203 }
 0x57a   : > { %v2273_v13 = vmax.f32 %v6773_v33, %v2204_v21 }
 0x57c   : > { %2398 = vperm.xlu1 %5541, %v2273_v13   ;;  %2401 = vperm.xlu2 %5542, %v2274_v19   ;;  %v8239_v19 = vld [vmem:[#allocation31_spill] sm:$0xff] }
 0x57d   : > { %v2544_v13 = vsub.f32 %v8239_v19, %v6997_v20  ;;  %v2595_v19 = vmul.f32 1.442695, %v2547_v59  ;;  %v8250_v59 = vld [vmem:[#allocation42_spill] sm:$0xff] }
 0x57e   : > { %v6993_v25 = vpop.permute.xlu0 %2350 }
 0x57f   : > { %v2545_v27 = vsub.f32 %v8244_v18, %v6993_v25  ;;  %v2946_v18 = vsel %vm379_vm0, %v6930_v56, 0.0 }
 0x582   : > { %v6949_v11 = vpop.permute.xlu1 %2311 }
 0x583   : > { %v2532_v4 = vsub.f32 %v8231_v10, %v6949_v11 }
 0x584   : > { %5543 = vset.pattern.permute.xlu1 %v6487_v28  ;;  %5544 = vset.pattern.permute.xlu2 %v6501_v53 }
 0x585   : > { %v2565_v33 = vmul.f32 1.442695, %v2532_v4 }
 0x587   : > { %5581 = vpow2.f32 %v2565_v33  ;;  %v8241_v33 = vld [vmem:[#allocation16_spill] sm:$0xff] }
 0x588   : > { %5583 = vpow2.f32 %v2567_v61 }
 0x58a   : > { %v6963_v30 = vpop.permute.xlu1 %2317 }
 0x58b   : > { %v2534_v39 = vsub.f32 %v8233_v40, %v6963_v30 }
 0x58d   : > { %v6971_v14 = vpop.eup %5581  ;;  %v2569_v34 = vmul.f32 1.442695, %v2534_v39  ;;  %v2589_v39 = vmul.f32 1.442695, %v2544_v13 }
 0x58e   : > { %v3782_v16 = vpack.c.bf16 %v6971_v14, %v6971_v14  ;;  %v5584_v62 = vpop.eup %5583 }
 0x58f   : > { %5585 = vpow2.f32 %v2569_v34  ;;  %v3783_v60 = vpack.c.bf16 %v5584_v62, %v5584_v62  ;;  %v2937_v61 = vsel %vm379_vm0, %v5584_v62, 0.0 }
 0x590   : > { %v3816_v17 = vunpack.c.l.b16 %v3782_v16  ;;  %5587 = vpow2.f32 %v2577_v38 }
 0x591   : > { %v3840_v44 = vunpack.c.l.b16 %v3783_v60 }
 0x592   : > { %v6983_v31 = vpop.permute.xlu1 %2326  ;;  %v3817_v54 = vpack.c.b16 %v3816_v17, %v3815_v32  ;;  %v8242_v17 = vld [vmem:[#allocation35_spill] sm:$0xff] }
 0x593   : > { %v2537_v52 = vsub.f32 %v8237_v47, %v6983_v31  ;;  %v8245_v47 = vld [vmem:[#allocation29_spill] sm:$0xff] }
 0x594   : > { %5454 = vmatmul.msk.bf16.vlgmr.msrb.gmra.mxu0 %vm379_vm0, %v3817_v54 }
 0x595   : > { %v6990_v8 = vpop.eup %5585  ;;  %v2575_v55 = vmul.f32 1.442695, %v2537_v52  ;;  %4031 = vmatpush.bf16.msrb.mxu0 %v8238_v15 }
 0x596   : > { %v3784_v48 = vpack.c.bf16 %v6990_v8, %v6990_v8  ;;  %v6999_v43 = vpop.eup %5587  ;;  %v7016_v23 = vpop.permute.xlu0 %2359 }
 0x597   : > { %5589 = vpow2.f32 %v2575_v55  ;;  %v3788_v9 = vpack.c.bf16 %v6999_v43, %v6999_v43  ;;  %v2548_v62 = vsub.f32 %v8242_v17, %v7016_v23  ;;  %v2931_v55 = vsel %vm379_vm0, %v6961_v50, 0.0 }
 0x598   : > { %v3841_v49 = vunpack.c.l.b16 %v3784_v48  ;;  %5591 = vpow2.f32 %v2585_v36  ;;  %v2591_v50 = vmul.f32 1.442695, %v2545_v27 }
 0x599   : > { %5593 = vpow2.f32 %v2583_v46  ;;  %v3891_v16 = vunpack.c.l.b16 %v3788_v9  ;;  %v2597_v46 = vmul.f32 1.442695, %v2548_v62  ;;  %v7049_v9 = vpop.permute.xlu2 %2365 }
 0x59a   : > { %v7001_v2 = vpop.permute.xlu1 %2335  ;;  %v3842_v21 = vpack.c.b16 %v3841_v49, %v3840_v44  ;;  %5595 = vpow2.f32 %v2579_v3  ;;  %v8246_v3 = vld [vmem:[#allocation18_spill] sm:$0xff]  ;;  %v2934_v44 = vsel %vm379_vm0, %v6971_v14, 0.0 }
 0x59b   : > { %v2540_v63 = vsub.f32 %v8240_v6, %v7001_v2 }
 0x59c   : > { %5455 = vmatmul.msk.bf16.vlgmr.msrb.gmra.mxu1 %vm379_vm0, %v3842_v21 }
 0x59d   : > { %v7010_v10 = vpop.eup %5589  ;;  %v2581_v4 = vmul.f32 1.442695, %v2540_v63  ;;  %4056 = vmatpush.bf16.msrb.mxu1 %v8241_v33 }
 0x59e   : > { %v3787_v7 = vpack.c.bf16 %v7010_v10, %v7010_v10  ;;  %2938 = vadd.xlane.f32.xlu0 %v2937_v61  ;;  %v7018_v40 = vpop.eup %5591 }
 0x59f   : > { %5597 = vpow2.f32 %v2581_v4  ;;  %v5594_v34 = vpop.eup %5593  ;;  %v3792_v45 = vpack.c.bf16 %v7018_v40, %v7018_v40 }
 0x5a0   : > { %v3890_v38 = vunpack.c.l.b16 %v3787_v7  ;;  %v7022_v32 = vpop.eup %5595  ;;  %5599 = vpow2.f32 %v2589_v39  ;;  %v3791_v60 = vpack.c.bf16 %v5594_v34, %v5594_v34  ;;  %v2961_v49 = vsel %vm379_vm0, %v5594_v34, 0.0  ;;  %v8247_v39 = vld [vmem:[#allocation37_spill] sm:$0xff] }
 0x5a1   : > { %v3789_v36 = vpack.c.bf16 %v7022_v32, %v7022_v32  ;;  %v3941_v21 = vunpack.c.l.b16 %v3792_v45  ;;  %v2550_v34 = vsub.f32 %v8247_v39, %v7049_v9  ;;  %v2952_v39 = vsel %vm379_vm0, %v6999_v43, 0.0  ;;  %v8254_v43 = vld [vmem:[#allocation44_spill] sm:$0xff] }
 0x5a2   : > { %v3892_v37 = vpack.c.b16 %v3891_v16, %v3890_v38  ;;  %v7030_v54 = vpop.permute.xlu1 %2344  ;;  %v3940_v6 = vunpack.c.l.b16 %v3791_v60  ;;  %v8248_v16 = vld [vmem:[#allocation34_spill] sm:$0xff] }
 0x5a3   : > { %v2543_v52 = vsub.f32 %v8245_v47, %v7030_v54  ;;  %v3915_v63 = vunpack.c.l.b16 %v3789_v36  ;;  %v2601_v60 = vmul.f32 1.442695, %v2550_v34 }
 0x5a4   : > { %5457 = vmatmul.msk.bf16.vlgmr.msra.gmra.mxu3 %vm379_vm0, %v3892_v37  ;;  %v3942_v61 = vpack.c.b16 %v3941_v21, %v3940_v6  ;;  %v2940_v37 = vsel %vm379_vm0, %v6990_v8, 0.0  ;;  %v8251_v21 = vld [vmem:[#allocation38_spill] sm:$0xff] }
 0x5a5   : > { %v7041_v15 = vpop.eup %5597  ;;  %v2587_v48 = vmul.f32 1.442695, %v2543_v52  ;;  %4106 = vmatpush.bf16.msra.mxu3 %v8246_v3  ;;  %2932 = vadd.xlane.f32.xlu2 %v2931_v55 }
 0x5a6   : > { %v3790_v13 = vpack.c.bf16 %v7041_v15, %v7041_v15  ;;  %2935 = vadd.xlane.f32.xlu1 %v2934_v44  ;;  %2962 = vadd.xlane.f32.xlu0 %v2961_v49  ;;  %v5600_v33 = vpop.eup %5599 }
 0x5a7   : > { %5601 = vpow2.f32 %v2587_v48  ;;  %v3794_v17 = vpack.c.bf16 %v5600_v33, %v5600_v33  ;;  %v2970_v47 = vsel %vm379_vm0, %v5600_v33, 0.0 }
 0x5a8   : > { %v3916_v4 = vunpack.c.l.b16 %v3790_v13  ;;  %5603 = vpow2.f32 %v2597_v46  ;;  %v7074_v46 = vpop.permute.xlu2 %2374  ;;  %v8252_v13 = vld [vmem:[#allocation36_spill] sm:$0xff] }
 0x5a9   : > { %5605 = vpow2.f32 %v2595_v19  ;;  %v3966_v55 = vunpack.c.l.b16 %v3794_v17 }
 0x5aa   : > { %v3917_v14 = vpack.c.b16 %v3916_v4, %v3915_v63  ;;  %v7051_v7 = vpop.permute.xlu1 %2353  ;;  %5607 = vpow2.f32 %v2591_v50 }
 0x5ab   : > { %v2546_v38 = vsub.f32 %v8248_v16, %v7051_v7 }
 0x5ac   : > { %5458 = vmatmul.msk.bf16.vlgmr.msra.gmra.mxu0 %vm379_vm0, %v3917_v14  ;;  %5459 = vmatmul.msk.bf16.vlgmr.msra.gmra.mxu1 %vm379_vm0, %v3942_v61  ;;  %v8253_v61 = vld [vmem:[#allocation28_spill] sm:$0xff]  ;;  %v2943_v14 = vsel %vm379_vm0, %v6925_v29, 0.0 }
 0x5ad   : > { %v7059_v62 = vpop.eup %5601  ;;  %v2593_v45 = vmul.f32 1.442695, %v2546_v38  ;;  %4131 = vmatpush.bf16.msra.mxu0 %v8249_v1  ;;  %4156 = vmatpush.bf16.msra.mxu1 %v8250_v59 }
 0x5ae   : > { %v3793_v27 = vpack.c.bf16 %v7059_v62, %v7059_v62  ;;  %2941 = vadd.xlane.f32.xlu2 %v2940_v37  ;;  %2947 = vadd.xlane.f32.xlu1 %v2946_v18  ;;  %v7070_v52 = vpop.eup %5603  ;;  %v7076_v48 = vpop.permute.xlu0 %2368 }
 0x5af   : > { %5609 = vpow2.f32 %v2593_v45  ;;  %2971 = vadd.xlane.f32.xlu0 %v2970_v47  ;;  %v7072_v36 = vpop.eup %5605  ;;  %v3798_v3 = vpack.c.bf16 %v7070_v52, %v7070_v52  ;;  %v2551_v19 = vsub.f32 %v8251_v21, %v7076_v48  ;;  %v8256_v21 = vld [vmem:[#allocation61_spill] sm:$0xff] }
 0x5b0   : > { %v3965_v8 = vunpack.c.l.b16 %v3793_v27  ;;  %v7078_v56 = vpop.eup %5607  ;;  %5611 = vpow2.f32 %v2601_v60  ;;  %v3797_v6 = vpack.c.bf16 %v7072_v36, %v7072_v36  ;;  %v8255_v60 = vld [vmem:[#allocation40_spill] sm:$0xff] }
 0x5b1   : > { %v3795_v63 = vpack.c.bf16 %v7078_v56, %v7078_v56  ;;  %v4016_v34 = vunpack.c.l.b16 %v3798_v3  ;;  %v2603_v38 = vmul.f32 1.442695, %v2551_v19  ;;  %v8257_v19 = vld [vmem:[#allocation3_spill] sm:$0xff] }
 0x5b2   : > { %v3967_v44 = vpack.c.b16 %v3966_v55, %v3965_v8  ;;  %v7082_v49 = vpop.permute.xlu1 %2362  ;;  %v4015_v17 = vunpack.c.l.b16 %v3797_v6  ;;  %v8258_v6 = vld [vmem:[#allocation39_spill] sm:$0xff] }
 0x5b3   : > { %v2549_v50 = vsub.f32 %v8252_v13, %v7082_v49  ;;  %v3990_v45 = vunpack.c.l.b16 %v3795_v63  ;;  %v2949_v13 = vsel %vm379_vm0, %v7010_v10, 0.0  ;;  %v2553_v63 = vsub.f32 %v8258_v6, %v7074_v46 }
 0x5b4   : > { %5460 = vmatmul.msk.bf16.vlgmr.msrb.gmra.mxu2 %vm379_vm0, %v3967_v44  ;;  %v4017_v18 = vpack.c.b16 %v4016_v34, %v4015_v17 }
 0x5b5   : > { %v7093_v4 = vpop.eup %5609  ;;  %v2599_v33 = vmul.f32 1.442695, %v2549_v50  ;;  %4181 = vmatpush.bf16.msrb.mxu2 %v8253_v61  ;;  %v2958_v50 = vsel %vm379_vm0, %v7041_v15, 0.0  ;;  %v8259_v15 = vld [vmem:[#allocation43_spill] sm:$0xff] }
 0x5b6   : > { %v3796_v16 = vpack.c.bf16 %v7093_v4, %v7093_v4  ;;  %2944 = vadd.xlane.f32.xlu2 %v2943_v14  ;;  %2953 = vadd.xlane.f32.xlu1 %v2952_v39  ;;  %v7102_v59 = vpop.permute.xlu2 %2383  ;;  %v7104_v37 = vpop.eup %5611 }
 0x5b7   : > { %5613 = vpow2.f32 %v2599_v33  ;;  %v2556_v47 = vsub.f32 %v8254_v43, %v7102_v59  ;;  %v3800_v8 = vpack.c.bf16 %v7104_v37, %v7104_v37  ;;  %v8260_v43 = vld [vmem:[#allocation4_spill] sm:$0xff] }
 0x5b8   : > { %v3991_v1 = vunpack.c.l.b16 %v3796_v16  ;;  %5615 = vpow2.f32 %v2603_v38  ;;  %v2607_v16 = vmul.f32 1.442695, %v2553_v63 }
 0x5b9   : > { %v2613_v61 = vmul.f32 1.442695, %v2556_v47  ;;  %v4041_v14 = vunpack.c.l.b16 %v3800_v8  ;;  %v2955_v47 = vsel %vm379_vm0, %v7022_v32, 0.0  ;;  %v8261_v32 = vld [vmem:[#allocation41_spill] sm:$0xff] }
 0x5ba   : > { %v3992_v29 = vpack.c.b16 %v3991_v1, %v3990_v45  ;;  %v7106_v27 = vpop.permute.xlu1 %2371 }
 0x5bb   : > { %v2552_v55 = vsub.f32 %v8255_v60, %v7106_v27  ;;  %v2967_v60 = vsel %vm379_vm0, %v7059_v62, 0.0 }
 0x5bc   : > { %5461 = vmatmul.msk.bf16.vlgmr.msrb.gmra.mxu3 %vm379_vm0, %v3992_v29  ;;  %5462 = vmatmul.msk.bf16.vlgmr.msrb.gmra.mxu0 %vm379_vm0, %v4017_v18  ;;  %v2407_v18 = vperm.slane %v6963_v30, %v6785_v41  ;;  %v2406_v30 = vperm.slane %v6907_v12, %v6524_v22  ;;  %v2410_v12 = vperm.slane %v6920_v26, %v6785_v41 }
 0x5bd   : > { %v7116_v3 = vpop.eup %5613  ;;  %v2605_v44 = vmul.f32 1.442695, %v2552_v55  ;;  %4206 = vmatpush.bf16.msrb.mxu3 %v8256_v21  ;;  %4263 = vmatpush.bf16.msrb.mxu0 %v8257_v19 }
 0x5be   : > { %v3799_v33 = vpack.c.bf16 %v7116_v3, %v7116_v3  ;;  %2950 = vadd.xlane.f32.xlu2 %v2949_v13  ;;  %2959 = vadd.xlane.f32.xlu1 %v2958_v50  ;;  %v7128_v34 = vpop.eup %5615  ;;  %v2403_v50 = vperm.slane %v6914_v35, %v6524_v22  ;;  %v2408_v6 = vsel %vm1899_vm4, %v2407_v18, %v2406_v30 }
 0x5bf   : > { %5617 = vpow2.f32 %v2605_v44  ;;  %v3801_v45 = vpack.c.bf16 %v7128_v34, %v7128_v34  ;;  %v2404_v44 = vperm.slane %v6949_v11, %v6785_v41  ;;  %v2412_v11 = vperm.slane %v6983_v31, %v6524_v22 }
 0x5c0   : > { %v4040_v39 = vunpack.c.l.b16 %v3799_v33  ;;  %5619 = vpow2.f32 %v2613_v61  ;;  %v2409_v35 = vperm.slane %v6911_v24, %v6524_v22  ;;  %v2964_v24 = vsel %vm379_vm0, %v7018_v40, 0.0 }
 0x5c1   : > { %5621 = vpow2.f32 %v2607_v16  ;;  %v4065_v19 = vunpack.c.l.b16 %v3801_v45  ;;  %v2405_v61 = vsel %vm1899_vm4, %v2404_v44, %v2403_v50  ;;  %v2413_v16 = vperm.slane %v6959_v42, %v6785_v41 }
 0x5c2   : > { %v4042_v38 = vpack.c.b16 %v4041_v14, %v4040_v39  ;;  %v7130_v10 = vpop.permute.xlu1 %2380  ;;  %v2416_v14 = vperm.slane %v7001_v2, %v6785_v41  ;;  %v2451_v26 = vsel %vm1946_vm5, %v2408_v6, %v2405_v61  ;;  %v2415_v2 = vperm.slane %v6957_v51, %v6524_v22 }
 0x5c3   : > { %v2555_v17 = vsub.f32 %v8259_v15, %v7130_v10  ;;  %v8262_v15 = vld [vmem:[#allocation5_spill] sm:$0xff]  ;;  %v2976_v42 = vsel %vm379_vm0, %v7093_v4, 0.0  ;;  %v2414_v45 = vsel %vm1899_vm4, %v2413_v16, %v2412_v11  ;;  %v2419_v51 = vperm.slane %v6973_v57, %v6785_v41 }
 0x5c4   : > { %5463 = vmatmul.msk.bf16.vlgmr.msrb.gmra.mxu1 %vm379_vm0, %v4042_v38  ;;  %v2421_v40 = vperm.slane %v7030_v54, %v6524_v22  ;;  %v2418_v57 = vperm.slane %v6977_v5, %v6524_v22  ;;  %v2422_v44 = vperm.slane %v6997_v20, %v6785_v41  ;;  %v2424_v54 = vperm.slane %v6993_v25, %v6524_v22 }
 0x5c5   : > { %v7137_v1 = vpop.eup %5617  ;;  %v2611_v29 = vmul.f32 1.442695, %v2555_v17  ;;  %4288 = vmatpush.bf16.msrb.mxu1 %v8260_v43  ;;  %v2411_v17 = vsel %vm1899_vm4, %v2410_v12, %v2409_v35  ;;  %v2417_v43 = vsel %vm1899_vm4, %v2416_v14, %v2415_v2  ;;  %v8263_v12 = vld [vmem:[#allocation7_spill] sm:$0xff]  ;;  %v2973_v25 = vsel %vm379_vm0, %v7078_v56, 0.0  ;;  %v8264_v35 = vld [vmem:[#allocation48_spill] sm:$0xff] }
 0x5c6   : > { %v3802_v55 = vpack.c.bf16 %v7137_v1, %v7137_v1  ;;  %2956 = vadd.xlane.f32.xlu2 %v2955_v47  ;;  %v7148_v8 = vpop.permute.xlu0 %2377  ;;  %2968 = vadd.xlane.f32.xlu1 %v2967_v60  ;;  %v7156_v13 = vpop.eup %5619  ;;  %v2425_v47 = vperm.slane %v7051_v7, %v6785_v41  ;;  %v2420_v50 = vsel %vm1899_vm4, %v2419_v51, %v2418_v57  ;;  %v2985_v11 = vsel %vm379_vm0, %v7116_v3, 0.0 }
 0x5c7   : > { %5623 = vpow2.f32 %v2611_v29  ;;  %v2554_v21 = vsub.f32 %v8261_v32, %v7148_v8  ;;  %v7168_v39 = vpop.eup %5621  ;;  %v3806_v31 = vpack.c.bf16 %v7156_v13, %v7156_v13  ;;  %v2452_v29 = vsel %vm1948_vm6, %v2411_v17, %v2451_v26 }
 0x5c8   : > { %v4066_v62 = vunpack.c.l.b16 %v3802_v55  ;;  %v3803_v4 = vpack.c.bf16 %v7168_v39, %v7168_v39  ;;  %v2453_v32 = vsel %vm1950_vm7, %v2414_v45, %v2452_v29  ;;  %v2426_v20 = vsel %vm1899_vm4, %v2425_v47, %v2424_v54  ;;  %v8267_v45 = vld [vmem:[#allocation46_spill] sm:$0xff] }
 0x5c9   : > { %v2609_v63 = vmul.f32 1.442695, %v2554_v21  ;;  %v4116_v60 = vunpack.c.l.b16 %v3806_v31  ;;  %v2454_v7 = vsel %vm1952_vm8, %v2417_v43, %v2453_v32  ;;  %v8265_v31 = vld [vmem:[#allocation6_spill] sm:$0xff]  ;;  %v2982_v2 = vsel %vm379_vm0, %v7070_v52, 0.0 }
 0x5ca   : > { %v4067_v33 = vpack.c.b16 %v4066_v62, %v4065_v19  ;;  %v2423_v62 = vsel %vm1899_vm4, %v2422_v44, %v2421_v40  ;;  %v4090_v6 = vunpack.c.l.b16 %v3803_v4  ;;  %v2430_v29 = vperm.slane %v7082_v49, %v6524_v22 }
 0x5cb   : > { %5625 = vpow2.f32 %v2609_v63  ;;  %v7215_v63 = vpop.permute.xlu1 %2389  ;;  %v2434_v43 = vperm.slane %v7106_v27, %v6785_v41  ;;  %v2428_v40 = vperm.slane %v7016_v23, %v6785_v41  ;;  %v2437_v4 = vperm.slane %v7148_v8, %v6785_v41 }
 0x5cc   : > { %5464 = vmatmul.msk.bf16.vlgmr.msra.gmra.mxu2 %vm379_vm0, %v4067_v33  ;;  %v2455_v33 = vsel %vm1954_vm9, %v2420_v50, %v2454_v7  ;;  %v2558_v16 = vsub.f32 %v8264_v35, %v7215_v63  ;;  %v2991_v49 = vsel %vm379_vm0, %v7128_v34, 0.0  ;;  %v2436_v23 = vperm.slane %v7074_v46, %v6524_v22  ;;  %v8269_v34 = vld [vmem:[#allocation49_spill] sm:$0xff] }
 0x5cd   : > { %v7178_v38 = vpop.eup %5623  ;;  %4313 = vmatpush.bf16.msra.mxu2 %v8262_v15  ;;  %v2456_v14 = vsel %vm1956_vm10, %v2423_v62, %v2455_v33  ;;  %v2994_v15 = vsel %vm379_vm0, %v7137_v1, 0.0  ;;  %v2431_v1 = vperm.slane %v7049_v9, %v6785_v41  ;;  %v2427_v9 = vperm.slane %v7020_v0, %v6524_v22 }
 0x5ce   : > { %v3805_v18 = vpack.c.bf16 %v7178_v38, %v7178_v38  ;;  %2965 = vadd.xlane.f32.xlu2 %v2964_v24  ;;  %2977 = vadd.xlane.f32.xlu1 %v2976_v42  ;;  %v2457_v26 = vsel %vm1958_vm11, %v2426_v20, %v2456_v14  ;;  %v7231_v56 = vpop.permute.xlu2 %2392  ;;  %v2617_v3 = vmul.f32 1.442695, %v2558_v16  ;;  %v8266_v42 = vld [vmem:[#allocation47_spill] sm:$0xff]  ;;  %v3003_v27 = vsel %vm379_vm0, %v7178_v38, 0.0 }
 0x5cf   : > { %v2559_v17 = vsub.f32 %v8266_v42, %v7231_v56  ;;  %v2432_v57 = vsel %vm1899_vm4, %v2431_v1, %v2430_v29  ;;  %v2429_v38 = vsel %vm1899_vm4, %v2428_v40, %v2427_v9  ;;  %v2439_v7 = vperm.slane %v7130_v10, %v6524_v22  ;;  %v8270_v42 = vld [vmem:[#allocation51_spill] sm:$0xff]  ;;  %v8271_v29 = vld [vmem:[#allocation8_spill] sm:$0xff] }
 0x5d0   : > { %v4115_v55 = vunpack.c.l.b16 %v3805_v18  ;;  %5627 = vpow2.f32 %v2617_v3  ;;  %v2458_v46 = vsel %vm1946_vm5, %v2432_v57, %v2429_v38  ;;  %v2445_v10 = vperm.slane %v7231_v56, %v6524_v22 }
 0x5d1   : > { %v7201_v30 = vpop.eup %5625  ;;  %v2619_v52 = vmul.f32 1.442695, %v2559_v17  ;;  %v2979_v38 = vsel %vm379_vm0, %v7072_v36, 0.0 }
 0x5d2   : > { %v4117_v21 = vpack.c.b16 %v4116_v60, %v4115_v55  ;;  %v3804_v19 = vpack.c.bf16 %v7201_v30, %v7201_v30  ;;  %v2433_v55 = vperm.slane %v7076_v48, %v6524_v22  ;;  %v8268_v48 = vld [vmem:[#allocation53_spill] sm:$0xff] }
 0x5d4   : > { %v4091_v5 = vunpack.c.l.b16 %v3804_v19  ;;  %5466 = vmatmul.msk.bf16.vlgmr.msra.gmra.mxu0 %vm379_vm0, %v4117_v21  ;;  %v2435_v44 = vsel %vm1899_vm4, %v2434_v43, %v2433_v55  ;;  %v2438_v21 = vsel %vm1899_vm4, %v2437_v4, %v2436_v23  ;;  %v8272_v23 = vld [vmem:[#allocation9_spill] sm:$0xff] }
 0x5d5   : > { %4363 = vmatpush.bf16.msra.mxu0 %v8263_v12 }
 0x5d6   : > { %v4092_v61 = vpack.c.b16 %v4091_v5, %v4090_v6  ;;  %2974 = vadd.xlane.f32.xlu2 %v2973_v25  ;;  %2986 = vadd.xlane.f32.xlu1 %v2985_v11  ;;  %v2402_v47 = vpop.permute.xlu2 %2401  ;;  %v5628_v60 = vpop.eup %5627  ;;  %v2440_v6 = vperm.slane %v7102_v59, %v6785_v41  ;;  %v2459_v5 = vsel %vm1948_vm6, %v2435_v44, %v2458_v46 }
 0x5d7   : > { %v2562_v32 = vsub.f32 %v8268_v48, %v2402_v47  ;;  %v3808_v0 = vpack.c.bf16 %v5628_v60, %v5628_v60  ;;  %v2460_v25 = vsel %vm1950_vm7, %v2438_v21, %v2459_v5  ;;  %v2443_v11 = vperm.slane %v7215_v63, %v6785_v41 }
 0x5d8   : > { %2467 = vxpose.xlu0.b32.start [1/2] (short) (narrow) %v2457_v26, 16  ;;  %5465 = vmatmul.msk.bf16.vlgmr.msra.gmra.mxu3 %vm379_vm0, %v4092_v61  ;;  %v2441_v59 = vsel %vm1899_vm4, %v2440_v6, %v2439_v7  ;;  %v3000_v26 = vsel %vm379_vm0, %v7201_v30, 0.0  ;;  %v2449_v56 = vperm.slane %v2402_v47, %v6785_v41  ;;  %v2988_v21 = vsel %vm379_vm0, %v7104_v37, 0.0 }
 0x5d9   : > { %4338 = vmatpush.bf16.msra.mxu3 %v8265_v31  ;;  %v2625_v33 = vmul.f32 1.442695, %v2562_v32  ;;  %v4141_v61 = vunpack.c.l.b16 %v3808_v0  ;;  %v3012_v31 = vsel %vm379_vm0, %v5628_v60, 0.0  ;;  %v3006_v7 = vsel %vm379_vm0, %v7156_v13, 0.0 }
 0x5de   : > { %2983 = vadd.xlane.f32.xlu2 %v2982_v2  ;;  %v2387_v24 = vpop.permute.xlu0 %2386  ;;  %2995 = vadd.xlane.f32.xlu1 %v2994_v15  ;;  %v2461_v15 = vsel %vm1952_vm8, %v2441_v59, %v2460_v25 }
 0x5df   : > { %v2557_v18 = vsub.f32 %v8267_v45, %v2387_v24  ;;  %v2442_v62 = vperm.slane %v2387_v24, %v6524_v22 }
 0x5e1   : > { %v2615_v51 = vmul.f32 1.442695, %v2557_v18  ;;  %v2444_v16 = vsel %vm1899_vm4, %v2443_v11, %v2442_v62 }
 0x5e2   : > { %v2462_v30 = vsel %vm1954_vm9, %v2444_v16, %v2461_v15 }
 0x5e3   : > { %5629 = vpow2.f32 %v2615_v51 }
 0x5e4   : > { %5631 = vpow2.f32 %v2619_v52 }
 0x5e6   : > { %2992 = vadd.xlane.f32.xlu2 %v2991_v49  ;;  %v2396_v8 = vpop.permute.xlu0 %2395  ;;  %3004 = vadd.xlane.f32.xlu1 %v3003_v27 }
 0x5e7   : > { %v2560_v54 = vsub.f32 %v8269_v34, %v2396_v8  ;;  %v2446_v12 = vperm.slane %v2396_v8, %v6785_v41 }
 0x5e9   : > { %v5630_v19 = vpop.eup %5629  ;;  %v2621_v50 = vmul.f32 1.442695, %v2560_v54  ;;  %v2447_v2 = vsel %vm1899_vm4, %v2446_v12, %v2445_v10  ;;  %v8273_v54 = vld [vmem:[#allocation10_spill] sm:$0xff] }
 0x5ea   : > { %v3807_v20 = vpack.c.bf16 %v5630_v19, %v5630_v19  ;;  %v5632_v35 = vpop.eup %5631  ;;  %v2463_v52 = vsel %vm1956_vm10, %v2447_v2, %v2462_v30  ;;  %v3009_v55 = vsel %vm379_vm0, %v5630_v19, 0.0  ;;  %v2997_v19 = vsel %vm379_vm0, %v7168_v39, 0.0 }
 0x5eb   : > { %5633 = vpow2.f32 %v2621_v50  ;;  %v3809_v45 = vpack.c.bf16 %v5632_v35, %v5632_v35  ;;  %v3015_v50 = vsel %vm379_vm0, %v5632_v35, 0.0 }
 0x5ec   : > { %v4140_v14 = vunpack.c.l.b16 %v3807_v20  ;;  %5635 = vpow2.f32 %v2625_v33 }
 0x5ed   : > { %v4165_v4 = vunpack.c.l.b16 %v3809_v45 }
 0x5ee   : > { %v4142_v3 = vpack.c.b16 %v4141_v61, %v4140_v14  ;;  %3001 = vadd.xlane.f32.xlu2 %v3000_v26  ;;  %v2399_v63 = vpop.permute.xlu1 %2398  ;;  %3013 = vadd.xlane.f32.xlu1 %v3012_v31 }
 0x5ef   : > { %v2448_v24 = vperm.slane %v2399_v63, %v6524_v22  ;;  %v2561_v17 = vsub.f32 %v8270_v42, %v2399_v63 }
 0x5f0   : > { %5467 = vmatmul.msk.bf16.vlgmr.msra.gmra.mxu1 %vm379_vm0, %v4142_v3 }
 0x5f1   : > { %v5634_v18 = vpop.eup %5633  ;;  %v2623_v51 = vmul.f32 1.442695, %v2561_v17  ;;  %4388 = vmatpush.bf16.msra.mxu1 %v8271_v29  ;;  %v2450_v43 = vsel %vm1899_vm4, %v2449_v56, %v2448_v24 }
 0x5f2   : > { %v3810_v1 = vpack.c.bf16 %v5634_v18, %v5634_v18  ;;  %v2464_v40 = vsel %vm1958_vm11, %v2450_v43, %v2463_v52  ;;  %v5636_v60 = vpop.eup %5635  ;;  %v3018_v32 = vsel %vm379_vm0, %v5634_v18, 0.0 }
 0x5f3   : > { %5637 = vpow2.f32 %v2623_v51  ;;  %2468 = vxpose.xlu0.b32.end [2/2] (short) (narrow) %v2464_v40, 16  ;;  %v3812_v27 = vpack.c.bf16 %v5636_v60, %v5636_v60  ;;  %v3024_v39 = vsel %vm379_vm0, %v5636_v60, 0.0 }
 0x5f4   : > { %v4166_v47 = vunpack.c.l.b16 %v3810_v1 }
 0x5f5   : > { %v4191_v44 = vunpack.c.l.b16 %v3812_v27 }
 0x5f6   : > { %v4167_v49 = vpack.c.b16 %v4166_v47, %v4165_v4  ;;  %3010 = vadd.xlane.f32.xlu2 %v3009_v55 }
 0x5f8   : > { %5468 = vmatmul.msk.bf16.vlgmr.msrb.gmra.mxu2 %vm379_vm0, %v4167_v49 }
 0x5f9   : > { %v5638_v9 = vpop.eup %5637  ;;  %4413 = vmatpush.bf16.msrb.mxu2 %v8272_v23  ;;  %v8274_v23 = vld [vmem:[#allocation52_spill] sm:$0xff] }
 0x5fa   : > { %v3811_v57 = vpack.c.bf16 %v5638_v9, %v5638_v9  ;;  %v3021_v8 = vsel %vm379_vm0, %v5638_v9, 0.0 }
 0x5fb   : > { %3022 = vadd.xlane.f32.xlu1 %v3021_v8 }
 0x5fc   : > { %v4190_v48 = vunpack.c.l.b16 %v3811_v57 }
 0x5fe   : > { %v4192_v34 = vpack.c.b16 %v4191_v44, %v4190_v48  ;;  %3019 = vadd.xlane.f32.xlu2 %v3018_v32 }
 0x600   : > { %5469 = vmatmul.msk.bf16.vlgmr.msrb.gmra.mxu3 %vm379_vm0, %v4192_v34 }
 0x601   : > { %4438 = vmatpush.bf16.msrb.mxu3 %v8273_v54  ;;  %v8275_v54 = vld [vmem:[#allocation57_spill] sm:$0xff] }
 0x611   : > { %v7307_v0 = vpop.xlane.xlu0 %2938 }
 0x618   : > { %v7311_v46 = vpop.xlane.xlu2 %2932 }
 0x619   : > { %v7315_v62 = vpop.xlane.xlu0 %2962  ;;  %v7327_v25 = vpop.xlane.xlu1 %2935 }
 0x621   : > { %v7317_v36 = vpop.xlane.xlu2 %2941  ;;  %v7331_v10 = vpop.xlane.xlu1 %2947 }
 0x622   : > { %v7320_v37 = vpop.xlane.xlu0 %2971 }
 0x629   : > { %v7322_v6 = vpop.xlane.xlu2 %2944  ;;  %v7335_v59 = vpop.xlane.xlu1 %2953 }
 0x631   : > { %v7325_v13 = vpop.xlane.xlu2 %2950  ;;  %v7339_v31 = vpop.xlane.xlu1 %2959 }
 0x639   : > { %v7329_v11 = vpop.xlane.xlu2 %2956  ;;  %v7343_v2 = vpop.xlane.xlu1 %2968 }
 0x641   : > { %v7333_v14 = vpop.xlane.xlu2 %2965  ;;  %v7351_v42 = vpop.xlane.xlu1 %2977 }
 0x649   : > { %v7337_v26 = vpop.xlane.xlu2 %2974  ;;  %v7356_v30 = vpop.xlane.xlu1 %2986 }
 0x651   : > { %v7341_v63 = vpop.xlane.xlu2 %2983  ;;  %v7361_v29 = vpop.xlane.xlu1 %2995 }
 0x659   : > { %v7347_v15 = vpop.xlane.xlu2 %2992  ;;  %v7367_v40 = vpop.xlane.xlu1 %3004 }
 0x65a   : > { %5545 = vset.pattern.permute.xlu0 %v6487_v28 }
 0x661   : > { %v7354_v45 = vpop.xlane.xlu2 %3001  ;;  %v7370_v60 = vpop.xlane.xlu1 %3013 }
 0x664   : > { %2980 = vadd.xlane.f32.xlu0 %v2979_v38 }
 0x669   : > { %v7359_v51 = vpop.xlane.xlu2 %3010 }
 0x66c   : > { %2989 = vadd.xlane.f32.xlu0 %v2988_v21  ;;  %v8276_v21 = vld [vmem:[#allocation50_spill] sm:$0xff] }
 0x66e   : > { %v7375_v9 = vpop.xlane.xlu1 %3022 }
 0x671   : > { %v7364_v52 = vpop.xlane.xlu2 %3019 }
 0x674   : > { %2998 = vadd.xlane.f32.xlu0 %v2997_v19 }
 0x67c   : > { %3007 = vadd.xlane.f32.xlu0 %v3006_v7 }
 0x684   : > { %3016 = vadd.xlane.f32.xlu0 %v3015_v50 }
 0x68c   : > { %3025 = vadd.xlane.f32.xlu0 %v3024_v39 }
 0x68f   : > { %v2483_v5 = vpop.trf.xlu0 }
 0x690   : > { %v2627_v20 = vperm.slane %v2483_v5, 0  ;;  %v2640_v12 = vperm.slane %v2483_v5, 1  ;;  %v2705_v33 = vperm.slane %v2483_v5, 6  ;;  %v2653_v61 = vperm.slane %v2483_v5, 2 }
 0x691   : > { %v2666_v35 = vperm.slane %v2483_v5, 3  ;;  %v2679_v16 = vperm.slane %v2483_v5, 4  ;;  %v2692_v3 = vperm.slane %v2483_v5, 5  ;;  %v2718_v56 = vperm.slane %v2483_v5, 7 }
 0x692   : > { %2638 = vperm.xlu2 %5544, %v2627_v20   ;;  %2632 = vperm.xlu1 %5543, %v2627_v20  }
 0x697   : > { %v7349_v24 = vpop.trf.xlu0 }
 0x698   : > { %v2731_v17 = vperm.slane %v7349_v24, 0  ;;  %v2744_v18 = vperm.slane %v7349_v24, 1  ;;  %v2757_v43 = vperm.slane %v7349_v24, 2  ;;  %v2770_v1 = vperm.slane %v7349_v24, 3 }
 0x699   : > { %v2783_v47 = vperm.slane %v7349_v24, 4  ;;  %v2796_v27 = vperm.slane %v7349_v24, 5  ;;  %v2809_v44 = vperm.slane %v7349_v24, 6  ;;  %v2822_v39 = vperm.slane %v7349_v24, 7 }
 0x69a   : > { %2651 = vperm.xlu2 %5544, %v2640_v12   ;;  %2645 = vperm.xlu1 %5543, %v2640_v12  }
 0x6a0   : > { %2710 = vperm.xlu0 %5545, %v2705_v33  }
 0x6a2   : > { %2664 = vperm.xlu2 %5544, %v2653_v61   ;;  %2658 = vperm.xlu1 %5543, %v2653_v61   ;;  %v8277_v61 = vld [vmem:[#allocation56_spill] sm:$0xff] }
 0x6aa   : > { %2677 = vperm.xlu2 %5544, %v2666_v35   ;;  %2671 = vperm.xlu1 %5543, %v2666_v35  }
 0x6b2   : > { %2690 = vperm.xlu2 %5544, %v2679_v16   ;;  %2684 = vperm.xlu1 %5543, %v2679_v16   ;;  %v8278_v16 = vld [vmem:[#allocation55_spill] sm:$0xff] }
 0x6ba   : > { %2703 = vperm.xlu2 %5544, %v2692_v3   ;;  %2697 = vperm.xlu1 %5543, %v2692_v3  }
 0x6c2   : > { %5547 = vset.pattern.permute.xlu2 %v6487_v28  ;;  %5546 = vset.pattern.permute.xlu1 %v6501_v53 }
 0x6ca   : > { %2723 = vperm.xlu2 %5547, %v2718_v56   ;;  %2716 = vperm.xlu1 %5546, %v2705_v33  }
 0x6d2   : > { %2729 = vperm.xlu1 %5546, %v2718_v56   ;;  %2736 = vperm.xlu2 %5547, %v2731_v17  }
 0x6d7   : > { %v7372_v49 = vpop.xlane.xlu0 %2980 }
 0x6da   : > { %2742 = vperm.xlu1 %5546, %v2731_v17   ;;  %2749 = vperm.xlu2 %5547, %v2744_v18  }
 0x6df   : > { %v7379_v32 = vpop.xlane.xlu0 %2989 }
 0x6e2   : > { %2755 = vperm.xlu1 %5546, %v2744_v18   ;;  %2762 = vperm.xlu2 %5547, %v2757_v43  }
 0x6e7   : > { %v7386_v12 = vpop.xlane.xlu0 %2998 }
 0x6ea   : > { %2768 = vperm.xlu1 %5546, %v2757_v43   ;;  %2775 = vperm.xlu2 %5547, %v2770_v1  }
 0x6ec   : > { %v2639_v4 = vpop.permute.xlu2 %2638 }
 0x6ed   : > { %v2836_v57 = vsub.f32 %v8274_v23, %v2639_v4 }
 0x6ef   : > { %v2869_v48 = vmul.f32 1.442695, %v2836_v57  ;;  %v8279_v57 = vld [vmem:[#allocation62_spill] sm:$0xff] }
 0x6f1   : > { %5639 = vpow2.f32 %v2869_v48 }
 0x6f2   : > { %2781 = vperm.xlu1 %5546, %v2770_v1   ;;  %2788 = vperm.xlu2 %5547, %v2783_v47  }
 0x6f4   : > { %v2652_v55 = vpop.permute.xlu2 %2651 }
 0x6f5   : > { %v2838_v38 = vsub.f32 %v8275_v54, %v2652_v55 }
 0x6f7   : > { %v2873_v5 = vmul.f32 1.442695, %v2838_v38  ;;  %v7384_v20 = vpop.eup %5639 }
 0x6f8   : > { %v4214_v56 = vpack.c.bf16 %v7384_v20, %v7384_v20 }
 0x6fa   : > { %2794 = vperm.xlu1 %5546, %v2783_v47   ;;  %2801 = vperm.xlu2 %5547, %v2796_v27   ;;  %v4248_v1 = vunpack.c.l.b16 %v4214_v56  ;;  %v8282_v56 = vld [vmem:[#allocation60_spill] sm:$0xff] }
 0x6fc   : > { %v2665_v8 = vpop.permute.xlu2 %2664 }
 0x6fd   : > { %v2840_v35 = vsub.f32 %v8277_v61, %v2665_v8 }
 0x6ff   : > { %v2877_v43 = vmul.f32 1.442695, %v2840_v35 }
 0x702   : > { %2807 = vperm.xlu1 %5546, %v2796_v27   ;;  %2814 = vperm.xlu2 %5547, %v2809_v44  }
 0x704   : > { %v2633_v34 = vpop.permute.xlu1 %2632  ;;  %v2678_v50 = vpop.permute.xlu2 %2677 }
 0x705   : > { %v2835_v19 = vsub.f32 %v8276_v21, %v2633_v34  ;;  %v2842_v8 = vsub.f32 %v8279_v57, %v2678_v50  ;;  %v7400_v34 = vpop.xlane.xlu0 %3007 }
 0x707   : > { %v2867_v7 = vmul.f32 1.442695, %v2835_v19  ;;  %v8281_v19 = vld [vmem:[#allocation12_spill] sm:$0xff] }
 0x709   : > { %5641 = vpow2.f32 %v2867_v7 }
 0x70a   : > { %2820 = vperm.xlu1 %5546, %v2809_v44   ;;  %2827 = vperm.xlu2 %5547, %v2822_v39   ;;  %5643 = vpow2.f32 %v2873_v5  ;;  %v8280_v44 = vld [vmem:[#allocation54_spill] sm:$0xff]  ;;  %v2881_v5 = vmul.f32 1.442695, %v2842_v8 }
 0x70c   : > { %v2646_v33 = vpop.permute.xlu1 %2645  ;;  %v2691_v47 = vpop.permute.xlu2 %2690 }
 0x70d   : > { %v2837_v3 = vsub.f32 %v8278_v16, %v2646_v33  ;;  %v7413_v57 = vpop.xlane.xlu0 %3016 }
 0x70f   : > { %v7392_v17 = vpop.eup %5641  ;;  %v2871_v24 = vmul.f32 1.442695, %v2837_v3 }
 0x710   : > { %v4213_v18 = vpack.c.bf16 %v7392_v17, %v7392_v17  ;;  %v7396_v55 = vpop.eup %5643 }
 0x711   : > { %5645 = vpow2.f32 %v2871_v24  ;;  %v4216_v54 = vpack.c.bf16 %v7396_v55, %v7396_v55  ;;  %v2844_v24 = vsub.f32 %v8282_v56, %v2691_v47  ;;  %v8287_v56 = vld [vmem:[#allocation17_spill] sm:$0xff] }
 0x712   : > { %v4247_v4 = vunpack.c.l.b16 %v4213_v18  ;;  %2833 = vperm.xlu1 %5546, %v2822_v39   ;;  %5647 = vpow2.f32 %v2877_v43  ;;  %v8283_v18 = vld [vmem:[#allocation59_spill] sm:$0xff] }
 0x713   : > { %v4273_v50 = vunpack.c.l.b16 %v4216_v54 }
 0x714   : > { %v4249_v27 = vpack.c.b16 %v4248_v1, %v4247_v4  ;;  %v2659_v23 = vpop.permute.xlu1 %2658  ;;  %v2704_v16 = vpop.permute.xlu2 %2703 }
 0x715   : > { %v2839_v48 = vsub.f32 %v8280_v44, %v2659_v23  ;;  %v8284_v23 = vld [vmem:[#allocation13_spill] sm:$0xff] }
 0x716   : > { %5470 = vmatmul.msk.bf16.vlgmr.msrb.gmra.mxu0 %vm379_vm0, %v4249_v27 }
 0x717   : > { %v5646_v38 = vpop.eup %5645  ;;  %v2875_v21 = vmul.f32 1.442695, %v2839_v48  ;;  %4463 = vmatpush.bf16.msrb.mxu0 %v8281_v19  ;;  %v2885_v48 = vmul.f32 1.442695, %v2844_v24 }
 0x718   : > { %v4215_v7 = vpack.c.bf16 %v5646_v38, %v5646_v38  ;;  %v3033_v39 = vsel %vm379_vm0, %v5646_v38, 0.0  ;;  %v5648_v61 = vpop.eup %5647 }
 0x719   : > { %5649 = vpow2.f32 %v2875_v21  ;;  %3034 = vadd.xlane.f32.xlu0 %v3033_v39  ;;  %v4218_v1 = vpack.c.bf16 %v5648_v61, %v5648_v61  ;;  %v3042_v44 = vsel %vm379_vm0, %v5648_v61, 0.0  ;;  %v8285_v39 = vld [vmem:[#allocation67_spill] sm:$0xff] }
 0x71a   : > { %v4272_v33 = vunpack.c.l.b16 %v4215_v7  ;;  %5651 = vpow2.f32 %v2881_v5  ;;  %v2846_v5 = vsub.f32 %v8285_v39, %v2704_v16 }
 0x71b   : > { %v4298_v47 = vunpack.c.l.b16 %v4218_v1 }
 0x71c   : > { %v4274_v35 = vpack.c.b16 %v4273_v50, %v4272_v33  ;;  %v2672_v3 = vpop.permute.xlu1 %2671  ;;  %v8286_v50 = vld [vmem:[#allocation58_spill] sm:$0xff] }
 0x71d   : > { %v2841_v43 = vsub.f32 %v8283_v18, %v2672_v3  ;;  %v2889_v18 = vmul.f32 1.442695, %v2846_v5 }
 0x71e   : > { %5471 = vmatmul.msk.bf16.vlgmr.msrb.gmra.mxu1 %vm379_vm0, %v4274_v35 }
 0x71f   : > { %v7410_v4 = vpop.eup %5649  ;;  %v2879_v27 = vmul.f32 1.442695, %v2841_v43  ;;  %4488 = vmatpush.bf16.msrb.mxu1 %v8284_v23  ;;  %v7426_v43 = vpop.xlane.xlu0 %3025 }
 0x720   : > { %v4217_v8 = vpack.c.bf16 %v7410_v4, %v7410_v4  ;;  %v7418_v38 = vpop.eup %5651 }
 0x721   : > { %5653 = vpow2.f32 %v2879_v27  ;;  %3043 = vadd.xlane.f32.xlu0 %v3042_v44  ;;  %v4220_v35 = vpack.c.bf16 %v7418_v38, %v7418_v38  ;;  %v8288_v44 = vld [vmem:[#allocation65_spill] sm:$0xff] }
 0x722   : > { %v4297_v54 = vunpack.c.l.b16 %v4217_v8  ;;  %5655 = vpow2.f32 %v2885_v48 }
 0x723   : > { %v4323_v1 = vunpack.c.l.b16 %v4220_v35 }
 0x724   : > { %v4299_v21 = vpack.c.b16 %v4298_v47, %v4297_v54  ;;  %v2685_v19 = vpop.permute.xlu1 %2684  ;;  %v2724_v7 = vpop.permute.xlu2 %2723 }
 0x725   : > { %v2843_v33 = vsub.f32 %v8286_v50, %v2685_v19  ;;  %v8289_v19 = vld [vmem:[#allocation69_spill] sm:$0xff] }
 0x726   : > { %5472 = vmatmul.msk.bf16.vlgmr.msra.gmra.mxu2 %vm379_vm0, %v4299_v21  ;;  %v2849_v39 = vsub.f32 %v8289_v19, %v2724_v7  ;;  %v8290_v50 = vld [vmem:[#allocation21_spill] sm:$0xff] }
 0x727   : > { %v5654_v61 = vpop.eup %5653  ;;  %v2883_v3 = vmul.f32 1.442695, %v2843_v33  ;;  %4513 = vmatpush.bf16.msra.mxu2 %v8287_v56  ;;  %v2711_v56 = vpop.permute.xlu0 %2710 }
 0x728   : > { %v4219_v24 = vpack.c.bf16 %v5654_v61, %v5654_v61  ;;  %v7428_v23 = vpop.eup %5655 }
 0x729   : > { %5657 = vpow2.f32 %v2883_v3  ;;  %v4222_v47 = vpack.c.bf16 %v7428_v23, %v7428_v23 }
 0x72a   : > { %v4322_v27 = vunpack.c.l.b16 %v4219_v24  ;;  %5659 = vpow2.f32 %v2889_v18  ;;  %v3027_v18 = vsel %vm379_vm0, %v7392_v17, 0.0 }
 0x72b   : > { %v4348_v3 = vunpack.c.l.b16 %v4222_v47 }
 0x72c   : > { %v4324_v16 = vpack.c.b16 %v4323_v1, %v4322_v27  ;;  %v2698_v8 = vpop.permute.xlu1 %2697  ;;  %v2737_v54 = vpop.permute.xlu2 %2736  ;;  %v2895_v27 = vmul.f32 1.442695, %v2849_v39 }
 0x72d   : > { %v2845_v48 = vsub.f32 %v8288_v44, %v2698_v8  ;;  %v8291_v8 = vld [vmem:[#allocation63_spill] sm:$0xff] }
 0x72e   : > { %5473 = vmatmul.msk.bf16.vlgmr.msra.gmra.mxu3 %vm379_vm0, %v4324_v16  ;;  %v2847_v7 = vsub.f32 %v8291_v8, %v2711_v56 }
 0x72f   : > { %v5658_v21 = vpop.eup %5657  ;;  %v2887_v5 = vmul.f32 1.442695, %v2845_v48  ;;  %4538 = vmatpush.bf16.msra.mxu3 %v8290_v50 }
 0x730   : > { %v4221_v33 = vpack.c.bf16 %v5658_v21, %v5658_v21  ;;  %v3051_v35 = vsel %vm379_vm0, %v5658_v21, 0.0  ;;  %v5660_v1 = vpop.eup %5659  ;;  %v8292_v21 = vld [vmem:[#allocation27_spill] sm:$0xff] }
 0x731   : > { %5661 = vpow2.f32 %v2887_v5  ;;  %3052 = vadd.xlane.f32.xlu0 %v3051_v35  ;;  %v4224_v44 = vpack.c.bf16 %v5660_v1, %v5660_v1  ;;  %v3060_v17 = vsel %vm379_vm0, %v5660_v1, 0.0  ;;  %v2891_v5 = vmul.f32 1.442695, %v2847_v7 }
 0x732   : > { %v4347_v24 = vunpack.c.l.b16 %v4221_v33  ;;  %5663 = vpow2.f32 %v2895_v27  ;;  %v3036_v33 = vsel %vm379_vm0, %v7396_v55, 0.0  ;;  %v3030_v35 = vsel %vm379_vm0, %v7384_v20, 0.0 }
 0x733   : > { %3028 = vadd.xlane.f32.xlu2 %v3027_v18  ;;  %v4373_v39 = vunpack.c.l.b16 %v4224_v44  ;;  %5665 = vpow2.f32 %v2891_v5  ;;  %v8293_v18 = vld [vmem:[#allocation66_spill] sm:$0xff]  ;;  %v3045_v7 = vsel %vm379_vm0, %v5654_v61, 0.0  ;;  %v3039_v44 = vsel %vm379_vm0, %v7410_v4, 0.0  ;;  %v8296_v5 = vld [vmem:[#allocation71_spill] sm:$0xff] }
 0x734   : > { %v4349_v16 = vpack.c.b16 %v4348_v3, %v4347_v24  ;;  %v2750_v19 = vpop.permute.xlu2 %2749  ;;  %v3054_v61 = vsel %vm379_vm0, %v7428_v23, 0.0  ;;  %v3048_v4 = vsel %vm379_vm0, %v7418_v38, 0.0 }
 0x736   : > { %5474 = vmatmul.msk.bf16.vlgmr.msra.gmra.mxu0 %vm379_vm0, %v4349_v16  ;;  %v8294_v16 = vld [vmem:[#allocation45_spill] sm:$0xff] }
 0x737   : > { %v7441_v48 = vpop.eup %5661  ;;  %4563 = vmatpush.bf16.msra.mxu0 %v8292_v21 }
 0x738   : > { %v4223_v47 = vpack.c.bf16 %v7441_v48, %v7441_v48  ;;  %v5664_v24 = vpop.eup %5663 }
 0x739   : > { %3061 = vadd.xlane.f32.xlu0 %v3060_v17  ;;  %v3069_v8 = vsel %vm379_vm0, %v5664_v24, 0.0  ;;  %v5666_v20 = vpop.eup %5665 }
 0x73a   : > { %v4372_v50 = vunpack.c.l.b16 %v4223_v47  ;;  %v8295_v47 = vld [vmem:[#allocation68_spill] sm:$0xff] }
 0x73b   : > { %3037 = vadd.xlane.f32.xlu2 %v3036_v33  ;;  %v2851_v17 = vsub.f32 %v8295_v47, %v2737_v54  ;;  %v4227_v47 = vpack.c.bf16 %v5664_v24, %v5664_v24  ;;  %v3057_v24 = vsel %vm379_vm0, %v7441_v48, 0.0 }
 0x73c   : > { %v4374_v3 = vpack.c.b16 %v4373_v39, %v4372_v50  ;;  %v2717_v56 = vpop.permute.xlu1 %2716  ;;  %3031 = vadd.xlane.f32.xlu1 %v3030_v35  ;;  %v2763_v55 = vpop.permute.xlu2 %2762  ;;  %v4225_v50 = vpack.c.bf16 %v5666_v20, %v5666_v20 }
 0x73d   : > { %v2848_v27 = vsub.f32 %v8293_v18, %v2717_v56  ;;  %v2899_v56 = vmul.f32 1.442695, %v2851_v17 }
 0x73e   : > { %5475 = vmatmul.msk.bf16.vlgmr.msra.gmra.mxu1 %vm379_vm0, %v4374_v3  ;;  %v4397_v18 = vunpack.c.l.b16 %v4225_v50  ;;  %v8300_v50 = vld [vmem:[#allocation30_spill] sm:$0xff] }
 0x73f   : > { %v2893_v1 = vmul.f32 1.442695, %v2848_v27  ;;  %4588 = vmatpush.bf16.msra.mxu1 %v8294_v16 }
 0x741   : > { %5667 = vpow2.f32 %v2893_v1  ;;  %3070 = vadd.xlane.f32.xlu0 %v3069_v8  ;;  %v8297_v8 = vld [vmem:[#allocation73_spill] sm:$0xff] }
 0x743   : > { %3046 = vadd.xlane.f32.xlu2 %v3045_v7  ;;  %v2853_v7 = vsub.f32 %v8297_v8, %v2750_v19 }
 0x744   : > { %v2730_v21 = vpop.permute.xlu1 %2729  ;;  %3040 = vadd.xlane.f32.xlu1 %v3039_v44  ;;  %v2776_v16 = vpop.permute.xlu2 %2775  ;;  %v8298_v44 = vld [vmem:[#allocation70_spill] sm:$0xff] }
 0x745   : > { %v2850_v39 = vsub.f32 %v8296_v5, %v2730_v21  ;;  %v8299_v5 = vld [vmem:[#allocation72_spill] sm:$0xff]  ;;  %v2903_v38 = vmul.f32 1.442695, %v2853_v7 }
 0x747   : > { %v5668_v33 = vpop.eup %5667  ;;  %v2897_v35 = vmul.f32 1.442695, %v2850_v39  ;;  %v2855_v39 = vsub.f32 %v8299_v5, %v2763_v55  ;;  %v8301_v55 = vld [vmem:[#allocation75_spill] sm:$0xff] }
 0x748   : > { %v4226_v3 = vpack.c.bf16 %v5668_v33, %v5668_v33 }
 0x749   : > { %5669 = vpow2.f32 %v2897_v35  ;;  %v2907_v19 = vmul.f32 1.442695, %v2855_v39 }
 0x74a   : > { %v4398_v27 = vunpack.c.l.b16 %v4226_v3  ;;  %5671 = vpow2.f32 %v2899_v56  ;;  %v4422_v3 = vunpack.c.l.b16 %v4227_v47  ;;  %v3063_v56 = vsel %vm379_vm0, %v5666_v20, 0.0  ;;  %v8302_v20 = vld [vmem:[#allocation64_spill] sm:$0xff] }
 0x74b   : > { %3055 = vadd.xlane.f32.xlu2 %v3054_v61 }
 0x74c   : > { %v4399_v1 = vpack.c.b16 %v4398_v27, %v4397_v18  ;;  %v2743_v54 = vpop.permute.xlu1 %2742  ;;  %3049 = vadd.xlane.f32.xlu1 %v3048_v4  ;;  %v2789_v8 = vpop.permute.xlu2 %2788 }
 0x74d   : > { %v2852_v21 = vsub.f32 %v8298_v44, %v2743_v54 }
 0x74e   : > { %5476 = vmatmul.msk.bf16.vlgmr.msrb.gmra.mxu2 %vm379_vm0, %v4399_v1 }
 0x74f   : > { %v5670_v17 = vpop.eup %5669  ;;  %v2901_v23 = vmul.f32 1.442695, %v2852_v21  ;;  %4613 = vmatpush.bf16.msrb.mxu2 %v8300_v50  ;;  %v3066_v50 = vsel %vm379_vm0, %v5668_v33, 0.0 }
 0x750   : > { %v4228_v35 = vpack.c.bf16 %v5670_v17, %v5670_v17  ;;  %v5672_v27 = vpop.eup %5671  ;;  %v3072_v39 = vsel %vm379_vm0, %v5670_v17, 0.0 }
 0x751   : > { %5673 = vpow2.f32 %v2901_v23  ;;  %v4229_v54 = vpack.c.bf16 %v5672_v27, %v5672_v27 }
 0x752   : > { %v4423_v18 = vunpack.c.l.b16 %v4228_v35  ;;  %5675 = vpow2.f32 %v2903_v38 }
 0x753   : > { %3064 = vadd.xlane.f32.xlu2 %v3063_v56  ;;  %5677 = vpow2.f32 %v2907_v19  ;;  %v4447_v48 = vunpack.c.l.b16 %v4229_v54  ;;  %v8304_v19 = vld [vmem:[#allocation74_spill] sm:$0xff] }
 0x754   : > { %v4424_v61 = vpack.c.b16 %v4423_v18, %v4422_v3  ;;  %v2756_v4 = vpop.permute.xlu1 %2755  ;;  %3058 = vadd.xlane.f32.xlu1 %v3057_v24  ;;  %v8303_v18 = vld [vmem:[#allocation77_spill] sm:$0xff] }
 0x755   : > { %v2854_v1 = vsub.f32 %v8301_v55, %v2756_v4  ;;  %v2857_v56 = vsub.f32 %v8303_v18, %v2776_v16  ;;  %v8307_v18 = vld [vmem:[#allocation81_spill] sm:$0xff] }
 0x756   : > { %5477 = vmatmul.msk.bf16.vlgmr.msrb.gmra.mxu3 %vm379_vm0, %v4424_v61 }
 0x757   : > { %v5674_v7 = vpop.eup %5673  ;;  %v2905_v44 = vmul.f32 1.442695, %v2854_v1  ;;  %4638 = vmatpush.bf16.msrb.mxu3 %v8302_v20  ;;  %v8305_v1 = vld [vmem:[#allocation76_spill] sm:$0xff]  ;;  %v2911_v33 = vmul.f32 1.442695, %v2857_v56 }
 0x758   : > { %v4230_v21 = vpack.c.bf16 %v5674_v7, %v5674_v7  ;;  %v3078_v47 = vsel %vm379_vm0, %v5674_v7, 0.0  ;;  %v5676_v23 = vpop.eup %5675  ;;  %v2859_v54 = vsub.f32 %v8305_v1, %v2789_v8  ;;  %v2802_v7 = vpop.permute.xlu2 %2801  ;;  %v8306_v8 = vld [vmem:[#allocation79_spill] sm:$0xff] }
 0x759   : > { %5679 = vpow2.f32 %v2905_v44  ;;  %3079 = vadd.xlane.f32.xlu0 %v3078_v47  ;;  %v5678_v3 = vpop.eup %5677  ;;  %v4231_v61 = vpack.c.bf16 %v5676_v23, %v5676_v23  ;;  %v3081_v16 = vsel %vm379_vm0, %v5676_v23, 0.0  ;;  %v3075_v47 = vsel %vm379_vm0, %v5672_v27, 0.0 }
 0x75a   : > { %v4448_v5 = vunpack.c.l.b16 %v4230_v21  ;;  %v3087_v44 = vsel %vm379_vm0, %v5678_v3, 0.0  ;;  %v2861_v56 = vsub.f32 %v8307_v18, %v2802_v7 }
 0x75b   : > { %3073 = vadd.xlane.f32.xlu2 %v3072_v39  ;;  %v4472_v20 = vunpack.c.l.b16 %v4231_v61 }
 0x75c   : > { %v4449_v35 = vpack.c.b16 %v4448_v5, %v4447_v48  ;;  %v2769_v38 = vpop.permute.xlu1 %2768  ;;  %3067 = vadd.xlane.f32.xlu1 %v3066_v50  ;;  %v2915_v48 = vmul.f32 1.442695, %v2859_v54  ;;  %v2919_v54 = vmul.f32 1.442695, %v2861_v56 }
 0x75d   : > { %v2856_v24 = vsub.f32 %v8304_v19, %v2769_v38 }
 0x75e   : > { %5478 = vmatmul.msk.bf16.vlgmr.msrb.gmra.mxu0 %vm379_vm0, %v4449_v35  ;;  %v4233_v35 = vpack.c.bf16 %v5678_v3, %v5678_v3 }
 0x75f   : > { %v5680_v4 = vpop.eup %5679  ;;  %v2909_v55 = vmul.f32 1.442695, %v2856_v24 }
 0x760   : > { %v4232_v17 = vpack.c.bf16 %v5680_v4, %v5680_v4  ;;  %v4497_v23 = vunpack.c.l.b16 %v4233_v35  ;;  %v2815_v27 = vpop.permute.xlu2 %2814 }
 0x761   : > { %5681 = vpow2.f32 %v2909_v55  ;;  %3088 = vadd.xlane.f32.xlu0 %v3087_v44 }
 0x762   : > { %v4473_v21 = vunpack.c.l.b16 %v4232_v17  ;;  %5683 = vpow2.f32 %v2911_v33  ;;  %v3084_v17 = vsel %vm379_vm0, %v5680_v4, 0.0  ;;  %v8308_v33 = vld [vmem:[#allocation78_spill] sm:$0xff] }
 0x763   : > { %3082 = vadd.xlane.f32.xlu2 %v3081_v16  ;;  %5685 = vpow2.f32 %v2915_v48 }
 0x764   : > { %v4474_v5 = vpack.c.b16 %v4473_v21, %v4472_v20  ;;  %v2782_v39 = vpop.permute.xlu1 %2781  ;;  %3076 = vadd.xlane.f32.xlu1 %v3075_v47 }
 0x765   : > { %v2858_v50 = vsub.f32 %v8306_v8, %v2782_v39  ;;  %v8309_v8 = vld [vmem:[#allocation80_spill] sm:$0xff] }
 0x766   : > { %5479 = vmatmul.msk.bf16.vlgmr.msrb.gmra.mxu1 %vm379_vm0, %v4474_v5  ;;  %v2863_v4 = vsub.f32 %v8309_v8, %v2815_v27 }
 0x767   : > { %v5682_v38 = vpop.eup %5681  ;;  %v2913_v19 = vmul.f32 1.442695, %v2858_v50 }
 0x768   : > { %v4234_v24 = vpack.c.bf16 %v5682_v38, %v5682_v38  ;;  %v3090_v55 = vsel %vm379_vm0, %v5682_v38, 0.0  ;;  %v5684_v1 = vpop.eup %5683  ;;  %v2828_v56 = vpop.permute.xlu2 %2827 }
 0x769   : > { %5687 = vpow2.f32 %v2913_v19  ;;  %v5686_v7 = vpop.eup %5685  ;;  %v4235_v21 = vpack.c.bf16 %v5684_v1, %v5684_v1  ;;  %v3093_v38 = vsel %vm379_vm0, %v5684_v1, 0.0 }
 0x76a   : > { %v4498_v61 = vunpack.c.l.b16 %v4234_v24  ;;  %5689 = vpow2.f32 %v2919_v54  ;;  %v3099_v35 = vsel %vm379_vm0, %v5686_v7, 0.0  ;;  %v2923_v54 = vmul.f32 1.442695, %v2863_v4 }
 0x76b   : > { %3091 = vadd.xlane.f32.xlu2 %v3090_v55  ;;  %v4522_v39 = vunpack.c.l.b16 %v4235_v21  ;;  %v4237_v55 = vpack.c.bf16 %v5686_v7, %v5686_v7 }
 0x76c   : > { %v4499_v3 = vpack.c.b16 %v4498_v61, %v4497_v23  ;;  %v2795_v44 = vpop.permute.xlu1 %2794  ;;  %3085 = vadd.xlane.f32.xlu1 %v3084_v17  ;;  %v8310_v23 = vld [vmem:[#allocation83_spill] sm:$0xff] }
 0x76d   : > { %v2860_v20 = vsub.f32 %v8308_v33, %v2795_v44  ;;  %v4547_v1 = vunpack.c.l.b16 %v4237_v55 }
 0x76e   : > { %5480 = vmatmul.msk.bf16.vlgmr.msra.gmra.mxu2 %vm379_vm0, %v4499_v3  ;;  %v8311_v3 = vld [vmem:[#allocation84_spill] sm:$0xff] }
 0x76f   : > { %v5688_v16 = vpop.eup %5687  ;;  %v2917_v47 = vmul.f32 1.442695, %v2860_v20  ;;  %v2865_v27 = vsub.f32 %v8311_v3, %v2828_v56 }
 0x770   : > { %v4236_v48 = vpack.c.bf16 %v5688_v16, %v5688_v16  ;;  %v3096_v5 = vsel %vm379_vm0, %v5688_v16, 0.0  ;;  %v5690_v24 = vpop.eup %5689 }
 0x771   : > { %5691 = vpow2.f32 %v2917_v47  ;;  %3097 = vadd.xlane.f32.xlu0 %v3096_v5  ;;  %v3105_v20 = vsel %vm379_vm0, %v5690_v24, 0.0  ;;  %v2927_v16 = vmul.f32 1.442695, %v2865_v27  ;;  %v8312_v5 = vld [vmem:[#allocation82_spill] sm:$0xff]  ;;  %v4239_v8 = vpack.c.bf16 %v5690_v24, %v5690_v24  ;;  %v8313_v24 = vld [vmem:[#allocation85_spill] sm:$0xff] }
 0x772   : > { %v4523_v50 = vunpack.c.l.b16 %v4236_v48 }
 0x773   : > { %3100 = vadd.xlane.f32.xlu2 %v3099_v35  ;;  %v4572_v56 = vunpack.c.l.b16 %v4239_v8 }
 0x774   : > { %v4524_v18 = vpack.c.b16 %v4523_v50, %v4522_v39  ;;  %v2808_v19 = vpop.permute.xlu1 %2807  ;;  %3094 = vadd.xlane.f32.xlu1 %v3093_v38 }
 0x775   : > { %v2862_v61 = vsub.f32 %v8310_v23, %v2808_v19 }
 0x776   : > { %5481 = vmatmul.msk.bf16.vlgmr.msra.gmra.mxu3 %vm379_vm0, %v4524_v18 }
 0x777   : > { %v5692_v17 = vpop.eup %5691  ;;  %v2921_v44 = vmul.f32 1.442695, %v2862_v61 }
 0x778   : > { %v4238_v33 = vpack.c.bf16 %v5692_v17, %v5692_v17  ;;  %v3102_v47 = vsel %vm379_vm0, %v5692_v17, 0.0 }
 0x779   : > { %5693 = vpow2.f32 %v2921_v44  ;;  %3106 = vadd.xlane.f32.xlu0 %v3105_v20 }
 0x77a   : > { %5695 = vpow2.f32 %v2923_v54  ;;  %v4548_v21 = vunpack.c.l.b16 %v4238_v33 }
 0x77b   : > { %5697 = vpow2.f32 %v2927_v16 }
 0x77c   : > { %v4549_v48 = vpack.c.b16 %v4548_v21, %v4547_v1  ;;  %v2821_v7 = vpop.permute.xlu1 %2820  ;;  %3103 = vadd.xlane.f32.xlu1 %v3102_v47 }
 0x77d   : > { %v2864_v39 = vsub.f32 %v8312_v5, %v2821_v7 }
 0x77e   : > { %5482 = vmatmul.msk.bf16.vlgmr.msra.gmra.mxu0 %vm379_vm0, %v4549_v48 }
 0x77f   : > { %v5694_v4 = vpop.eup %5693  ;;  %v2925_v50 = vmul.f32 1.442695, %v2864_v39 }
 0x780   : > { %v5696_v35 = vpop.eup %5695  ;;  %v4240_v38 = vpack.c.bf16 %v5694_v4, %v5694_v4  ;;  %v3108_v18 = vsel %vm379_vm0, %v5694_v4, 0.0 }
 0x781   : > { %5699 = vpow2.f32 %v2925_v50  ;;  %3109 = vadd.xlane.f32.xlu2 %v3108_v18  ;;  %v3111_v23 = vsel %vm379_vm0, %v5696_v35, 0.0  ;;  %v5698_v54 = vpop.eup %5697  ;;  %v4241_v3 = vpack.c.bf16 %v5696_v35, %v5696_v35 }
 0x782   : > { %v4573_v19 = vunpack.c.l.b16 %v4240_v38  ;;  %v3117_v1 = vsel %vm379_vm0, %v5698_v54, 0.0  ;;  %v4243_v48 = vpack.c.bf16 %v5698_v54, %v5698_v54 }
 0x783   : > { %v4597_v21 = vunpack.c.l.b16 %v4241_v3 }
 0x784   : > { %v4574_v61 = vpack.c.b16 %v4573_v19, %v4572_v56  ;;  %v2834_v55 = vpop.permute.xlu1 %2833  ;;  %3112 = vadd.xlane.f32.xlu1 %v3111_v23  ;;  %v4622_v8 = vunpack.c.l.b16 %v4243_v48 }
 0x785   : > { %v2866_v17 = vsub.f32 %v8313_v24, %v2834_v55 }
 0x786   : > { %5483 = vmatmul.msk.bf16.vlgmr.msra.gmra.mxu1 %vm379_vm0, %v4574_v61 }
 0x787   : > { %v5700_v27 = vpop.eup %5699  ;;  %v2929_v44 = vmul.f32 1.442695, %v2866_v17 }
 0x788   : > { %v4242_v33 = vpack.c.bf16 %v5700_v27, %v5700_v27  ;;  %v3114_v20 = vsel %vm379_vm0, %v5700_v27, 0.0 }
 0x789   : > { %5701 = vpow2.f32 %v2929_v44  ;;  %3115 = vadd.xlane.f32.xlu0 %v3114_v20  ;;  %3118 = vadd.xlane.f32.xlu2 %v3117_v1 }
 0x78a   : > { %v4598_v16 = vunpack.c.l.b16 %v4242_v33 }
 0x78c   : > { %v4599_v47 = vpack.c.b16 %v4598_v16, %v4597_v21  ;;  %v3035_v38 = vpop.xlane.xlu0 %3034 }
 0x78d   : > { %v3158_v20 = vperm.slane %v3035_v38, %v6524_v22 }
 0x78e   : > { %5484 = vmatmul.msk.bf16.vlgmr.msrb.gmra.mxu2 %vm379_vm0, %v4599_v47 }
 0x78f   : > { %v5702_v7 = vpop.eup %5701 }
 0x790   : > { %v4244_v5 = vpack.c.bf16 %v5702_v7, %v5702_v7  ;;  %v3120_v39 = vsel %vm379_vm0, %v5702_v7, 0.0 }
 0x791   : > { %3121 = vadd.xlane.f32.xlu1 %v3120_v39 }
 0x792   : > { %v4623_v4 = vunpack.c.l.b16 %v4244_v5 }
 0x794   : > { %v4624_v50 = vpack.c.b16 %v4623_v4, %v4622_v8  ;;  %v3044_v19 = vpop.xlane.xlu0 %3043 }
 0x795   : > { %v3162_v47 = vperm.slane %v3044_v19, %v6785_v41 }
 0x796   : > { %5485 = vmatmul.msk.bf16.vlgmr.msrb.gmra.mxu3 %vm379_vm0, %v4624_v50 }
 0x7a4   : > { %v3053_v55 = vpop.xlane.xlu0 %3052 }
 0x7a6   : > { %v3029_v35 = vpop.xlane.xlu2 %3028 }
 0x7a7   : > { %v3155_v1 = vperm.slane %v3029_v35, %v6524_v22 }
 0x7ac   : > { %v3062_v17 = vpop.xlane.xlu0 %3061 }
 0x7ad   : > { %v3171_v38 = vperm.slane %v3062_v17, %v6785_v41 }
 0x7ae   : > { %v3038_v18 = vpop.xlane.xlu2 %3037 }
 0x7af   : > { %v3032_v56 = vpop.xlane.xlu1 %3031  ;;  %v3159_v3 = vperm.slane %v3038_v18, %v6785_v41 }
 0x7b0   : > { %v3156_v27 = vperm.slane %v3032_v56, %v6785_v41  ;;  %v3167_v56 = vperm.slane %v3053_v55, %v6524_v22 }
 0x7b1   : > { %v3160_v48 = vsel %vm1899_vm4, %v3159_v3, %v3158_v20 }
 0x7b2   : > { %v3157_v7 = vsel %vm1899_vm4, %v3156_v27, %v3155_v1 }
 0x7b3   : > { %v3203_v50 = vsel %vm1946_vm5, %v3160_v48, %v3157_v7 }
 0x7b4   : > { %v3071_v19 = vpop.xlane.xlu0 %3070 }
 0x7b5   : > { %v3176_v17 = vperm.slane %v3071_v19, %v6524_v22 }
 0x7b6   : > { %v3047_v23 = vpop.xlane.xlu2 %3046 }
 0x7b7   : > { %v3041_v61 = vpop.xlane.xlu1 %3040  ;;  %v3164_v5 = vperm.slane %v3047_v23, %v6524_v22 }
 0x7b8   : > { %v3161_v44 = vperm.slane %v3041_v61, %v6524_v22 }
 0x7ba   : > { %v3163_v39 = vsel %vm1899_vm4, %v3162_v47, %v3161_v44 }
 0x7bb   : > { %v3204_v18 = vsel %vm1948_vm6, %v3163_v39, %v3203_v50 }
 0x7be   : > { %v3056_v54 = vpop.xlane.xlu2 %3055 }
 0x7bf   : > { %v3050_v24 = vpop.xlane.xlu1 %3049  ;;  %v3168_v35 = vperm.slane %v3056_v54, %v6785_v41 }
 0x7c0   : > { %v3165_v21 = vperm.slane %v3050_v24, %v6785_v41 }
 0x7c1   : > { %v3169_v44 = vsel %vm1899_vm4, %v3168_v35, %v3167_v56 }
 0x7c2   : > { %v3166_v8 = vsel %vm1899_vm4, %v3165_v21, %v3164_v5 }
 0x7c3   : > { %v3205_v61 = vsel %vm1950_vm7, %v3166_v8, %v3204_v18 }
 0x7c4   : > { %v3206_v1 = vsel %vm1952_vm8, %v3169_v44, %v3205_v61 }
 0x7c6   : > { %v3065_v33 = vpop.xlane.xlu2 %3064 }
 0x7c7   : > { %v3059_v16 = vpop.xlane.xlu1 %3058  ;;  %v3173_v20 = vperm.slane %v3065_v33, %v6524_v22 }
 0x7c8   : > { %v3170_v4 = vperm.slane %v3059_v16, %v6524_v22 }
 0x7ca   : > { %v3172_v24 = vsel %vm1899_vm4, %v3171_v38, %v3170_v4 }
 0x7cb   : > { %v3207_v55 = vsel %vm1954_vm9, %v3172_v24, %v3206_v1 }
 0x7cc   : > { %v3080_v5 = vpop.xlane.xlu0 %3079 }
 0x7ce   : > { %v3074_v23 = vpop.xlane.xlu2 %3073 }
 0x7cf   : > { %v3177_v3 = vperm.slane %v3074_v23, %v6785_v41  ;;  %v3068_v27 = vpop.xlane.xlu1 %3067 }
 0x7d0   : > { %v3174_v54 = vperm.slane %v3068_v27, %v6785_v41  ;;  %v3180_v27 = vperm.slane %v3080_v5, %v6785_v41 }
 0x7d1   : > { %v3178_v16 = vsel %vm1899_vm4, %v3177_v3, %v3176_v17 }
 0x7d2   : > { %v3175_v21 = vsel %vm1899_vm4, %v3174_v54, %v3173_v20 }
 0x7d3   : > { %v3208_v47 = vsel %vm1956_vm10, %v3175_v21, %v3207_v55 }
 0x7d4   : > { %v3209_v48 = vsel %vm1958_vm11, %v3178_v16, %v3208_v47  ;;  %v3089_v8 = vpop.xlane.xlu0 %3088 }
 0x7d5   : > { %3219 = vxpose.xlu0.b32.start [1/2] (short) (narrow) %v3209_v48, 16  ;;  %v3185_v47 = vperm.slane %v3089_v8, %v6524_v22 }
 0x7d6   : > { %v3083_v33 = vpop.xlane.xlu2 %3082 }
 0x7d7   : > { %v3077_v7 = vpop.xlane.xlu1 %3076  ;;  %v3182_v23 = vperm.slane %v3083_v33, %v6524_v22 }
 0x7d8   : > { %v3179_v24 = vperm.slane %v3077_v7, %v6524_v22 }
 0x7da   : > { %v3181_v55 = vsel %vm1899_vm4, %v3180_v27, %v3179_v24 }
 0x7de   : > { %v3092_v4 = vpop.xlane.xlu2 %3091 }
 0x7df   : > { %v3086_v39 = vpop.xlane.xlu1 %3085  ;;  %v3186_v17 = vperm.slane %v3092_v4, %v6785_v41 }
 0x7e0   : > { %v3183_v61 = vperm.slane %v3086_v39, %v6785_v41 }
 0x7e1   : > { %v3187_v4 = vsel %vm1899_vm4, %v3186_v17, %v3185_v47 }
 0x7e2   : > { %v3184_v44 = vsel %vm1899_vm4, %v3183_v61, %v3182_v23 }
 0x7e3   : > { %v3210_v48 = vsel %vm1946_vm5, %v3184_v44, %v3181_v55 }
 0x7e4   : > { %v3098_v35 = vpop.xlane.xlu0 %3097 }
 0x7e5   : > { %v3189_v21 = vperm.slane %v3098_v35, %v6785_v41 }
 0x7e6   : > { %v3101_v38 = vpop.xlane.xlu2 %3100 }
 0x7e7   : > { %v3095_v50 = vpop.xlane.xlu1 %3094  ;;  %v3191_v7 = vperm.slane %v3101_v38, %v6524_v22 }
 0x7e8   : > { %v3188_v20 = vperm.slane %v3095_v50, %v6524_v22 }
 0x7ea   : > { %v3190_v33 = vsel %vm1899_vm4, %v3189_v21, %v3188_v20 }
 0x7ec   : > { %v3107_v56 = vpop.xlane.xlu0 %3106 }
 0x7ed   : > { %v3194_v39 = vperm.slane %v3107_v56, %v6524_v22 }
 0x7ef   : > { %v3104_v18 = vpop.xlane.xlu1 %3103 }
 0x7f0   : > { %v3192_v1 = vperm.slane %v3104_v18, %v6785_v41 }
 0x7f2   : > { %v3193_v50 = vsel %vm1899_vm4, %v3192_v1, %v3191_v7 }
 0x7f4   : > { %v3110_v19 = vpop.xlane.xlu2 %3109 }
 0x7f5   : > { %v3195_v16 = vperm.slane %v3110_v19, %v6785_v41  ;;  %v3211_v19 = vsel %vm1948_vm6, %v3187_v4, %v3210_v48 }
 0x7f6   : > { %v3212_v61 = vsel %vm1950_vm7, %v3190_v33, %v3211_v19 }
 0x7f7   : > { %v3113_v3 = vpop.xlane.xlu1 %3112  ;;  %v3196_v8 = vsel %vm1899_vm4, %v3195_v16, %v3194_v39  ;;  %v3213_v24 = vsel %vm1952_vm8, %v3193_v50, %v3212_v61 }
 0x7f8   : > { %v3197_v35 = vperm.slane %v3113_v3, %v6524_v22  ;;  %v3214_v44 = vsel %vm1954_vm9, %v3196_v8, %v3213_v24 }
 0x7fc   : > { %v3116_v54 = vpop.xlane.xlu0 %3115  ;;  %v3119_v18 = vpop.xlane.xlu2 %3118 }
 0x7fd   : > { %v3198_v5 = vperm.slane %v3116_v54, %v6785_v41  ;;  %v3200_v56 = vperm.slane %v3119_v18, %v6524_v22 }
 0x7ff   : > { %v3199_v38 = vsel %vm1899_vm4, %v3198_v5, %v3197_v35 }
 0x800   : > { %v3215_v3 = vsel %vm1956_vm10, %v3199_v38, %v3214_v44 }
 0x804   : > { %v3122_v23 = vpop.xlane.xlu1 %3121 }
 0x805   : > { %v3201_v27 = vperm.slane %v3122_v23, %v6785_v41 }
 0x807   : > { %v3202_v20 = vsel %vm1899_vm4, %v3201_v27, %v3200_v56 }
 0x808   : > { %v3216_v54 = vsel %vm1958_vm11, %v3202_v20, %v3215_v3 }
 0x809   : > { %3220 = vxpose.xlu0.b32.end [2/2] (short) (narrow) %v3216_v54, 16 }
 0x870   : > { %5548 = vset.pattern.permute.xlu0 %v6501_v53 }
 0x8a5   : > { %v3235_v17 = vpop.trf.xlu0 }
 0x8a6   : > { %v3305_v1 = vperm.slane %v3235_v17, 4  ;;  %v3253_v55 = vperm.slane %v3235_v17, 0  ;;  %v3266_v21 = vperm.slane %v3235_v17, 1  ;;  %v3279_v16 = vperm.slane %v3235_v17, 2 }
 0x8a7   : > { %v3292_v47 = vperm.slane %v3235_v17, 3  ;;  %v3318_v48 = vperm.slane %v3235_v17, 5  ;;  %v3331_v7 = vperm.slane %v3235_v17, 6  ;;  %v3344_v5 = vperm.slane %v3235_v17, 7 }
 0x8a8   : > { %3316 = vperm.xlu0 %5548, %v3305_v1   ;;  %3264 = vperm.xlu1 %5546, %v3253_v55  }
 0x8a9   : > { %3258 = vperm.xlu2 %5547, %v3253_v55  }
 0x8ad   : > { %v3236_v33 = vpop.trf.xlu0 }
 0x8ae   : > { %v3357_v39 = vperm.slane %v3236_v33, 0  ;;  %v3370_v4 = vperm.slane %v3236_v33, 1  ;;  %v3383_v50 = vperm.slane %v3236_v33, 2  ;;  %v3396_v35 = vperm.slane %v3236_v33, 3 }
 0x8af   : > { %v3409_v19 = vperm.slane %v3236_v33, 4  ;;  %v3422_v61 = vperm.slane %v3236_v33, 5  ;;  %v3435_v38 = vperm.slane %v3236_v33, 6  ;;  %v3448_v27 = vperm.slane %v3236_v33, 7 }
 0x8b0   : > { %3277 = vperm.xlu1 %5546, %v3266_v21   ;;  %5553 = vset.pattern.permute.xlu0 %v5810_v58 }
 0x8b1   : > { %3271 = vperm.xlu2 %5547, %v3266_v21  }
 0x8b8   : > { %3290 = vperm.xlu1 %5546, %v3279_v16  }
 0x8b9   : > { %3284 = vperm.xlu2 %5547, %v3279_v16  }
 0x8c0   : > { %3303 = vperm.xlu1 %5546, %v3292_v47  }
 0x8c1   : > { %3297 = vperm.xlu2 %5547, %v3292_v47  }
 0x8c8   : > { %5549 = vset.pattern.permute.xlu1 %v6487_v28 }
 0x8c9   : > { %3310 = vperm.xlu2 %5547, %v3305_v1  }
 0x8d0   : > { %3323 = vperm.xlu1 %5549, %v3318_v48  }
 0x8d1   : > { %5550 = vset.pattern.permute.xlu2 %v6501_v53 }
 0x8d8   : > { %3336 = vperm.xlu1 %5549, %v3331_v7  }
 0x8d9   : > { %3329 = vperm.xlu2 %5550, %v3318_v48  }
 0x8e0   : > { %3349 = vperm.xlu1 %5549, %v3344_v5  }
 0x8e1   : > { %3342 = vperm.xlu2 %5550, %v3331_v7  }
 0x8e8   : > { %3362 = vperm.xlu1 %5549, %v3357_v39  }
 0x8e9   : > { %3355 = vperm.xlu2 %5550, %v3344_v5  }
 0x8f0   : > { %3375 = vperm.xlu1 %5549, %v3370_v4  }
 0x8f1   : > { %3368 = vperm.xlu2 %5550, %v3357_v39  }
 0x8f8   : > { %3388 = vperm.xlu1 %5549, %v3383_v50  }
 0x8f9   : > { %3381 = vperm.xlu2 %5550, %v3370_v4  }
 0x900   : > { %3401 = vperm.xlu1 %5549, %v3396_v35  }
 0x901   : > { %3394 = vperm.xlu2 %5550, %v3383_v50  }
 0x903   : > { %v3259_v18 = vpop.permute.xlu2 %3258 }
 0x904   : > { %v3493_v56 = vadd.f32 %v3259_v18, %v7311_v46 }
 0x906   : > { %5703 = vrcp.f32 %v3493_v56 }
 0x908   : > { %3414 = vperm.xlu1 %5549, %v3409_v19  }
 0x909   : > { %3407 = vperm.xlu2 %5550, %v3396_v35  }
 0x90b   : > { %v3272_v8 = vpop.permute.xlu2 %3271 }
 0x90c   : > { %v3495_v20 = vadd.f32 %v3272_v8, %v7307_v0  ;;  %v7581_v17 = vpop.eup %5703 }
 0x90e   : > { %5705 = vrcp.f32 %v3495_v20 }
 0x910   : > { %3427 = vperm.xlu1 %5549, %v3422_v61  }
 0x911   : > { %3420 = vperm.xlu2 %5550, %v3409_v19  }
 0x913   : > { %v3285_v23 = vpop.permute.xlu2 %3284 }
 0x914   : > { %v3497_v21 = vadd.f32 %v3285_v23, %v7322_v6  ;;  %v7588_v16 = vpop.eup %5705 }
 0x918   : > { %3440 = vperm.xlu1 %5549, %v3435_v38  }
 0x919   : > { %3433 = vperm.xlu2 %5550, %v3422_v61  }
 0x91a   : > { %v3265_v24 = vpop.permute.xlu1 %3264 }
 0x91b   : > { %v3298_v44 = vpop.permute.xlu2 %3297  ;;  %v3494_v54 = vadd.f32 %v3265_v24, %v7327_v25 }
 0x91c   : > { %v3499_v6 = vadd.f32 %v3298_v44, %v7325_v13 }
 0x91d   : > { %5707 = vrcp.f32 %v3494_v54 }
 0x920   : > { %3453 = vperm.xlu1 %5549, %v3448_v27  }
 0x921   : > { %3446 = vperm.xlu2 %5550, %v3435_v38  }
 0x922   : > { %v3278_v3 = vpop.permute.xlu1 %3277 }
 0x923   : > { %v3311_v46 = vpop.permute.xlu2 %3310  ;;  %v3496_v0 = vadd.f32 %v3278_v3, %v7317_v36  ;;  %v7590_v25 = vpop.eup %5707 }
 0x924   : > { %v3501_v4 = vadd.f32 %v3311_v46, %v7329_v11 }
 0x928   : > { %5551 = vset.pattern.permute.xlu1 %v5810_v58 }
 0x929   : > { %3459 = vperm.xlu2 %5550, %v3448_v27   ;;  %3590 = vperm.xlu1 %5551, %v7581_v17  }
 0x92a   : > { %v3291_v1 = vpop.permute.xlu1 %3290 }
 0x92b   : > { %v3498_v55 = vadd.f32 %v3291_v1, %v7331_v10 }
 0x92d   : > { %5709 = vrcp.f32 %v3498_v55 }
 0x92e   : > { %5711 = vrcp.f32 %v3497_v21 }
 0x92f   : > { %5713 = vrcp.f32 %v3496_v0 }
 0x931   : > { %5552 = vset.pattern.permute.xlu2 %v5810_v58  ;;  %3596 = vperm.xlu1 %5551, %v7588_v16   ;;  %v3317_v58 = vpop.permute.xlu0 %3316 }
 0x932   : > { %3593 = vperm.xlu2 %5552, %v7590_v25   ;;  %v3304_v10 = vpop.permute.xlu1 %3303  ;;  %v3502_v39 = vadd.f32 %v3317_v58, %v7339_v31 }
 0x933   : > { %v7595_v47 = vpop.eup %5709  ;;  %v3330_v48 = vpop.permute.xlu2 %3329  ;;  %v3500_v36 = vadd.f32 %v3304_v10, %v7335_v59 }
 0x934   : > { %3605 = vperm.xlu0 %5553, %v7595_v47   ;;  %v7600_v7 = vpop.eup %5711  ;;  %v3504_v19 = vadd.f32 %v3330_v48, %v7333_v14 }
 0x935   : > { %v7602_v5 = vpop.eup %5713  ;;  %5715 = vrcp.f32 %v3500_v36 }
 0x936   : > { %5717 = vrcp.f32 %v3499_v6 }
 0x937   : > { %5719 = vrcp.f32 %v3502_v39 }
 0x938   : > { %5721 = vrcp.f32 %v3501_v4 }
 0x939   : > { %3602 = vperm.xlu1 %5551, %v7600_v7  }
 0x93a   : > { %3599 = vperm.xlu2 %5552, %v7602_v5  }
 0x93b   : > { %v3343_v33 = vpop.permute.xlu2 %3342  ;;  %v5716_v50 = vpop.eup %5715 }
 0x93c   : > { %v7608_v59 = vpop.eup %5717  ;;  %v3506_v31 = vadd.f32 %v3343_v33, %v7320_v37 }
 0x93d   : > { %v7613_v8 = vpop.eup %5719 }
 0x93e   : > { %v7616_v11 = vpop.eup %5721 }
 0x941   : > { %3611 = vperm.xlu1 %5551, %v5716_v50  }
 0x942   : > { %3608 = vperm.xlu2 %5552, %v7608_v59   ;;  %v3324_v13 = vpop.permute.xlu1 %3323 }
 0x943   : > { %v3503_v35 = vadd.f32 %v3324_v13, %v7315_v62  ;;  %v3356_v18 = vpop.permute.xlu2 %3355 }
 0x944   : > { %v3508_v37 = vadd.f32 %v3356_v18, %v7351_v42 }
 0x945   : > { %5723 = vrcp.f32 %v3503_v35 }
 0x946   : > { %5725 = vrcp.f32 %v3504_v19 }
 0x947   : > { %5727 = vrcp.f32 %v3506_v31 }
 0x949   : > { %3617 = vperm.xlu1 %5551, %v7613_v8  }
 0x94a   : > { %3614 = vperm.xlu2 %5552, %v7616_v11   ;;  %v3337_v61 = vpop.permute.xlu1 %3336 }
 0x94b   : > { %v5724_v38 = vpop.eup %5723  ;;  %v3505_v23 = vadd.f32 %v3337_v61, %v7343_v2  ;;  %v3369_v62 = vpop.permute.xlu2 %3368  ;;  %v7625_v2 = vstv %s4645_s14 }
 0x94c   : > { %3620 = vperm.xlu0 %5553, %v5724_v38   ;;  %v5726_v14 = vpop.eup %5725  ;;  %v4647_v54 = vmul.f32 %v7581_v17, %v7625_v2  ;;  %v4649_v55 = vmul.f32 %v7588_v16, %v7625_v2  ;;  %v4654_v21 = vmul.f32 %v5716_v50, %v7625_v2  ;;  %v4648_v10 = vmul.f32 %v7590_v25, %v7625_v2 }
 0x94d   : > { %5729 = vrcp.f32 %v3505_v23  ;;  %v5728_v24 = vpop.eup %5727  ;;  %v4651_v48 = vmul.f32 %v7600_v7, %v7625_v2  ;;  %v4657_v36 = vmul.f32 %v5724_v38, %v7625_v2  ;;  %v4650_v16 = vmul.f32 %v7602_v5, %v7625_v2 }
 0x94e   : > { %v3510_v58 = vadd.f32 %v3369_v62, %v7341_v63  ;;  %v4653_v33 = vmul.f32 %v7608_v59, %v7625_v2  ;;  %v4660_v39 = vmul.f32 %v5728_v24, %v7625_v2  ;;  %v4652_v7 = vmul.f32 %v7595_v47, %v7625_v2 }
 0x94f   : > { %v4656_v63 = vmul.f32 %v7613_v8, %v7625_v2  ;;  %v4655_v35 = vmul.f32 %v7616_v11, %v7625_v2  ;;  %v4658_v8 = vmul.f32 %v5726_v14, %v7625_v2 }
 0x952   : > { %3623 = vperm.xlu2 %5552, %v5726_v14   ;;  %v3350_v56 = vpop.permute.xlu1 %3349 }
 0x953   : > { %v5730_v27 = vpop.eup %5729  ;;  %v3507_v44 = vadd.f32 %v3350_v56, %v7337_v26  ;;  %v7623_v3 = vpop.permute.xlu2 %3381 }
 0x954   : > { %3629 = vperm.xlu0 %5553, %v5728_v24   ;;  %3626 = vperm.xlu1 %5551, %v5730_v27  }
 0x955   : > { %5731 = vrcp.f32 %v3507_v44 }
 0x956   : > { %5733 = vrcp.f32 %v3508_v37 }
 0x957   : > { %5735 = vrcp.f32 %v3510_v58 }
 0x95a   : > { %v3363_v20 = vpop.permute.xlu1 %3362 }
 0x95b   : > { %v5732_v1 = vpop.eup %5731  ;;  %v7629_v46 = vpop.permute.xlu2 %3394  ;;  %v3509_v11 = vadd.f32 %v3363_v20, %v7372_v49 }
 0x95c   : > { %v5734_v42 = vpop.eup %5733  ;;  %4681 = vperm.xlu0 %5553, %v4647_v54   ;;  %3632 = vperm.xlu2 %5552, %v5732_v1   ;;  %v4661_v24 = vmul.f32 %v5732_v1, %v7625_v2  ;;  %v3514_v37 = vadd.f32 %v7629_v46, %v7361_v29 }
 0x95d   : > { %3635 = vperm.xlu1 %5551, %v5734_v42   ;;  %v7654_v13 = vpop.eup %5735  ;;  %v4662_v23 = vmul.f32 %v5734_v42, %v7625_v2 }
 0x962   : > { %v3376_v26 = vpop.permute.xlu1 %3375 }
 0x963   : > { %v3408_v0 = vpop.permute.xlu2 %3407 }
 0x964   : > { %4691 = vperm.xlu0 %5553, %v4649_v55   ;;  %4716 = vperm.xlu2 %5552, %v4654_v21   ;;  %v3516_v47 = vadd.f32 %v3408_v0, %v7354_v45  ;;  %v3511_v45 = vadd.f32 %v3376_v26, %v7356_v30 }
 0x965   : > { %4686 = vperm.xlu1 %5551, %v4648_v10  }
 0x96a   : > { %v3389_v17 = vpop.permute.xlu1 %3388 }
 0x96b   : > { %v7639_v6 = vpop.permute.xlu2 %3420  ;;  %v3513_v5 = vadd.f32 %v3389_v17, %v7347_v15  ;;  %v4659_v15 = vmul.f32 %v5730_v27, %v7625_v2 }
 0x96c   : > { %4701 = vperm.xlu0 %5553, %v4651_v48   ;;  %4731 = vperm.xlu2 %5552, %v4657_v36  }
 0x96d   : > { %4696 = vperm.xlu1 %5551, %v4650_v16   ;;  %5737 = vrcp.f32 %v3513_v5 }
 0x96e   : > { %5739 = vrcp.f32 %v3516_v47 }
 0x96f   : > { %5741 = vrcp.f32 %v3509_v11 }
 0x972   : > { %v3402_v25 = vpop.permute.xlu1 %3401 }
 0x973   : > { %v7647_v4 = vpop.permute.xlu2 %3433  ;;  %v7661_v19 = vpop.eup %5737 }
 0x974   : > { %4711 = vperm.xlu0 %5553, %v4653_v33   ;;  %4746 = vperm.xlu2 %5552, %v4660_v39   ;;  %v7671_v62 = vpop.eup %5739  ;;  %v3520_v55 = vadd.f32 %v7647_v4, %v7370_v60 }
 0x975   : > { %4706 = vperm.xlu1 %5551, %v4652_v7   ;;  %v5742_v49 = vpop.eup %5741 }
 0x976   : > { %v4663_v21 = vmul.f32 %v5742_v49, %v7625_v2 }
 0x97a   : > { %v3415_v50 = vpop.permute.xlu1 %3414 }
 0x97b   : > { %v3447_v59 = vpop.permute.xlu2 %3446 }
 0x97c   : > { %3641 = vperm.xlu2 %5552, %v7654_v13   ;;  %4726 = vperm.xlu0 %5553, %v4656_v63   ;;  %v3522_v30 = vadd.f32 %v3447_v59, %v7364_v52  ;;  %v3515_v52 = vadd.f32 %v3402_v25, %v7386_v12  ;;  %v7723_v59 = vpop.f32.mrf.mxu2 }
 0x97d   : > { %4721 = vperm.xlu1 %5551, %v4655_v35  }
 0x982   : > { %v3428_v18 = vpop.permute.xlu1 %3427 }
 0x983   : > { %v7663_v31 = vpop.permute.xlu2 %3459  ;;  %v3519_v61 = vadd.f32 %v3428_v18, %v7359_v51  ;;  %v3512_v51 = vadd.f32 %v7623_v3, %v7379_v32  ;;  %v3517_v3 = vadd.f32 %v3415_v50, %v7367_v40  ;;  %v3518_v40 = vadd.f32 %v7639_v6, %v7400_v34  ;;  %v7726_v18 = vpop.f32.mrf.mxu3 }
 0x984   : > { %3650 = vperm.xlu2 %5552, %v7661_v19   ;;  %4741 = vperm.xlu0 %5553, %v4659_v15  }
 0x985   : > { %4736 = vperm.xlu1 %5551, %v4658_v8   ;;  %5743 = vrcp.f32 %v3519_v61 }
 0x986   : > { %5745 = vrcp.f32 %v3511_v45 }
 0x987   : > { %5747 = vrcp.f32 %v3512_v51 }
 0x988   : > { %5749 = vrcp.f32 %v3522_v30 }
 0x989   : > { %5751 = vrcp.f32 %v3514_v37  ;;  %v7744_v37 = vpop.f32.mrf.mxu2 }
 0x98a   : > { %v3441_v38 = vpop.permute.xlu1 %3440  ;;  %5753 = vrcp.f32 %v3515_v52 }
 0x98b   : > { %v7680_v27 = vpop.eup %5743  ;;  %5755 = vrcp.f32 %v3517_v3  ;;  %v3521_v6 = vadd.f32 %v3441_v38, %v7413_v57  ;;  %v7718_v57 = vpop.f32.mrf.mxu1 }
 0x98c   : > { %v3594_v14 = vpop.permute.xlu2 %3593  ;;  %3659 = vperm.xlu2 %5552, %v7671_v62   ;;  %4756 = vperm.xlu0 %5553, %v4662_v23   ;;  %v7682_v44 = vpop.eup %5745  ;;  %5757 = vrcp.f32 %v3518_v40 }
 0x98d   : > { %4751 = vperm.xlu1 %5551, %v4661_v24   ;;  %v5748_v32 = vpop.eup %5747  ;;  %v3686_v46 = vperm.slane %v3594_v14, %v6785_v41  ;;  %5759 = vrcp.f32 %v3520_v55  ;;  %v3910_v52 = vpop.f32.mrf.mxu3  ;;  %v4665_v40 = vmul.f32 %v7682_v44, %v7625_v2  ;;  %v4667_v55 = vmul.f32 %v7661_v19, %v7625_v2 }
 0x98e   : > { %v7688_v29 = vpop.eup %5749  ;;  %v4666_v25 = vmul.f32 %v5748_v32, %v7625_v2  ;;  %5761 = vrcp.f32 %v3521_v6  ;;  %v4670_v6 = vmul.f32 %v7671_v62, %v7625_v2 }
 0x98f   : > { %v7690_v1 = vpop.eup %5751 }
 0x990   : > { %v5754_v0 = vpop.eup %5753  ;;  %v4668_v19 = vmul.f32 %v7690_v1, %v7625_v2 }
 0x991   : > { %v7702_v17 = vpop.eup %5755  ;;  %v4669_v35 = vmul.f32 %v5754_v0, %v7625_v2 }
 0x992   : > { %v3454_v56 = vpop.permute.xlu1 %3453  ;;  %v5758_v33 = vpop.eup %5757  ;;  %v4671_v62 = vmul.f32 %v7702_v17, %v7625_v2 }
 0x993   : > { %v3523_v58 = vadd.f32 %v3454_v56, %v7375_v9  ;;  %v7712_v4 = vpop.eup %5759  ;;  %v3524_v9 = vadd.f32 %v7663_v31, %v7426_v43  ;;  %v4672_v24 = vmul.f32 %v5758_v33, %v7625_v2  ;;  %v7740_v51 = vpop.f32.mrf.mxu1 }
 0x994   : > { %v3600_v20 = vpop.permute.xlu2 %3599  ;;  %3668 = vperm.xlu2 %5552, %v7680_v27   ;;  %3638 = vperm.xlu0 %5553, %v5742_v49   ;;  %v5762_v47 = vpop.eup %5761  ;;  %v4664_v49 = vmul.f32 %v7654_v13, %v7625_v2  ;;  %v5767_v13 = vld [vmem:[%s5866_s30 + $0x38] sm:$0xff] }
 0x995   : > { %3644 = vperm.xlu1 %5551, %v7682_v44   ;;  %v3689_v48 = vperm.slane %v3600_v20, %v6785_v41  ;;  %5763 = vrcp.f32 %v3523_v58  ;;  %v3833_v58 = vpop.f32.mrf.mxu0 }
 0x996   : > { %5765 = vrcp.f32 %v3524_v9 }
 0x99b   : > { %v3591_v54 = vpop.permute.xlu1 %3590  ;;  %v7729_v11 = vpop.eup %5763 }
 0x99c   : > { %v3609_v42 = vpop.permute.xlu2 %3608  ;;  %v3685_v26 = vperm.slane %v3591_v54, %v6524_v22  ;;  %3677 = vperm.xlu2 %5552, %v7688_v29   ;;  %3647 = vperm.xlu0 %5553, %v5748_v32   ;;  %v5766_v14 = vpop.eup %5765 }
 0x99d   : > { %3653 = vperm.xlu1 %5551, %v7690_v1   ;;  %v3694_v61 = vperm.slane %v3609_v42, %v6524_v22 }
 0x99e   : > { %v3687_v12 = vsel %vm1899_vm4, %v3686_v46, %v3685_v26 }
 0x9a3   : > { %v3597_v10 = vpop.permute.xlu1 %3596 }
 0x9a4   : > { %v3615_v36 = vpop.permute.xlu2 %3614  ;;  %v3688_v16 = vperm.slane %v3597_v10, %v6524_v22  ;;  %4761 = vperm.xlu2 %5552, %v4663_v21   ;;  %3656 = vperm.xlu0 %5553, %v5754_v0   ;;  %v7768_v21 = vpop.f32.mrf.mxu2 }
 0x9a5   : > { %3662 = vperm.xlu1 %5551, %v7702_v17   ;;  %v3697_v56 = vperm.slane %v3615_v36, %v6524_v22  ;;  %v3958_v0 = vpop.f32.mrf.mxu1  ;;  %v5771_v17 = vld [vmem:[%s5866_s30 + $0x8] sm:$0xff] }
 0x9a6   : > { %v3690_v34 = vsel %vm1899_vm4, %v3689_v48, %v3688_v16  ;;  %v3606_v7 = vpop.permute.xlu0 %3605 }
 0x9a7   : > { %v3733_v60 = vsel %vm1946_vm5, %v3690_v34, %v3687_v12  ;;  %v3692_v63 = vperm.slane %v3606_v7, %v6785_v41  ;;  %v4675_v12 = vmul.f32 %v5762_v47, %v7625_v2  ;;  %v5768_v34 = vld [vmem:[%s5866_s30 + $0x50] sm:$0xff] }
 0x9ab   : > { %v3603_v39 = vpop.permute.xlu1 %3602 }
 0x9ac   : > { %4776 = vperm.xlu2 %5552, %v4666_v25   ;;  %3665 = vperm.xlu0 %5553, %v5758_v33   ;;  %v7715_v5 = vpop.permute.xlu2 %3623  ;;  %v3691_v50 = vperm.slane %v3603_v39, %v6524_v22  ;;  %v3985_v25 = vpop.f32.mrf.mxu2 }
 0x9ad   : > { %3671 = vperm.xlu1 %5551, %v7712_v4  }
 0x9ae   : > { %v3693_v15 = vsel %vm1899_vm4, %v3692_v63, %v3691_v50  ;;  %v5769_v63 = vld [vmem:[%s5866_s30 + $0x68] sm:$0xff] }
 0x9af   : > { %v3734_v43 = vsel %vm1948_vm6, %v3693_v15, %v3733_v60  ;;  %v4678_v60 = vmul.f32 %v5766_v14, %v7625_v2  ;;  %v4673_v15 = vmul.f32 %v7680_v27, %v7625_v2 }
 0x9b3   : > { %v3612_v8 = vpop.permute.xlu1 %3611 }
 0x9b4   : > { %v3695_v45 = vperm.slane %v3612_v8, %v6785_v41  ;;  %4791 = vperm.xlu2 %5552, %v4669_v35   ;;  %3674 = vperm.xlu0 %5553, %v5762_v47   ;;  %v5770_v35 = vld [vmem:[%s5866_s30] sm:$0xff]  ;;  %v3835_v8 = vpop.f32.mrf.mxu0 }
 0x9b5   : > { %3680 = vperm.xlu1 %5551, %v7729_v11  }
 0x9b6   : > { %v3696_v31 = vsel %vm1899_vm4, %v3695_v45, %v3694_v61  ;;  %v7736_v38 = vpop.permute.xlu2 %3632 }
 0x9b7   : > { %v3735_v23 = vsel %vm1950_vm7, %v3696_v31, %v3734_v43 }
 0x9bb   : > { %v3618_v30 = vpop.permute.xlu1 %3617 }
 0x9bc   : > { %v3698_v20 = vperm.slane %v3618_v30, %v6785_v41  ;;  %4806 = vperm.xlu2 %5552, %v4672_v24   ;;  %3683 = vperm.xlu0 %5553, %v5766_v14   ;;  %v5772_v14 = vld [vmem:[%s5866_s30 + $0x10] sm:$0xff]  ;;  %v4674_v30 = vmul.f32 %v7712_v4, %v7625_v2  ;;  %v5773_v4 = vld [vmem:[%s5866_s30 + $0x18] sm:$0xff] }
 0x9bd   : > { %4766 = vperm.xlu1 %5551, %v4664_v49   ;;  %v4676_v49 = vmul.f32 %v7688_v29, %v7625_v2 }
 0x9be   : > { %v3699_v32 = vsel %vm1899_vm4, %v3698_v20, %v3697_v56  ;;  %v4717_v3 = vpop.permute.xlu2 %4716  ;;  %v7749_v54 = vpop.permute.xlu0 %3620 }
 0x9bf   : > { %v7752_v46 = vsel %vm1952_vm8, %v3699_v32, %v3735_v23  ;;  %v4846_v42 = vmul.f32 %v4717_v3, %v3910_v52 }
 0x9c1   : > { %v4878_v26 = vadd.f32 %v5767_v13, %v4846_v42  ;;  %v5774_v42 = vld [vmem:[%s5866_s30 + $0x20] sm:$0xff]  ;;  %v4677_v13 = vmul.f32 %v7729_v11, %v7625_v2 }
 0x9c3   : > { %5152 = vst.msk [vmem:[%s7758_s17 + $0x38] sm:$0xff] %vm379_vm0, %v4878_v26  ;;  %v3933_v26 = vpop.f32.mrf.mxu0 }
 0x9c4   : > { %4821 = vperm.xlu2 %5552, %v4675_v12   ;;  %4771 = vperm.xlu0 %5553, %v4665_v40   ;;  %v3700_v40 = vperm.slane %v7749_v54, %v6524_v22  ;;  %v5776_v54 = vld [vmem:[%s5866_s30 + $0x30] sm:$0xff] }
 0x9c5   : > { %4781 = vperm.xlu1 %5551, %v4667_v55  }
 0x9c6   : > { %v4732_v10 = vpop.permute.xlu2 %4731  ;;  %v7770_v48 = vpop.permute.xlu1 %3626 }
 0x9c7   : > { %v4849_v36 = vmul.f32 %v4732_v10, %v3958_v0  ;;  %v7772_v16 = vpop.permute.xlu0 %3629  ;;  %v3703_v0 = vperm.slane %v7770_v48, %v6524_v22 }
 0x9c8   : > { %v3704_v10 = vperm.slane %v7772_v16, %v6785_v41 }
 0x9c9   : > { %v4881_v44 = vadd.f32 %v5768_v34, %v4849_v36  ;;  %v3701_v36 = vperm.slane %v7715_v5, %v6785_v41 }
 0x9ca   : > { %v3705_v5 = vsel %vm1899_vm4, %v3704_v10, %v3703_v0  ;;  %v5784_v10 = vld [vmem:[%s5866_s30 + $0x98] sm:$0xff] }
 0x9cb   : > { %5155 = vst.msk [vmem:[%s7758_s17 + $0x50] sm:$0xff] %vm379_vm0, %v4881_v44  ;;  %v5775_v44 = vld [vmem:[%s5866_s30 + $0x28] sm:$0xff]  ;;  %v3935_v48 = vpop.f32.mrf.mxu0 }
 0x9cc   : > { %4836 = vperm.xlu2 %5552, %v4678_v60   ;;  %4786 = vperm.xlu0 %5553, %v4668_v19  }
 0x9cd   : > { %4796 = vperm.xlu1 %5551, %v4670_v6  }
 0x9ce   : > { %v4747_v33 = vpop.permute.xlu2 %4746 }
 0x9cf   : > { %v4852_v39 = vmul.f32 %v4747_v33, %v3985_v25  ;;  %v7782_v7 = vpop.permute.xlu1 %3635  ;;  %v4682_v50 = vpop.permute.xlu0 %4681 }
 0x9d0   : > { %v4839_v9 = vmul.f32 %v4682_v50, %v3833_v58  ;;  %v3707_v34 = vperm.slane %v7782_v7, %v6785_v41 }
 0x9d1   : > { %v4884_v1 = vadd.f32 %v5769_v63, %v4852_v39 }
 0x9d2   : > { %v4871_v47 = vadd.f32 %v5770_v35, %v4839_v9  ;;  %v5777_v9 = vld [vmem:[%s5866_s30 + $0x40] sm:$0xff] }
 0x9d3   : > { %5158 = vst.msk [vmem:[%s7758_s17 + $0x68] sm:$0xff] %vm379_vm0, %v4884_v1  ;;  %v5778_v1 = vld [vmem:[%s5866_s30 + $0x48] sm:$0xff] }
 0x9d4   : > { %5145 = vst.msk [vmem:[%s7758_s17] sm:$0xff] %vm379_vm0, %v4871_v47  ;;  %4801 = vperm.xlu0 %5553, %v4671_v62   ;;  %v3960_v47 = vpop.f32.mrf.mxu1  ;;  %v4008_v62 = vpop.f32.mrf.mxu3 }
 0x9d5   : > { %4811 = vperm.xlu1 %5551, %v4673_v15  }
 0x9d6   : > { %v7794_v61 = vpop.permute.xlu2 %3641 }
 0x9d7   : > { %v4687_v45 = vpop.permute.xlu1 %4686  ;;  %v4692_v43 = vpop.permute.xlu0 %4691 }
 0x9d8   : > { %v4840_v31 = vmul.f32 %v4687_v45, %v3835_v8  ;;  %v4841_v23 = vmul.f32 %v4692_v43, %v7718_v57 }
 0x9da   : > { %v4872_v24 = vadd.f32 %v5771_v17, %v4840_v31  ;;  %v4873_v27 = vadd.f32 %v5772_v14, %v4841_v23  ;;  %v4033_v31 = vpop.f32.mrf.mxu0  ;;  %v5779_v23 = vld [vmem:[%s5866_s30 + $0x58] sm:$0xff] }
 0x9dc   : > { %5146 = vst.msk [vmem:[%s7758_s17 + $0x8] sm:$0xff] %vm379_vm0, %v4872_v24  ;;  %4816 = vperm.xlu0 %5553, %v4674_v30   ;;  %v5780_v24 = vld [vmem:[%s5866_s30 + $0x60] sm:$0xff]  ;;  %v4010_v30 = vpop.f32.mrf.mxu3 }
 0x9dd   : > { %5147 = vst.msk [vmem:[%s7758_s17 + $0x10] sm:$0xff] %vm379_vm0, %v4873_v27  ;;  %4826 = vperm.xlu1 %5551, %v4676_v49   ;;  %v7863_v27 = vpop.f32.mrf.mxu1 }
 0x9de   : > { %v7807_v57 = vpop.permute.xlu2 %3650 }
 0x9df   : > { %v4697_v56 = vpop.permute.xlu1 %4696  ;;  %v4702_v20 = vpop.permute.xlu0 %4701 }
 0x9e0   : > { %v4842_v52 = vmul.f32 %v4697_v56, %v7740_v51  ;;  %v4843_v32 = vmul.f32 %v4702_v20, %v7723_v59 }
 0x9e2   : > { %v4874_v3 = vadd.f32 %v5773_v4, %v4842_v52  ;;  %v4875_v29 = vadd.f32 %v5774_v42, %v4843_v32  ;;  %v5781_v4 = vld [vmem:[%s5866_s30 + $0x80] sm:$0xff]  ;;  %v5782_v42 = vld [vmem:[%s5866_s30 + $0x70] sm:$0xff] }
 0x9e4   : > { %5148 = vst.msk [vmem:[%s7758_s17 + $0x18] sm:$0xff] %vm379_vm0, %v4874_v3  ;;  %4831 = vperm.xlu0 %5553, %v4677_v13   ;;  %v5783_v13 = vld [vmem:[%s5866_s30 + $0x78] sm:$0xff] }
 0x9e5   : > { %5149 = vst.msk [vmem:[%s7758_s17 + $0x20] sm:$0xff] %vm379_vm0, %v4875_v29  ;;  %5554 = vset.pattern.permute.xlu1 %v6487_v28 }
 0x9e6   : > { %v7820_v51 = vpop.permute.xlu2 %3659 }
 0x9e7   : > { %v4707_v59 = vpop.permute.xlu1 %4706  ;;  %v4712_v12 = vpop.permute.xlu0 %4711 }
 0x9e8   : > { %v4844_v11 = vmul.f32 %v4707_v59, %v7744_v37  ;;  %v4845_v55 = vmul.f32 %v4712_v12, %v7726_v18  ;;  %v3706_v37 = vperm.slane %v7736_v38, %v6524_v22  ;;  %v3702_v18 = vsel %vm1899_vm4, %v3701_v36, %v3700_v40  ;;  %v7874_v59 = vpop.f32.mrf.mxu0  ;;  %v4060_v12 = vpop.f32.mrf.mxu1 }
 0x9e9   : > { %v3737_v38 = vsel %vm1954_vm9, %v3702_v18, %v7752_v46 }
 0x9ea   : > { %v4876_v60 = vadd.f32 %v5775_v44, %v4844_v11  ;;  %v4877_v19 = vadd.f32 %v5776_v54, %v4845_v55  ;;  %v3708_v16 = vsel %vm1899_vm4, %v3707_v34, %v3706_v37  ;;  %v3738_v33 = vsel %vm1956_vm10, %v3705_v5, %v3737_v38  ;;  %v4108_v34 = vpop.f32.mrf.mxu3  ;;  %v7881_v44 = vpop.f32.mrf.mxu2 }
 0x9eb   : > { %v3739_v50 = vsel %vm1958_vm11, %v3708_v16, %v3738_v33  ;;  %v3710_v37 = vperm.slane %v7794_v61, %v6785_v41  ;;  %v3715_v16 = vperm.slane %v7807_v57, %v6524_v22  ;;  %v5785_v33 = vld [vmem:[%s5866_s30 + $0xb0] sm:$0xff] }
 0x9ec   : > { %5150 = vst.msk [vmem:[%s7758_s17 + $0x28] sm:$0xff] %vm379_vm0, %v4876_v60  ;;  %5555 = vset.pattern.permute.xlu0 %v6501_v53 }
 0x9ed   : > { %5151 = vst.msk [vmem:[%s7758_s17 + $0x30] sm:$0xff] %vm379_vm0, %v4877_v19 }
 0x9ee   : > { %v7846_v6 = vpop.permute.xlu2 %3668 }
 0x9ef   : > { %v4722_v58 = vpop.permute.xlu1 %4721  ;;  %v4727_v25 = vpop.permute.xlu0 %4726 }
 0x9f0   : > { %v4847_v39 = vmul.f32 %v4722_v58, %v3933_v26  ;;  %v4848_v7 = vmul.f32 %v4727_v25, %v3935_v48  ;;  %v7885_v60 = vpop.f32.mrf.mxu0 }
 0x9f2   : > { %v4879_v63 = vadd.f32 %v5777_v9, %v4847_v39  ;;  %v4880_v35 = vadd.f32 %v5778_v1, %v4848_v7  ;;  %3749 = vxpose.xlu2.b32.start [1/2] (short) (narrow) %v3739_v50, 16  ;;  %v7902_v9 = vpop.f32.mrf.mxu3  ;;  %v7905_v1 = vpop.f32.mrf.mxu2 }
 0x9f4   : > { %5153 = vst.msk [vmem:[%s7758_s17 + $0x40] sm:$0xff] %vm379_vm0, %v4879_v63 }
 0x9f5   : > { %5154 = vst.msk [vmem:[%s7758_s17 + $0x48] sm:$0xff] %vm379_vm0, %v4880_v35 }
 0x9f6   : > { %v7858_v46 = vpop.permute.xlu2 %3677 }
 0x9f7   : > { %v4737_v15 = vpop.permute.xlu1 %4736  ;;  %v4742_v8 = vpop.permute.xlu0 %4741 }
 0x9f8   : > { %v4850_v45 = vmul.f32 %v4737_v15, %v3960_v47  ;;  %v4851_v43 = vmul.f32 %v4742_v8, %v7768_v21  ;;  %v4135_v35 = vpop.f32.mrf.mxu0 }
 0x9fa   : > { %v4882_v17 = vadd.f32 %v5779_v23, %v4850_v45  ;;  %v4883_v14 = vadd.f32 %v5780_v24, %v4851_v43  ;;  %v3719_v45 = vperm.slane %v7820_v51, %v6785_v41  ;;  %v5787_v51 = vld [vmem:[%s5866_s30 + $0xe0] sm:$0xff] }
 0x9fc   : > { %5156 = vst.msk [vmem:[%s7758_s17 + $0x58] sm:$0xff] %vm379_vm0, %v4882_v17 }
 0x9fd   : > { %5157 = vst.msk [vmem:[%s7758_s17 + $0x60] sm:$0xff] %vm379_vm0, %v4883_v14  ;;  %v7915_v14 = vpop.f32.mrf.mxu3 }
 0x9fe   : > { %v4762_v49 = vpop.permute.xlu2 %4761 }
 0x9ff   : > { %v4855_v21 = vmul.f32 %v4762_v49, %v4033_v31  ;;  %v4752_v56 = vpop.permute.xlu1 %4751  ;;  %v4757_v20 = vpop.permute.xlu0 %4756  ;;  %v5786_v31 = vld [vmem:[%s5866_s30 + $0xc8] sm:$0xff] }
 0xa00   : > { %v4853_v52 = vmul.f32 %v4752_v56, %v4008_v62  ;;  %v4854_v32 = vmul.f32 %v4757_v20, %v4010_v30  ;;  %v4183_v30 = vpop.f32.mrf.mxu2 }
 0xa01   : > { %v4887_v3 = vadd.f32 %v5781_v4, %v4855_v21 }
 0xa02   : > { %v4885_v29 = vadd.f32 %v5782_v42, %v4853_v52  ;;  %v4886_v26 = vadd.f32 %v5783_v13, %v4854_v32 }
 0xa03   : > { %5161 = vst.msk [vmem:[%s7758_s17 + $0x80] sm:$0xff] %vm379_vm0, %v4887_v3 }
 0xa04   : > { %5159 = vst.msk [vmem:[%s7758_s17 + $0x70] sm:$0xff] %vm379_vm0, %v4885_v29 }
 0xa05   : > { %5160 = vst.msk [vmem:[%s7758_s17 + $0x78] sm:$0xff] %vm379_vm0, %v4886_v26  ;;  %v4210_v32 = vpop.f32.mrf.mxu3 }
 0xa06   : > { %v4777_v40 = vpop.permute.xlu2 %4776 }
 0xa07   : > { %v4858_v11 = vmul.f32 %v4777_v40, %v4060_v12  ;;  %v3645_v55 = vpop.permute.xlu1 %3644  ;;  %v3639_v0 = vpop.permute.xlu0 %3638  ;;  %v5788_v12 = vld [vmem:[%s5866_s30 + $0xf8] sm:$0xff] }
 0xa08   : > { %v3709_v54 = vperm.slane %v3639_v0, %v6524_v22  ;;  %v3712_v38 = vperm.slane %v3645_v55, %v6524_v22 }
 0xa09   : > { %v4890_v36 = vadd.f32 %v5784_v10, %v4858_v11  ;;  %v3724_v10 = vperm.slane %v7846_v6, %v6524_v22 }
 0xa0a   : > { %v3711_v7 = vsel %vm1899_vm4, %v3710_v37, %v3709_v54 }
 0xa0b   : > { %5164 = vst.msk [vmem:[%s7758_s17 + $0x98] sm:$0xff] %vm379_vm0, %v4890_v36  ;;  %v3728_v36 = vperm.slane %v7858_v46, %v6785_v41 }
 0xa0e   : > { %v4792_v19 = vpop.permute.xlu2 %4791 }
 0xa0f   : > { %v4861_v18 = vmul.f32 %v4792_v19, %v4108_v34  ;;  %v3654_v5 = vpop.permute.xlu1 %3653  ;;  %v3648_v48 = vpop.permute.xlu0 %3647 }
 0xa10   : > { %v3716_v58 = vperm.slane %v3654_v5, %v6785_v41  ;;  %v3713_v25 = vperm.slane %v3648_v48, %v6785_v41 }
 0xa11   : > { %v4893_v39 = vadd.f32 %v5785_v33, %v4861_v18 }
 0xa12   : > { %v3717_v50 = vsel %vm1899_vm4, %v3716_v58, %v3715_v16  ;;  %v3714_v61 = vsel %vm1899_vm4, %v3713_v25, %v3712_v38  ;;  %v5789_v38 = vld [vmem:[%s5866_s30 + $0x88] sm:$0xff] }
 0xa13   : > { %5167 = vst.msk [vmem:[%s7758_s17 + $0xb0] sm:$0xff] %vm379_vm0, %v4893_v39  ;;  %v3740_v57 = vsel %vm1946_vm5, %v3714_v61, %v3711_v7  ;;  %v5790_v7 = vld [vmem:[%s5866_s30 + $0xa0] sm:$0xff]  ;;  %v5791_v61 = vld [vmem:[%s5866_s30 + $0x90] sm:$0xff] }
 0xa14   : > { %v3741_v63 = vsel %vm1948_vm6, %v3717_v50, %v3740_v57 }
 0xa16   : > { %v4807_v47 = vpop.permute.xlu2 %4806 }
 0xa17   : > { %v4864_v62 = vmul.f32 %v4807_v47, %v4135_v35  ;;  %v3663_v15 = vpop.permute.xlu1 %3662  ;;  %v3657_v8 = vpop.permute.xlu0 %3656 }
 0xa18   : > { %v3718_v43 = vperm.slane %v3657_v8, %v6524_v22  ;;  %v3721_v26 = vperm.slane %v3663_v15, %v6524_v22  ;;  %v5793_v15 = vld [vmem:[%s5866_s30 + $0xa8] sm:$0xff] }
 0xa19   : > { %v4896_v23 = vadd.f32 %v5786_v31, %v4864_v62 }
 0xa1a   : > { %v3720_v17 = vsel %vm1899_vm4, %v3719_v45, %v3718_v43  ;;  %v4158_v45 = vpop.f32.mrf.mxu1 }
 0xa1b   : > { %5170 = vst.msk [vmem:[%s7758_s17 + $0xc8] sm:$0xff] %vm379_vm0, %v4896_v23  ;;  %v3742_v24 = vsel %vm1950_vm7, %v3720_v17, %v3741_v63  ;;  %v5794_v17 = vld [vmem:[%s5866_s30 + $0xd0] sm:$0xff] }
 0xa1e   : > { %v4822_v49 = vpop.permute.xlu2 %4821 }
 0xa1f   : > { %v4867_v21 = vmul.f32 %v4822_v49, %v4183_v30  ;;  %v3672_v56 = vpop.permute.xlu1 %3671  ;;  %v3666_v20 = vpop.permute.xlu0 %3665 }
 0xa20   : > { %v3722_v3 = vperm.slane %v3666_v20, %v6785_v41  ;;  %v3725_v11 = vperm.slane %v3672_v56, %v6785_v41 }
 0xa21   : > { %v4899_v52 = vadd.f32 %v5787_v51, %v4867_v21  ;;  %v4185_v21 = vpop.f32.mrf.mxu2 }
 0xa22   : > { %v3723_v55 = vsel %vm1899_vm4, %v3722_v3, %v3721_v26  ;;  %v3726_v34 = vsel %vm1899_vm4, %v3725_v11, %v3724_v10  ;;  %v4160_v49 = vpop.f32.mrf.mxu1 }
 0xa23   : > { %5173 = vst.msk [vmem:[%s7758_s17 + $0xe0] sm:$0xff] %vm379_vm0, %v4899_v52  ;;  %v3743_v54 = vsel %vm1952_vm8, %v3723_v55, %v3742_v24  ;;  %v5795_v24 = vld [vmem:[%s5866_s30 + $0xc0] sm:$0xff] }
 0xa24   : > { %v3744_v16 = vsel %vm1954_vm9, %v3726_v34, %v3743_v54 }
 0xa26   : > { %v4837_v4 = vpop.permute.xlu2 %4836 }
 0xa27   : > { %v4870_v42 = vmul.f32 %v4837_v4, %v4210_v32  ;;  %v3681_v29 = vpop.permute.xlu1 %3680  ;;  %v3675_v13 = vpop.permute.xlu0 %3674  ;;  %v5796_v32 = vld [vmem:[%s5866_s30 + $0xe8] sm:$0xff]  ;;  %v5797_v4 = vld [vmem:[%s5866_s30 + $0xd8] sm:$0xff] }
 0xa28   : > { %v3727_v0 = vperm.slane %v3675_v13, %v6524_v22  ;;  %v3730_v5 = vperm.slane %v3681_v29, %v6524_v22  ;;  %v5798_v13 = vld [vmem:[%s5866_s30 + $0xf0] sm:$0xff] }
 0xa29   : > { %v4902_v40 = vadd.f32 %v5788_v12, %v4870_v42 }
 0xa2a   : > { %v3729_v19 = vsel %vm1899_vm4, %v3728_v36, %v3727_v0 }
 0xa2b   : > { %5176 = vst.msk [vmem:[%s7758_s17 + $0xf8] sm:$0xff] %vm379_vm0, %v4902_v40  ;;  %v3745_v46 = vsel %vm1956_vm10, %v3729_v19, %v3744_v16 }
 0xa2f   : > { %v4767_v37 = vpop.permute.xlu1 %4766  ;;  %v3684_v18 = vpop.permute.xlu0 %3683 }
 0xa30   : > { %v4856_v48 = vmul.f32 %v4767_v37, %v7874_v59  ;;  %v3731_v6 = vperm.slane %v3684_v18, %v6785_v41 }
 0xa32   : > { %v4888_v58 = vadd.f32 %v5789_v38, %v4856_v48  ;;  %v3732_v25 = vsel %vm1899_vm4, %v3731_v6, %v3730_v5  ;;  %v4290_v6 = vpop.f32.mrf.mxu1  ;;  %v4265_v38 = vpop.f32.mrf.mxu0 }
 0xa33   : > { %v3746_v33 = vsel %vm1958_vm11, %v3732_v25, %v3745_v46 }
 0xa34   : > { %5162 = vst.msk [vmem:[%s7758_s17 + $0x88] sm:$0xff] %vm379_vm0, %v4888_v58  ;;  %3750 = vxpose.xlu2.b32.end [2/2] (short) (narrow) %v3746_v33, 16  ;;  %v4315_v33 = vpop.f32.mrf.mxu2 }
 0xa37   : > { %v4782_v22 = vpop.permute.xlu1 %4781  ;;  %v4772_v59 = vpop.permute.xlu0 %4771 }
 0xa38   : > { %v4859_v41 = vmul.f32 %v4782_v22, %v7881_v44  ;;  %v4857_v39 = vmul.f32 %v4772_v59, %v7863_v27  ;;  %v5792_v27 = vld [vmem:[%s5866_s30 + $0xb8] sm:$0xff] }
 0xa3a   : > { %v4891_v50 = vadd.f32 %v5790_v7, %v4859_v41  ;;  %v4889_v57 = vadd.f32 %v5791_v61, %v4857_v39  ;;  %v4340_v39 = vpop.f32.mrf.mxu3  ;;  %v4267_v7 = vpop.f32.mrf.mxu0 }
 0xa3c   : > { %5165 = vst.msk [vmem:[%s7758_s17 + $0xa0] sm:$0xff] %vm379_vm0, %v4891_v50 }
 0xa3d   : > { %5163 = vst.msk [vmem:[%s7758_s17 + $0x90] sm:$0xff] %vm379_vm0, %v4889_v57 }
 0xa3f   : > { %v4797_v63 = vpop.permute.xlu1 %4796  ;;  %v4787_v35 = vpop.permute.xlu0 %4786 }
 0xa40   : > { %v4862_v47 = vmul.f32 %v4797_v63, %v7902_v9  ;;  %v4860_v44 = vmul.f32 %v4787_v35, %v7905_v1 }
 0xa42   : > { %v4894_v62 = vadd.f32 %v5792_v27, %v4862_v47  ;;  %v4892_v8 = vadd.f32 %v5793_v15, %v4860_v44  ;;  %v4365_v50 = vpop.f32.mrf.mxu0  ;;  %v4342_v61 = vpop.f32.mrf.mxu3 }
 0xa44   : > { %5168 = vst.msk [vmem:[%s7758_s17 + $0xb8] sm:$0xff] %vm379_vm0, %v4894_v62 }
 0xa45   : > { %5166 = vst.msk [vmem:[%s7758_s17 + $0xa8] sm:$0xff] %vm379_vm0, %v4892_v8 }
 0xa47   : > { %v4812_v43 = vpop.permute.xlu1 %4811  ;;  %v4802_v31 = vpop.permute.xlu0 %4801 }
 0xa48   : > { %v4865_v23 = vmul.f32 %v4812_v43, %v4158_v45  ;;  %v4863_v9 = vmul.f32 %v4802_v31, %v7885_v60  ;;  %v4292_v45 = vpop.f32.mrf.mxu1  ;;  %v4317_v43 = vpop.f32.mrf.mxu2 }
 0xa4a   : > { %v4897_v1 = vadd.f32 %v5794_v17, %v4865_v23  ;;  %v4895_v30 = vadd.f32 %v5795_v24, %v4863_v9 }
 0xa4c   : > { %5171 = vst.msk [vmem:[%s7758_s17 + $0xd0] sm:$0xff] %vm379_vm0, %v4897_v1 }
 0xa4d   : > { %5169 = vst.msk [vmem:[%s7758_s17 + $0xc0] sm:$0xff] %vm379_vm0, %v4895_v30 }
 0xa4f   : > { %v4827_v56 = vpop.permute.xlu1 %4826  ;;  %v4817_v20 = vpop.permute.xlu0 %4816 }
 0xa50   : > { %v4868_v51 = vmul.f32 %v4827_v56, %v4185_v21  ;;  %v4866_v52 = vmul.f32 %v4817_v20, %v4160_v49  ;;  %v4390_v1 = vpop.f32.mrf.mxu1  ;;  %v4415_v24 = vpop.f32.mrf.mxu2 }
 0xa51   : > { %v4440_v20 = vpop.f32.mrf.mxu3 }
 0xa52   : > { %v4900_v60 = vadd.f32 %v5796_v32, %v4868_v51  ;;  %v4898_v3 = vadd.f32 %v5797_v4, %v4866_v52 }
 0xa54   : > { %5174 = vst.msk [vmem:[%s7758_s17 + $0xe8] sm:$0xff] %vm379_vm0, %v4900_v60 }
 0xa55   : > { %5172 = vst.msk [vmem:[%s7758_s17 + $0xd8] sm:$0xff] %vm379_vm0, %v4898_v3 }
 0xa57   : > { %v4832_v42 = vpop.permute.xlu0 %4831 }
 0xa58   : > { %v4869_v29 = vmul.f32 %v4832_v42, %v7915_v14  ;;  %v4392_v56 = vpop.f32.mrf.mxu1 }
 0xa5a   : > { %v4901_v26 = vadd.f32 %v5798_v13, %v4869_v29  ;;  %v4417_v29 = vpop.f32.mrf.mxu2 }
 0xa5c   : > { %5175 = vst.msk [vmem:[%s7758_s17 + $0xf0] sm:$0xff] %vm379_vm0, %v4901_v26 }
 0xa60   : > { %v4490_v13 = vpop.f32.mrf.mxu1 }
 0xa96   : > { %5556 = vset.pattern.permute.xlu2 %v6487_v28 }
 0xac5   : > { %v3765_v12 = vpop.trf.xlu2 }
 0xac6   : > { %v4903_v40 = vmul.f32 %v7625_v2, %v3765_v12 }
 0xac8   : > { %v4918_v11 = vperm.slane %v4903_v40, 1  ;;  %v4905_v55 = vperm.slane %v4903_v40, 0  ;;  %v4931_v0 = vperm.slane %v4903_v40, 2  ;;  %v4944_v14 = vperm.slane %v4903_v40, 3 }
 0xac9   : > { %v4957_v10 = vperm.slane %v4903_v40, 4  ;;  %v4970_v36 = vperm.slane %v4903_v40, 5  ;;  %v4983_v37 = vperm.slane %v4903_v40, 6  ;;  %v4996_v18 = vperm.slane %v4903_v40, 7 }
 0xaca   : > { %4923 = vperm.xlu2 %5556, %v4918_v11   ;;  %4916 = vperm.xlu0 %5555, %v4905_v55  }
 0xacb   : > { %4910 = vperm.xlu1 %5554, %v4905_v55  }
 0xacd   : > { %v3766_v34 = vpop.trf.xlu2 }
 0xace   : > { %v7988_v54 = vmul.f32 %v7625_v2, %v3766_v34 }
 0xad0   : > { %v5009_v19 = vperm.slane %v7988_v54, 0  ;;  %v5035_v5 = vperm.slane %v7988_v54, 2  ;;  %v5022_v2 = vperm.slane %v7988_v54, 1  ;;  %v5074_v48 = vperm.slane %v7988_v54, 5 }
 0xad1   : > { %v5048_v58 = vperm.slane %v7988_v54, 3  ;;  %v5100_v25 = vperm.slane %v7988_v54, 7  ;;  %v5061_v41 = vperm.slane %v7988_v54, 4  ;;  %v5087_v8 = vperm.slane %v7988_v54, 6 }
 0xad2   : > { %4936 = vperm.xlu2 %5556, %v4931_v0   ;;  %5558 = vset.pattern.permute.xlu0 %v6487_v28 }
 0xad3   : > { %5557 = vset.pattern.permute.xlu1 %v6501_v53 }
 0xada   : > { %5559 = vset.pattern.permute.xlu2 %v6501_v53  ;;  %4949 = vperm.xlu0 %5558, %v4944_v14  }
 0xadb   : > { %4929 = vperm.xlu1 %5557, %v4918_v11  }
 0xae2   : > { %4955 = vperm.xlu2 %5559, %v4944_v14   ;;  %5561 = vset.pattern.permute.xlu0 %v6501_v53 }
 0xae3   : > { %4942 = vperm.xlu1 %5557, %v4931_v0  }
 0xaea   : > { %4968 = vperm.xlu2 %5559, %v4957_v10   ;;  %4981 = vperm.xlu0 %5561, %v4970_v36  }
 0xaeb   : > { %5560 = vset.pattern.permute.xlu1 %v6487_v28 }
 0xaf2   : > { %5562 = vset.pattern.permute.xlu2 %v6487_v28  ;;  %5564 = vset.pattern.permute.xlu0 %v6487_v28 }
 0xaf3   : > { %4962 = vperm.xlu1 %5560, %v4957_v10   ;;  %v4515_v10 = vpop.f32.mrf.mxu2 }
 0xafa   : > { %4988 = vperm.xlu2 %5562, %v4983_v37   ;;  %5014 = vperm.xlu0 %5564, %v5009_v19  }
 0xafb   : > { %4975 = vperm.xlu1 %5560, %v4970_v36   ;;  %v4492_v36 = vpop.f32.mrf.mxu1 }
 0xb02   : > { %5001 = vperm.xlu2 %5562, %v4996_v18   ;;  %5567 = vset.pattern.permute.xlu0 %v6501_v53 }
 0xb03   : > { %5563 = vset.pattern.permute.xlu1 %v6501_v53 }
 0xb0a   : > { %5565 = vset.pattern.permute.xlu2 %v6501_v53  ;;  %5046 = vperm.xlu0 %5567, %v5035_v5  }
 0xb0b   : > { %4994 = vperm.xlu1 %5563, %v4983_v37   ;;  %v4517_v37 = vpop.f32.mrf.mxu2 }
 0xb12   : > { %5020 = vperm.xlu2 %5565, %v5009_v19   ;;  %5570 = vset.pattern.permute.xlu0 %v6487_v28  ;;  %v4442_v19 = vpop.f32.mrf.mxu3 }
 0xb13   : > { %5007 = vperm.xlu1 %5563, %v4996_v18  }
 0xb1a   : > { %5033 = vperm.xlu2 %5565, %v5022_v2   ;;  %5079 = vperm.xlu0 %5570, %v5074_v48  }
 0xb1b   : > { %5566 = vset.pattern.permute.xlu1 %v6487_v28 }
 0xb22   : > { %5568 = vset.pattern.permute.xlu2 %v6487_v28  ;;  %5573 = vset.pattern.permute.xlu0 %v6501_v53 }
 0xb23   : > { %5027 = vperm.xlu1 %5566, %v5022_v2  }
 0xb24   : > { %v4924_v16 = vpop.permute.xlu2 %4923 }
 0xb25   : > { %v5115_v46 = vmul.f32 %v4924_v16, %v4290_v6  ;;  %v4540_v6 = vpop.f32.mrf.mxu3 }
 0xb27   : > { %5179 = vst.msk [vmem:[%s8005_s20 + $0x10] sm:$0xff] %vm379_vm0, %v5115_v46 }
 0xb2a   : > { %5053 = vperm.xlu2 %5568, %v5048_v58   ;;  %5111 = vperm.xlu0 %5573, %v5100_v25  }
 0xb2b   : > { %5040 = vperm.xlu1 %5566, %v5035_v5  }
 0xb2c   : > { %v4937_v22 = vpop.permute.xlu2 %4936 }
 0xb2d   : > { %v5117_v59 = vmul.f32 %v4937_v22, %v4315_v33  ;;  %v4590_v22 = vpop.f32.mrf.mxu1 }
 0xb2f   : > { %5181 = vst.msk [vmem:[%s8005_s20 + $0x20] sm:$0xff] %vm379_vm0, %v5117_v59 }
 0xb32   : > { %5066 = vperm.xlu2 %5568, %v5061_v41  }
 0xb33   : > { %5569 = vset.pattern.permute.xlu1 %v6501_v53 }
 0xb3a   : > { %5571 = vset.pattern.permute.xlu2 %v6501_v53  ;;  %v4367_v53 = vpop.f32.mrf.mxu0 }
 0xb3b   : > { %5059 = vperm.xlu1 %5569, %v5048_v58  }
 0xb3c   : > { %v4956_v57 = vpop.permute.xlu2 %4955  ;;  %v4917_v63 = vpop.permute.xlu0 %4916 }
 0xb3d   : > { %v4911_v35 = vpop.permute.xlu1 %4910  ;;  %v5120_v47 = vmul.f32 %v4956_v57, %v4342_v61  ;;  %v5114_v44 = vmul.f32 %v4917_v63, %v4267_v7  ;;  %v4615_v63 = vpop.f32.mrf.mxu2 }
 0xb3e   : > { %v5113_v27 = vmul.f32 %v4911_v35, %v4265_v38  ;;  %v4592_v35 = vpop.f32.mrf.mxu1 }
 0xb3f   : > { %5184 = vst.msk [vmem:[%s8005_s20 + $0x38] sm:$0xff] %vm379_vm0, %v5120_v47 }
 0xb40   : > { %5177 = vst.msk [vmem:[%s8005_s20] sm:$0xff] %vm379_vm0, %v5113_v27 }
 0xb41   : > { %5178 = vst.msk [vmem:[%s8005_s20 + $0x8] sm:$0xff] %vm379_vm0, %v5114_v44 }
 0xb42   : > { %5085 = vperm.xlu2 %5571, %v5074_v48   ;;  %v4465_v4 = vpop.f32.mrf.mxu0 }
 0xb43   : > { %5072 = vperm.xlu1 %5569, %v5061_v41  }
 0xb44   : > { %v4969_v62 = vpop.permute.xlu2 %4968 }
 0xb45   : > { %v5122_v15 = vmul.f32 %v4969_v62, %v4367_v53 }
 0xb47   : > { %5186 = vst.msk [vmem:[%s8005_s20 + $0x48] sm:$0xff] %vm379_vm0, %v5122_v15 }
 0xb4a   : > { %5098 = vperm.xlu2 %5571, %v5087_v8   ;;  %v4467_v26 = vpop.f32.mrf.mxu0 }
 0xb4b   : > { %5572 = vset.pattern.permute.xlu1 %v6487_v28 }
 0xb4c   : > { %v4950_v31 = vpop.permute.xlu0 %4949 }
 0xb4d   : > { %v4930_v23 = vpop.permute.xlu1 %4929  ;;  %v5119_v9 = vmul.f32 %v4950_v31, %v4340_v39 }
 0xb4e   : > { %v5116_v17 = vmul.f32 %v4930_v23, %v4292_v45  ;;  %v4617_v45 = vpop.f32.mrf.mxu2 }
 0xb4f   : > { %5183 = vst.msk [vmem:[%s8005_s20 + $0x30] sm:$0xff] %vm379_vm0, %v5119_v9 }
 0xb50   : > { %5180 = vst.msk [vmem:[%s8005_s20 + $0x18] sm:$0xff] %vm379_vm0, %v5116_v17 }
 0xb52   : > { %v4565_v33 = vpop.f32.mrf.mxu0 }
 0xb53   : > { %5092 = vperm.xlu1 %5572, %v5087_v8  }
 0xb54   : > { %v4989_v30 = vpop.permute.xlu2 %4988 }
 0xb55   : > { %v4943_v49 = vpop.permute.xlu1 %4942  ;;  %v5125_v21 = vmul.f32 %v4989_v30, %v4415_v24 }
 0xb56   : > { %v5118_v28 = vmul.f32 %v4943_v49, %v4317_v43 }
 0xb57   : > { %5189 = vst.msk [vmem:[%s8005_s20 + $0x60] sm:$0xff] %vm379_vm0, %v5125_v21 }
 0xb58   : > { %5182 = vst.msk [vmem:[%s8005_s20 + $0x28] sm:$0xff] %vm379_vm0, %v5118_v28 }
 0xb5a   : > { %v4567_v17 = vpop.f32.mrf.mxu0 }
 0xb5b   : > { %5105 = vperm.xlu1 %5572, %v5100_v25   ;;  %v4542_v25 = vpop.f32.mrf.mxu3 }
 0xb5c   : > { %v5002_v51 = vpop.permute.xlu2 %5001  ;;  %v4982_v52 = vpop.permute.xlu0 %4981 }
 0xb5d   : > { %v5127_v32 = vmul.f32 %v5002_v51, %v4440_v20  ;;  %v5124_v60 = vmul.f32 %v4982_v52, %v4392_v56 }
 0xb5f   : > { %5191 = vst.msk [vmem:[%s8005_s20 + $0x70] sm:$0xff] %vm379_vm0, %v5127_v32 }
 0xb60   : > { %5188 = vst.msk [vmem:[%s8005_s20 + $0x58] sm:$0xff] %vm379_vm0, %v5124_v60 }
 0xb65   : > { %v4963_v3 = vpop.permute.xlu1 %4962 }
 0xb66   : > { %v5121_v42 = vmul.f32 %v4963_v3, %v4365_v50  ;;  %v4640_v50 = vpop.f32.mrf.mxu3 }
 0xb68   : > { %5185 = vst.msk [vmem:[%s8005_s20 + $0x40] sm:$0xff] %vm379_vm0, %v5121_v42 }
 0xb6c   : > { %v5021_v12 = vpop.permute.xlu2 %5020  ;;  %v5015_v40 = vpop.permute.xlu0 %5014 }
 0xb6d   : > { %v4976_v11 = vpop.permute.xlu1 %4975  ;;  %v5130_v55 = vmul.f32 %v5021_v12, %v4467_v26  ;;  %v5129_v0 = vmul.f32 %v5015_v40, %v4465_v4 }
 0xb6e   : > { %v5123_v14 = vmul.f32 %v4976_v11, %v4390_v1  ;;  %v4642_v47 = vpop.f32.mrf.mxu3 }
 0xb6f   : > { %5194 = vst.msk [vmem:[%s8005_s20 + $0x88] sm:$0xff] %vm379_vm0, %v5130_v55 }
 0xb70   : > { %5187 = vst.msk [vmem:[%s8005_s20 + $0x50] sm:$0xff] %vm379_vm0, %v5123_v14 }
 0xb71   : > { %5193 = vst.msk [vmem:[%s8005_s20 + $0x80] sm:$0xff] %vm379_vm0, %v5129_v0 }
 0xb74   : > { %v5034_v34 = vpop.permute.xlu2 %5033 }
 0xb75   : > { %v5132_v54 = vmul.f32 %v5034_v34, %v4492_v36 }
 0xb77   : > { %5196 = vst.msk [vmem:[%s8005_s20 + $0x98] sm:$0xff] %vm379_vm0, %v5132_v54 }
 0xb7c   : > { %v5047_v18 = vpop.permute.xlu0 %5046 }
 0xb7d   : > { %v4995_v5 = vpop.permute.xlu1 %4994  ;;  %v5134_v2 = vmul.f32 %v5047_v18, %v4517_v37 }
 0xb7e   : > { %v5126_v48 = vmul.f32 %v4995_v5, %v4417_v29 }
 0xb7f   : > { %5198 = vst.msk [vmem:[%s8005_s20 + $0xa8] sm:$0xff] %vm379_vm0, %v5134_v2 }
 0xb80   : > { %5190 = vst.msk [vmem:[%s8005_s20 + $0x68] sm:$0xff] %vm379_vm0, %v5126_v48 }
 0xb84   : > { %v5054_v16 = vpop.permute.xlu2 %5053 }
 0xb85   : > { %v5008_v46 = vpop.permute.xlu1 %5007  ;;  %v5135_v38 = vmul.f32 %v5054_v16, %v4540_v6 }
 0xb86   : > { %v5128_v58 = vmul.f32 %v5008_v46, %v4442_v19 }
 0xb87   : > { %5199 = vst.msk [vmem:[%s8005_s20 + $0xb0] sm:$0xff] %vm379_vm0, %v5135_v38 }
 0xb88   : > { %5192 = vst.msk [vmem:[%s8005_s20 + $0x78] sm:$0xff] %vm379_vm0, %v5128_v58 }
 0xb8c   : > { %v5067_v59 = vpop.permute.xlu2 %5066  ;;  %v5080_v41 = vpop.permute.xlu0 %5079 }
 0xb8d   : > { %v5137_v39 = vmul.f32 %v5067_v59, %v4565_v33  ;;  %v5139_v7 = vmul.f32 %v5080_v41, %v4590_v22 }
 0xb8f   : > { %5201 = vst.msk [vmem:[%s8005_s20 + $0xc0] sm:$0xff] %vm379_vm0, %v5137_v39 }
 0xb90   : > { %5203 = vst.msk [vmem:[%s8005_s20 + $0xd0] sm:$0xff] %vm379_vm0, %v5139_v7 }
 0xb95   : > { %v5028_v61 = vpop.permute.xlu1 %5027 }
 0xb96   : > { %v5131_v57 = vmul.f32 %v5028_v61, %v4490_v13 }
 0xb98   : > { %5195 = vst.msk [vmem:[%s8005_s20 + $0x90] sm:$0xff] %vm379_vm0, %v5131_v57 }
 0xb9c   : > { %v5086_v44 = vpop.permute.xlu2 %5085  ;;  %v5112_v27 = vpop.permute.xlu0 %5111 }
 0xb9d   : > { %v5041_v53 = vpop.permute.xlu1 %5040  ;;  %v5140_v62 = vmul.f32 %v5086_v44, %v4592_v35  ;;  %v5144_v15 = vmul.f32 %v5112_v27, %v4642_v47 }
 0xb9e   : > { %v5133_v8 = vmul.f32 %v5041_v53, %v4515_v10 }
 0xb9f   : > { %5204 = vst.msk [vmem:[%s8005_s20 + $0xd8] sm:$0xff] %vm379_vm0, %v5140_v62 }
 0xba0   : > { %5197 = vst.msk [vmem:[%s8005_s20 + $0xa0] sm:$0xff] %vm379_vm0, %v5133_v8 }
 0xba1   : > { %5208 = vst.msk [vmem:[%s8005_s20 + $0xf8] sm:$0xff] %vm379_vm0, %v5144_v15 }
 0xba4   : > { %v5099_v43 = vpop.permute.xlu2 %5098 }
 0xba5   : > { %v5142_v31 = vmul.f32 %v5099_v43, %v4617_v45 }
 0xba7   : > { %5206 = vst.msk [vmem:[%s8005_s20 + $0xe8] sm:$0xff] %vm379_vm0, %v5142_v31 }
 0xbad   : > { %v5060_v23 = vpop.permute.xlu1 %5059 }
 0xbae   : > { %v5136_v9 = vmul.f32 %v5060_v23, %v4542_v25 }
 0xbb0   : > { %5200 = vst.msk [vmem:[%s8005_s20 + $0xb8] sm:$0xff] %vm379_vm0, %v5136_v9 }
 0xbb5   : > { %v5073_v1 = vpop.permute.xlu1 %5072 }
 0xbb6   : > { %v5138_v24 = vmul.f32 %v5073_v1, %v4567_v17 }
 0xbb8   : > { %5202 = vst.msk [vmem:[%s8005_s20 + $0xc8] sm:$0xff] %vm379_vm0, %v5138_v24 }
 0xbc5   : > { %v5093_v30 = vpop.permute.xlu1 %5092 }
 0xbc6   : > { %v5141_v49 = vmul.f32 %v5093_v30, %v4615_v63 }
 0xbc8   : > { %5205 = vst.msk [vmem:[%s8005_s20 + $0xe0] sm:$0xff] %vm379_vm0, %v5141_v49 }
 0xbcd   : > { %v5106_v21 = vpop.permute.xlu1 %5105 }
 0xbce   : > { %v5143_v28 = vmul.f32 %v5106_v21, %v4640_v50 }
 0xbd0   : > { %5207 = vst.msk [vmem:[%s8005_s20 + $0xf0] sm:$0xff] %vm379_vm0, %v5143_v28 }
 0xbd1 PF: > { %s18_s23 = sadd.s32 1, %s5805_s23  }
 0xbd2   : > { %p15_p4 = scmp.ge.s32.totalorder %s18_s23, 4  }
 0xbd4   :  { %17 = sbr.rel (!%p15_p4) target bundleno = 2 (0x2), region = 85 }

</bundles_post_ra>
